<compile_context>
chip_gen: v7x
topology: tpu7x:2x2x1
jax: 0.10.0
libtpu: 0.0.40
codegen_flags: <defaults>
</compile_context>

<pallas_src>
import functools

import jax
import jax.numpy as jnp
from jax.experimental import pallas as pl
from jax.experimental.pallas import tpu as pltpu


def _resblock_kernel(xpad_ref, w1_ref, b1_ref, w2_ref, b2_ref, o_ref, y1_ref,
                     *, H, W, C, K, R, res_scale):
    """Per-batch-element fused ResBlock body (batch dim squeezed by BlockSpec).

    xpad_ref : (H + 2P, W + 2P, C) f32   input zero-padded by P
    w1_ref   : (K*K*C, C) bf16           conv1 weights, im2col layout
    b1_ref   : (1, C) f32
    w2_ref   : (K*K*C, C) bf16           conv2 weights, im2col layout
    b2_ref   : (1, C) f32
    o_ref    : (H, W, C) f32
    y1_ref   : (H + 2P, W + 2P, C) bf16  scratch: relu(conv1) with a zero halo
    """
    P = K // 2
    Hp, Wp = H + 2 * P, W + 2 * P

    # Zero only the halo ring of the scratch so conv2 sees zero padding of
    # relu(conv1(x)) (matches PyTorch Conv2d(padding=K//2)); the interior is
    # fully overwritten by the conv1 loop below.
    if P > 0:
        zrow = jnp.zeros((P, Wp, C), dtype=y1_ref.dtype)
        y1_ref[0:P, :, :] = zrow
        y1_ref[Hp - P:Hp, :, :] = zrow
        zcol = jnp.zeros((Hp, P, C), dtype=y1_ref.dtype)
        y1_ref[:, 0:P, :] = zcol
        y1_ref[:, Wp - P:Wp, :] = zcol

    def im2col(win):
        # win: (R + 2P, W + 2P, C) -> (R*W, K*K*C); feature order (di, dj, ci)
        # matches the (K, K, C, C) -> (K*K*C, C) weight reshape in the wrapper.
        cols = [win[di:di + R, dj:dj + W, :]
                for di in range(K) for dj in range(K)]
        return jnp.concatenate(cols, axis=-1).reshape(R * W, K * K * C)

    n_strips = H // R
    w1 = w1_ref[...]
    w2 = w2_ref[...]
    b1 = b1_ref[...]
    b2 = b2_ref[...]

    # ---- conv1 + bias + ReLU -> y1 interior, one MXU dot per row strip ----
    for s in range(n_strips):
        r0 = s * R
        win = xpad_ref[r0:r0 + R + 2 * P, :, :].astype(jnp.bfloat16)
        acc = jnp.dot(im2col(win), w1,
                      preferred_element_type=jnp.float32)            # (R*W, C)
        act = jnp.maximum(acc + b1, 0.0)
        y1_ref[P + r0:P + r0 + R, P:P + W, :] = (
            act.reshape(R, W, C).astype(y1_ref.dtype))

    # ---- conv2 + bias, * res_scale, + residual (f32, from xpad interior) ----
    for s in range(n_strips):
        r0 = s * R
        win = y1_ref[r0:r0 + R + 2 * P, :, :]                         # bf16
        acc = jnp.dot(im2col(win), w2,
                      preferred_element_type=jnp.float32) + b2
        resid = xpad_ref[P + r0:P + r0 + R, P:P + W, :].astype(jnp.float32)
        out = acc.reshape(R, W, C) * res_scale + resid
        o_ref[r0:r0 + R, :, :] = out.astype(o_ref.dtype)


def _pick_strip(H, W, C, K, budget_bytes=4 << 20):
    """Largest divisor R of H whose per-strip im2col (bf16) + f32 accumulator
    fit `budget_bytes` -- big MXU M dim, few dot calls, bounded VMEM."""
    best = 1
    for cand in range(1, H + 1):
        if H % cand:
            continue
        m = cand * W
        if m * K * K * C * 2 + m * C * 4 <= budget_bytes:
            best = cand
    return best


def resblock_nhwc(x_nhwc, w1, b1, w2, b2, *, res_scale=1.0):
    """x_nhwc: (N,H,W,C) f32; w1/w2: (K,K,C,C) HWIO; b1/b2: (C,)."""
    N, H, W, C = x_nhwc.shape
    K = w1.shape[0]
    P = K // 2

    # Pad by P only; conv2's halo is the zeroed ring inside the kernel scratch.
    xpad = jnp.pad(x_nhwc, ((0, 0), (P, P), (P, P), (0, 0)))
    # Pre-reshape weights once to im2col layout, cast to bf16 (f32 MXU accum).
    w1c = w1.astype(jnp.bfloat16).reshape(K * K * C, C)
    w2c = w2.astype(jnp.bfloat16).reshape(K * K * C, C)
    b1r = b1.astype(jnp.float32).reshape(1, C)
    b2r = b2.astype(jnp.float32).reshape(1, C)

    R = _pick_strip(H, W, C, K)

    kernel = functools.partial(_resblock_kernel, H=H, W=W, C=C, K=K, R=R,
                               res_scale=float(res_scale))
    out = pl.pallas_call(
        kernel,
        out_shape=jax.ShapeDtypeStruct((N, H, W, C), x_nhwc.dtype),
        grid_spec=pltpu.PrefetchScalarGridSpec(
            num_scalar_prefetch=0,
            grid=(N,),
            in_specs=[
                pl.BlockSpec((None, H + 2 * P, W + 2 * P, C),
                             lambda n: (n, 0, 0, 0)),
                pl.BlockSpec((K * K * C, C), lambda n: (0, 0)),
                pl.BlockSpec((1, C), lambda n: (0, 0)),
                pl.BlockSpec((K * K * C, C), lambda n: (0, 0)),
                pl.BlockSpec((1, C), lambda n: (0, 0)),
            ],
            out_specs=pl.BlockSpec((None, H, W, C), lambda n: (n, 0, 0, 0)),
            scratch_shapes=[
                pltpu.VMEM((H + 2 * P, W + 2 * P, C), jnp.bfloat16)],
        ),
        compiler_params=pltpu.CompilerParams(
            dimension_semantics=("parallel",)),
    )(xpad, w1c, b1r, w2c, b2r)
    # TODO(synk): for EDSR-scale inputs (C=64..256, large H/W) add an H-strip
    # grid axis + rolling K-row conv1 window so blocks fit v7x's 64 MiB VMEM.
    return out


def resblock_ref_nhwc(x, w1, b1, w2, b2, res_scale):
    """Reference at matching matmul precision (bf16 inputs, f32 accumulation)."""
    dn = jax.lax.conv_dimension_numbers(x.shape, w1.shape,
                                        ("NHWC", "HWIO", "NHWC"))

    def conv(a, w):
        return jax.lax.conv_general_dilated(
            a.astype(jnp.bfloat16), w.astype(jnp.bfloat16), (1, 1), "SAME",
            dimension_numbers=dn, preferred_element_type=jnp.float32)

    y = jnp.maximum(conv(x, w1) + b1, 0.0)
    y = conv(y, w2) + b2
    return y * res_scale + x


if __name__ == "__main__":
    N, C, H, W, K = 2, 4, 16, 16, 3   # n_feats=4, kernel_size=3
    res_scale = 1.0                   # module default (bn=False, act=ReLU)

    key = jax.random.PRNGKey(0)
    kx, kw1, kb1, kw2, kb2 = jax.random.split(key, 5)
    x_nchw = jax.random.normal(kx, (N, C, H, W), dtype=jnp.float32)  # PyTorch NCHW
    # Synthetic Conv2d params in HWIO (PyTorch OIHW weights map via transpose(2,3,1,0)).
    w1 = jax.random.normal(kw1, (K, K, C, C), dtype=jnp.float32) * 0.1
    b1 = jax.random.normal(kb1, (C,), dtype=jnp.float32) * 0.1
    w2 = jax.random.normal(kw2, (K, K, C, C), dtype=jnp.float32) * 0.1
    b2 = jax.random.normal(kb2, (C,), dtype=jnp.float32) * 0.1

    x_nhwc = jnp.transpose(x_nchw, (0, 2, 3, 1))
    out_nhwc = resblock_nhwc(x_nhwc, w1, b1, w2, b2, res_scale=res_scale)
    out_nchw = jnp.transpose(out_nhwc, (0, 3, 1, 2))
    jax.block_until_ready(out_nchw)

    ref_nchw = jnp.transpose(
        resblock_ref_nhwc(x_nhwc, w1, b1, w2, b2, res_scale), (0, 3, 1, 2))
    err = float(jnp.max(jnp.abs(out_nchw - ref_nchw)))
    assert out_nchw.shape == (N, C, H, W)
    assert jnp.allclose(out_nchw, ref_nchw, rtol=2e-3, atol=2e-3), (
        "max abs err = %f" % err)
    print("KERNEL_OK")
</pallas_src>

<mosaic_0001>
module attributes {stable_mosaic.version = 11 : i64} {
  func.func @_resblock_kernel(%arg0: i32, %arg1: memref<1x18x18x4xf32, #tpu.memory_space<vmem>>, %arg2: memref<36x4xbf16, #tpu.memory_space<vmem>>, %arg3: memref<1x4xf32, #tpu.memory_space<vmem>>, %arg4: memref<36x4xbf16, #tpu.memory_space<vmem>>, %arg5: memref<1x4xf32, #tpu.memory_space<vmem>>, %arg6: memref<1x16x16x4xf32, #tpu.memory_space<vmem>>, %arg7: memref<18x18x4xbf16, #tpu.memory_space<vmem>>) attributes {dimension_semantics = [#tpu.dimension_semantics<parallel>], iteration_bounds = array<i64: 2>, scalar_prefetch = 0 : i64, scratch_operands = 1 : i64, tpu.core_type = #tpu.core_type<tc>, window_params = [{transform_indices = @transform_0, window_bounds = array<i64: 1, 18, 18, 4>}, {pipeline_mode = #tpu.pipeline_mode<synchronous>, transform_indices = @transform_1, window_bounds = array<i64: 36, 4>}, {pipeline_mode = #tpu.pipeline_mode<synchronous>, transform_indices = @transform_2, window_bounds = array<i64: 1, 4>}, {pipeline_mode = #tpu.pipeline_mode<synchronous>, transform_indices = @transform_3, window_bounds = array<i64: 36, 4>}, {pipeline_mode = #tpu.pipeline_mode<synchronous>, transform_indices = @transform_4, window_bounds = array<i64: 1, 4>}, {transform_indices = @transform_5, window_bounds = array<i64: 1, 16, 16, 4>}]} {
    %cst = arith.constant 0.000000e+00 : bf16
    %0 = vector.broadcast %cst : bf16 to vector<1x18x4xbf16>
    %c0 = arith.constant 0 : index
    %c0_0 = arith.constant 0 : index
    %c0_1 = arith.constant 0 : index
    %1 = vector.load %arg7[%c0, %c0_0, %c0_1] : memref<18x18x4xbf16, #tpu.memory_space<vmem>>, vector<1x18x4xbf16>
    tpu.vector_store %arg7[%c0, %c0_0, %c0_1], %0 {strides = array<i32>} : memref<18x18x4xbf16, #tpu.memory_space<vmem>>, vector<1x18x4xbf16>,
    %c17 = arith.constant 17 : index
    %c0_2 = arith.constant 0 : index
    %c0_3 = arith.constant 0 : index
    %2 = vector.load %arg7[%c17, %c0_2, %c0_3] : memref<18x18x4xbf16, #tpu.memory_space<vmem>>, vector<1x18x4xbf16>
    tpu.vector_store %arg7[%c17, %c0_2, %c0_3], %0 {strides = array<i32>} : memref<18x18x4xbf16, #tpu.memory_space<vmem>>, vector<1x18x4xbf16>,
    %cst_4 = arith.constant 0.000000e+00 : bf16
    %3 = vector.broadcast %cst_4 : bf16 to vector<18x1x4xbf16>
    %c0_5 = arith.constant 0 : index
    %c0_6 = arith.constant 0 : index
    %c0_7 = arith.constant 0 : index
    %4 = vector.load %arg7[%c0_5, %c0_6, %c0_7] : memref<18x18x4xbf16, #tpu.memory_space<vmem>>, vector<18x1x4xbf16>
    tpu.vector_store %arg7[%c0_5, %c0_6, %c0_7], %3 {strides = array<i32>} : memref<18x18x4xbf16, #tpu.memory_space<vmem>>, vector<18x1x4xbf16>,
    %c0_8 = arith.constant 0 : index
    %c17_9 = arith.constant 17 : index
    %c0_10 = arith.constant 0 : index
    %5 = vector.load %arg7[%c0_8, %c17_9, %c0_10] : memref<18x18x4xbf16, #tpu.memory_space<vmem>>, vector<18x1x4xbf16>
    tpu.vector_store %arg7[%c0_8, %c17_9, %c0_10], %3 {strides = array<i32>} : memref<18x18x4xbf16, #tpu.memory_space<vmem>>, vector<18x1x4xbf16>,
    %c0_11 = arith.constant 0 : index
    %c0_12 = arith.constant 0 : index
    %6 = vector.load %arg2[%c0_11, %c0_12] : memref<36x4xbf16, #tpu.memory_space<vmem>>, vector<36x4xbf16>
    %c0_13 = arith.constant 0 : index
    %c0_14 = arith.constant 0 : index
    %7 = vector.load %arg4[%c0_13, %c0_14] : memref<36x4xbf16, #tpu.memory_space<vmem>>, vector<36x4xbf16>
    %c0_15 = arith.constant 0 : index
    %c0_16 = arith.constant 0 : index
    %8 = vector.load %arg3[%c0_15, %c0_16] : memref<1x4xf32, #tpu.memory_space<vmem>>, vector<1x4xf32>
    %c0_17 = arith.constant 0 : index
    %c0_18 = arith.constant 0 : index
    %9 = vector.load %arg5[%c0_17, %c0_18] : memref<1x4xf32, #tpu.memory_space<vmem>>, vector<1x4xf32>
    %c0_19 = arith.constant 0 : index
    %c0_20 = arith.constant 0 : index
    %c0_21 = arith.constant 0 : index
    %c0_22 = arith.constant 0 : index
    %10 = vector.load %arg1[%c0_19, %c0_20, %c0_21, %c0_22] : memref<1x18x18x4xf32, #tpu.memory_space<vmem>>, vector<1x18x18x4xf32>
    %11 = vector.shape_cast %10 : vector<1x18x18x4xf32> to vector<18x18x4xf32>
    %12 = arith.truncf %11 : vector<18x18x4xf32> to vector<18x18x4xbf16>
    %13 = vector.extract_strided_slice %12 {offsets = [0, 0, 0], sizes = [16, 16, 4], strides = [1, 1, 1]} : vector<18x18x4xbf16> to vector<16x16x4xbf16>
    %14 = vector.extract_strided_slice %12 {offsets = [0, 1, 0], sizes = [16, 16, 4], strides = [1, 1, 1]} : vector<18x18x4xbf16> to vector<16x16x4xbf16>
    %15 = vector.extract_strided_slice %12 {offsets = [0, 2, 0], sizes = [16, 16, 4], strides = [1, 1, 1]} : vector<18x18x4xbf16> to vector<16x16x4xbf16>
    %16 = vector.extract_strided_slice %12 {offsets = [1, 0, 0], sizes = [16, 16, 4], strides = [1, 1, 1]} : vector<18x18x4xbf16> to vector<16x16x4xbf16>
    %17 = vector.extract_strided_slice %12 {offsets = [1, 1, 0], sizes = [16, 16, 4], strides = [1, 1, 1]} : vector<18x18x4xbf16> to vector<16x16x4xbf16>
    %18 = vector.extract_strided_slice %12 {offsets = [1, 2, 0], sizes = [16, 16, 4], strides = [1, 1, 1]} : vector<18x18x4xbf16> to vector<16x16x4xbf16>
    %19 = vector.extract_strided_slice %12 {offsets = [2, 0, 0], sizes = [16, 16, 4], strides = [1, 1, 1]} : vector<18x18x4xbf16> to vector<16x16x4xbf16>
    %20 = vector.extract_strided_slice %12 {offsets = [2, 1, 0], sizes = [16, 16, 4], strides = [1, 1, 1]} : vector<18x18x4xbf16> to vector<16x16x4xbf16>
    %21 = vector.extract_strided_slice %12 {offsets = [2, 2, 0], sizes = [16, 16, 4], strides = [1, 1, 1]} : vector<18x18x4xbf16> to vector<16x16x4xbf16>
    %22 = tpu.concatenate %13, %14, %15, %16, %17, %18, %19, %20, %21 in 2 : vector<16x16x4xbf16>, vector<16x16x4xbf16>, vector<16x16x4xbf16>, vector<16x16x4xbf16>, vector<16x16x4xbf16>, vector<16x16x4xbf16>, vector<16x16x4xbf16>, vector<16x16x4xbf16>, vector<16x16x4xbf16> -> vector<16x16x36xbf16>
    %23 = vector.shape_cast %22 : vector<16x16x36xbf16> to vector<256x36xbf16>
    %cst_23 = arith.constant dense<0.000000e+00> : vector<256x4xf32>
    %24 = tpu.matmul %23, %6, %cst_23 {dimension_numbers = #tpu.dot_dimension_numbers<[1], [0], [0], [1], [0, 0, 1, 1], [], []>} : vector<256x36xbf16>, vector<36x4xbf16>, vector<256x4xf32> -> vector<256x4xf32>
    %25 = vector.broadcast %8 : vector<1x4xf32> to vector<256x4xf32>
    %26 = arith.addf %24, %25 : vector<256x4xf32>
    %cst_24 = arith.constant 0.000000e+00 : f32
    %27 = vector.broadcast %cst_24 : f32 to vector<256x4xf32>
    %28 = arith.maximumf %26, %27 : vector<256x4xf32>
    %29 = vector.shape_cast %28 : vector<256x4xf32> to vector<16x16x4xf32>
    %30 = arith.truncf %29 : vector<16x16x4xf32> to vector<16x16x4xbf16>
    %c1 = arith.constant 1 : index
    %c1_25 = arith.constant 1 : index
    %c0_26 = arith.constant 0 : index
    %31 = vector.load %arg7[%c1, %c1_25, %c0_26] : memref<18x18x4xbf16, #tpu.memory_space<vmem>>, vector<16x16x4xbf16>
    tpu.vector_store %arg7[%c1, %c1_25, %c0_26], %30 {strides = array<i32>} : memref<18x18x4xbf16, #tpu.memory_space<vmem>>, vector<16x16x4xbf16>,
    %c0_27 = arith.constant 0 : index
    %c0_28 = arith.constant 0 : index
    %c0_29 = arith.constant 0 : index
    %32 = vector.load %arg7[%c0_27, %c0_28, %c0_29] : memref<18x18x4xbf16, #tpu.memory_space<vmem>>, vector<18x18x4xbf16>
    %33 = vector.extract_strided_slice %32 {offsets = [0, 0, 0], sizes = [16, 16, 4], strides = [1, 1, 1]} : vector<18x18x4xbf16> to vector<16x16x4xbf16>
    %34 = vector.extract_strided_slice %32 {offsets = [0, 1, 0], sizes = [16, 16, 4], strides = [1, 1, 1]} : vector<18x18x4xbf16> to vector<16x16x4xbf16>
    %35 = vector.extract_strided_slice %32 {offsets = [0, 2, 0], sizes = [16, 16, 4], strides = [1, 1, 1]} : vector<18x18x4xbf16> to vector<16x16x4xbf16>
    %36 = vector.extract_strided_slice %32 {offsets = [1, 0, 0], sizes = [16, 16, 4], strides = [1, 1, 1]} : vector<18x18x4xbf16> to vector<16x16x4xbf16>
    %37 = vector.extract_strided_slice %32 {offsets = [1, 1, 0], sizes = [16, 16, 4], strides = [1, 1, 1]} : vector<18x18x4xbf16> to vector<16x16x4xbf16>
    %38 = vector.extract_strided_slice %32 {offsets = [1, 2, 0], sizes = [16, 16, 4], strides = [1, 1, 1]} : vector<18x18x4xbf16> to vector<16x16x4xbf16>
    %39 = vector.extract_strided_slice %32 {offsets = [2, 0, 0], sizes = [16, 16, 4], strides = [1, 1, 1]} : vector<18x18x4xbf16> to vector<16x16x4xbf16>
    %40 = vector.extract_strided_slice %32 {offsets = [2, 1, 0], sizes = [16, 16, 4], strides = [1, 1, 1]} : vector<18x18x4xbf16> to vector<16x16x4xbf16>
    %41 = vector.extract_strided_slice %32 {offsets = [2, 2, 0], sizes = [16, 16, 4], strides = [1, 1, 1]} : vector<18x18x4xbf16> to vector<16x16x4xbf16>
    %42 = tpu.concatenate %33, %34, %35, %36, %37, %38, %39, %40, %41 in 2 : vector<16x16x4xbf16>, vector<16x16x4xbf16>, vector<16x16x4xbf16>, vector<16x16x4xbf16>, vector<16x16x4xbf16>, vector<16x16x4xbf16>, vector<16x16x4xbf16>, vector<16x16x4xbf16>, vector<16x16x4xbf16> -> vector<16x16x36xbf16>
    %43 = vector.shape_cast %42 : vector<16x16x36xbf16> to vector<256x36xbf16>
    %cst_30 = arith.constant dense<0.000000e+00> : vector<256x4xf32>
    %44 = tpu.matmul %43, %7, %cst_30 {dimension_numbers = #tpu.dot_dimension_numbers<[1], [0], [0], [1], [0, 0, 1, 1], [], []>} : vector<256x36xbf16>, vector<36x4xbf16>, vector<256x4xf32> -> vector<256x4xf32>
    %45 = vector.broadcast %9 : vector<1x4xf32> to vector<256x4xf32>
    %46 = arith.addf %44, %45 : vector<256x4xf32>
    %c0_31 = arith.constant 0 : index
    %c1_32 = arith.constant 1 : index
    %c1_33 = arith.constant 1 : index
    %c0_34 = arith.constant 0 : index
    %47 = vector.load %arg1[%c0_31, %c1_32, %c1_33, %c0_34] : memref<1x18x18x4xf32, #tpu.memory_space<vmem>>, vector<1x16x16x4xf32>
    %48 = vector.shape_cast %47 : vector<1x16x16x4xf32> to vector<16x16x4xf32>
    %49 = vector.shape_cast %46 : vector<256x4xf32> to vector<16x16x4xf32>
    %cst_35 = arith.constant 1.000000e+00 : f32
    %50 = vector.broadcast %cst_35 : f32 to vector<16x16x4xf32>
    %51 = arith.mulf %49, %50 : vector<16x16x4xf32>
    %52 = arith.addf %51, %48 : vector<16x16x4xf32>
    %c0_36 = arith.constant 0 : index
    %c0_37 = arith.constant 0 : index
    %c0_38 = arith.constant 0 : index
    %c0_39 = arith.constant 0 : index
    %53 = vector.load %arg6[%c0_36, %c0_37, %c0_38, %c0_39] : memref<1x16x16x4xf32, #tpu.memory_space<vmem>>, vector<1x16x16x4xf32>
    %54 = vector.shape_cast %53 : vector<1x16x16x4xf32> to vector<16x16x4xf32>
    %55 = vector.shape_cast %52 : vector<16x16x4xf32> to vector<1x16x16x4xf32>
    tpu.vector_store %arg6[%c0_36, %c0_37, %c0_38, %c0_39], %55 {strides = array<i32>} : memref<1x16x16x4xf32, #tpu.memory_space<vmem>>, vector<1x16x16x4xf32>,
    return
  }
  func.func @transform_0(%arg0: i32) -> (i32, i32, i32, i32) {
    %c0_i32 = arith.constant 0 : i32
    %c0_i32_0 = arith.constant 0 : i32
    %c0_i32_1 = arith.constant 0 : i32
    %c0_i32_2 = arith.constant 0 : i32
    return %arg0, %c0_i32, %c0_i32_0, %c0_i32_1 : i32, i32, i32, i32
  }
  func.func @transform_1(%arg0: i32) -> (i32, i32) {
    %c0_i32 = arith.constant 0 : i32
    %c0_i32_0 = arith.constant 0 : i32
    %c0_i32_1 = arith.constant 0 : i32
    return %c0_i32, %c0_i32_0 : i32, i32
  }
  func.func @transform_2(%arg0: i32) -> (i32, i32) {
    %c0_i32 = arith.constant 0 : i32
    %c0_i32_0 = arith.constant 0 : i32
    %c0_i32_1 = arith.constant 0 : i32
    return %c0_i32, %c0_i32_0 : i32, i32
  }
  func.func @transform_3(%arg0: i32) -> (i32, i32) {
    %c0_i32 = arith.constant 0 : i32
    %c0_i32_0 = arith.constant 0 : i32
    %c0_i32_1 = arith.constant 0 : i32
    return %c0_i32, %c0_i32_0 : i32, i32
  }
  func.func @transform_4(%arg0: i32) -> (i32, i32) {
    %c0_i32 = arith.constant 0 : i32
    %c0_i32_0 = arith.constant 0 : i32
    %c0_i32_1 = arith.constant 0 : i32
    return %c0_i32, %c0_i32_0 : i32, i32
  }
  func.func @transform_5(%arg0: i32) -> (i32, i32, i32, i32) {
    %c0_i32 = arith.constant 0 : i32
    %c0_i32_0 = arith.constant 0 : i32
    %c0_i32_1 = arith.constant 0 : i32
    %c0_i32_2 = arith.constant 0 : i32
    return %arg0, %c0_i32, %c0_i32_0, %c0_i32_1 : i32, i32, i32, i32
  }
}

</mosaic_0001>

<bundles_post_ra>
// kernel: tpu_custom_call.1
= control target key start
LH: loop header
LB: loop body
LE: loop exit
PB: predicated region body
PF: predicated region fallthrough
CT: control target
= control target key end

     0   :  { %s3828_s18 = smov 0   ;;  %s5341_s0 = inlined_call_operand.vmem [shape: f32[2,18,18,4], index: 0, kind: input, shape index: {}]   ;;  %s5342_s1 = inlined_call_operand.vmem [shape: bf16[36,4], index: 1, kind: input, shape index: {}]   ;;  %s5343_s2 = inlined_call_operand.vmem [shape: f32[1,4], index: 2, kind: input, shape index: {}]   ;;  %s5344_s3 = inlined_call_operand.vmem [shape: bf16[36,4], index: 3, kind: input, shape index: {}]   ;;  %s5345_s4 = inlined_call_operand.vmem [shape: f32[1,4], index: 4, kind: input, shape index: {}]   ;;  %s5346_s5 = inlined_call_operand.vmem [shape: f32[2,16,16,4], index: 5, kind: output, shape index: {}]  }
   0x1 LB: > { %s3411_s19 = sadd.s32 4294967295, %s3787_s18   ;;  %p3415_p0 = scmp.ge.s32.totalorder %s3787_s18, 1  ;;  %s3787_s18 = sphi %s3828_s18, %s15_s18  }
   0x2   : > { %p187_p1 = scmp.lt.s32.totalorder %s3787_s18, 3 }
   0x4   : > { %p188_p2 = pnand %p3415_p0, %p187_p1 }
   0x5   : > { %p215_p3 = scmp.lt.s32.totalorder (!%p188_p2), %s3411_s19, 1  ;;  %vm707_vm0 = vcmask (!%p188_p2), 1046528   ;;  %s3789_s24 = smov (!%p188_p2), 12   ;;  %vm450_vm1 = vsmask.f32 (!%p188_p2), 7424  ;;  %v3728_v44 = vld [vmem:[%s5342_s1] sm:$0xff] (!%p188_p2)  }
   0x6   : > { %191 = sbr.rel (%p188_p2) target bundleno = 1008 (0x3f0), region = 40  ;;  %s3790_s25 = smov (!%p188_p2), 20   ;;  %3632 = vmatprep.subr.bf16.mxu0 (!%p188_p2), %v3728_v44  ;;  %v3729_v51 = vld [vmem:[%s5342_s1 + $0x8] sm:$0xff] (!%p188_p2)   ;;  %vm5347_vm2 = vcmask (!%p188_p2), 1041408   ;;  %vm1014_vm3 = vcmask (!%p188_p2), 31744   ;;  %vm1047_vm4 = vcmask (!%p188_p2), 64512  }
   0x7   : > { %s3791_s26 = smov (!%p188_p2), 8   ;;  %s3792_s29 = smov (!%p188_p2), 4   ;;  %3633 = vmatpush3.bf16.msra.mxu0 (!%p188_p2), %v3728_v44  ;;  %vm1080_vm5 = vcmask (!%p188_p2), 97280   ;;  %vm1113_vm6 = vcmask (!%p188_p2), 130048   ;;  %vm1146_vm7 = vcmask (!%p188_p2), 162816   ;;  %vm1179_vm8 = vcmask (!%p188_p2), 195584  }
   0x8   : > { %3634 = vmatprep.subr.bf16.mxu0 (!%p188_p2), %v3729_v51  ;;  %s3793_s7 = smov (!%p188_p2), 16   ;;  %s3794_s8 = smov (!%p188_p2), 24   ;;  %vm5349_vm9 = vcmask (!%p188_p2), 228352   ;;  %vm5350_vm10 = vcmask (!%p188_p2), 261120   ;;  %vm1299_vm11 = vcmask (!%p188_p2), 293888   ;;  %vm226_vm12 = vcmask (!%p188_p2), 27648  }
   0x9   : > { %s3795_s9 = smov (!%p188_p2), 28   ;;  %s3796_s12 = smov (!%p188_p2), 32   ;;  %vm229_vm13 = vcmask (!%p188_p2), 24576   ;;  %vm5348_vm14 = vsmask.f32 (!%p188_p2), 256 }
   0xa   : > { %vm4269_vm15 = vmand (!%p188_p2), %vm229_vm13, %vm5348_vm14 }
   0xb   : > { %3635 = vmatpush3.bf16.msra.mxu0 (!%p188_p2), %v3729_v51 }
   0xd   : > { %s5394_s19 = smov (!%p215_p3, %s3411_s19), 1 }
   0xe   : > { %s3710_s20 = smul.u32 432, %s5394_s19 }
  0x10   : > { %s3842_s23 = scalar_lea.vmem %s5341_s0, %s3710_s20 }
  0x11   : > { %v366_v0 = vld [vmem:[%s3842_s23 + $0x30] sm:$0xff]  ;;  %v367_v1 = vld [vmem:[%s3842_s23 + $0x38] sm:$0xff]  ;;  %v364_v4 = vld [vmem:[%s3842_s23 + $0x20] sm:$0xff] }
  0x12   : > { %v363_v2 = vld [vmem:[%s3842_s23 + $0x18] sm:$0xff]  ;;  %v3847_v3 = vpack.c.bf16 %v367_v1, %v366_v0  ;;  %v365_v5 = vld [vmem:[%s3842_s23 + $0x28] sm:$0x3]  ;;  %v360_v6 = vld [vmem:[%s3842_s23] sm:$0xff] }
  0x13   : > { %v3852_v7 = vpack.c.bf16 %v364_v4, %v363_v2  ;;  %v417_v8 = vpack.c.bf16 %v365_v5, %v365_v5  ;;  %v361_v9 = vld [vmem:[%s3842_s23 + $0x8] sm:$0xff]  ;;  %v362_v10 = vld [vmem:[%s3842_s23 + $0x10] sm:$0x3]  ;;  %v368_v11 = vld [vmem:[%s3842_s23 + $0x40] sm:$0x3] }
  0x14   : > { %791 = vrot.lane.b32.xlu1 %v3847_v3, %s3789_s24  ;;  %v3859_v12 = vpack.c.bf16 %v361_v9, %v360_v6  ;;  %v415_v13 = vpack.c.bf16 %v362_v10, %v362_v10  ;;  %v419_v14 = vpack.c.bf16 %v368_v11, %v368_v11  ;;  %v714_v25 = vrot.slane %v3847_v3, 1  ;;  %v369_v27 = vld [vmem:[%s3842_s23 + $0x48] sm:$0xff]  ;;  %v370_v28 = vld [vmem:[%s3842_s23 + $0x50] sm:$0xff]  ;;  %v371_v41 = vld [vmem:[%s3842_s23 + $0x58] sm:$0x3] }
  0x15   : > { %789 = vrot.lane.b32.xlu0 %v3852_v7, %s3789_s24  ;;  %v711_v15 = vrot.slane %v3852_v7, 1  ;;  %v712_v16 = vrot.slane %v417_v8, 1  ;;  %v464_v17 = vshrl.u32 %v3852_v7, 16  ;;  %v466_v18 = vshll.u32 %v3852_v7, 16  ;;  %v372_v59 = vld [vmem:[%s3842_s23 + $0x60] sm:$0xff]  ;;  %v373_v60 = vld [vmem:[%s3842_s23 + $0x68] sm:$0xff] }
  0x16   : > { %v708_v19 = vrot.slane %v3859_v12, 1  ;;  %v709_v20 = vrot.slane %v415_v13, 1  ;;  %v452_v21 = vshrl.u32 %v3859_v12, 16  ;;  %v454_v22 = vshll.u32 %v3859_v12, 16  ;;  %v374_v0 = vld [vmem:[%s3842_s23 + $0x70] sm:$0x3] }
  0x17   : > { %v713_v23 = vsel %vm707_vm0, %v711_v15, %v712_v16  ;;  %v459_v24 = vshll.u32 %v415_v13, 16  ;;  %v468_v26 = vrot.slane %v466_v18, 1  ;;  %v715_v31 = vrot.slane %v419_v14, 1  ;;  %v3730_v1 = vld [vmem:[%s5342_s1 + $0x10] ss:$0 sps:$4 sm:$0x33]  }
  0x18   : > { %v710_v29 = vsel %vm707_vm0, %v708_v19, %v709_v20  ;;  %v456_v30 = vrot.slane %v454_v22, 1  ;;  %v471_v32 = vshll.u32 %v417_v8, 16  ;;  %v476_v35 = vshrl.u32 %v3847_v3, 16  ;;  %3708 = vmatprep.subr.msk.bf16.mxu0 %vm5347_vm2, %v3730_v1  ;;  %v375_v11 = vld [vmem:[%s3842_s23 + $0x78] sm:$0xff]  ;;  %v376_v13 = vld [vmem:[%s3842_s23 + $0x80] sm:$0xff]  ;;  %v382_v44 = vld [vmem:[%s3842_s23 + $0xb0] sm:$0xff] }
  0x19   : > { %869 = vrot.lane.b32.xlu0 %v713_v23, %s3790_s25  ;;  %756 = vrot.lane.b32.xlu1 %v710_v29, %s3791_s26  ;;  %v461_v33 = vrot.slane %v459_v24, 1  ;;  %v469_v34 = vor.u32 %v468_v26, %v464_v17  ;;  %v478_v36 = vshll.u32 %v3847_v3, 16  ;;  %v483_v39 = vshll.u32 %v419_v14, 16  ;;  %v377_v17 = vld [vmem:[%s3842_s23 + $0x88] sm:$0x3] }
  0x1a   : > { %v457_v37 = vor.u32 %v456_v30, %v452_v21  ;;  %v473_v38 = vrot.slane %v471_v32, 1  ;;  %v3878_v40 = vpack.c.bf16 %v370_v28, %v369_v27  ;;  %v716_v45 = vsel %vm707_vm0, %v714_v25, %v715_v31  ;;  %v378_v30 = vld [vmem:[%s3842_s23 + $0x90] sm:$0xff]  ;;  %v379_v31 = vld [vmem:[%s3842_s23 + $0x98] sm:$0xff] }
  0x1b   : > { %v480_v42 = vrot.slane %v478_v36, 1  ;;  %v421_v46 = vpack.c.bf16 %v371_v41, %v371_v41  ;;  %v485_v49 = vrot.slane %v483_v39, 1  ;;  %v3909_v63 = vpack.c.bf16 %v373_v60, %v372_v59 }
  0x1c   : > { %v462_v43 = vsel %vm450_vm1, %v457_v37, %v461_v33  ;;  %v474_v47 = vsel %vm450_vm1, %v469_v34, %v473_v38  ;;  %v490_v50 = vshll.u32 %v3878_v40, 16  ;;  %v488_v53 = vshrl.u32 %v3878_v40, 16 }
  0x1d   : > { %758 = vrot.lane.b32.xlu1 %v713_v23, %s3791_s26  ;;  %643 = vrot.lane.b32.xlu0 %v462_v43, %s3792_s29  ;;  %v481_v48 = vor.u32 %v480_v42, %v476_v35  ;;  %v495_v55 = vshll.u32 %v421_v46, 16  ;;  %v717_v61 = vrot.slane %v3878_v40, 1  ;;  %v718_v62 = vrot.slane %v421_v46, 1  ;;  %v380_v35 = vld [vmem:[%s3842_s23 + $0xa0] sm:$0x3]  ;;  %v381_v43 = vld [vmem:[%s3842_s23 + $0xa8] sm:$0xff] }
  0x1e   : > { %v492_v54 = vrot.slane %v490_v50, 1  ;;  %v423_v4 = vpack.c.bf16 %v374_v0, %v374_v0  ;;  %v502_v5 = vshll.u32 %v3909_v63, 16  ;;  %v1334_v6 = vsel %vm5347_vm2, %v3730_v1, 0 }
  0x1f   : > { %v486_v52 = vsel %vm450_vm1, %v481_v48, %v485_v49  ;;  %v497_v57 = vrot.slane %v495_v55, 1  ;;  %v719_v2 = vsel %vm707_vm0, %v717_v61, %v718_v62  ;;  %v500_v8 = vshrl.u32 %v3909_v63, 16  ;;  %3637 = vmatpush3.bf16.msra.mxu0 %v1334_v6  ;;  %v383_v48 = vld [vmem:[%s3842_s23 + $0xb8] sm:$0x3]  ;;  %v384_v61 = vld [vmem:[%s3842_s23 + $0xc0] sm:$0xff]  ;;  %v385_v62 = vld [vmem:[%s3842_s23 + $0xc8] sm:$0xff] }
  0x20   : > { %v493_v56 = vor.u32 %v492_v54, %v488_v53  ;;  %v504_v9 = vrot.slane %v502_v5, 1  ;;  %v507_v10 = vshll.u32 %v423_v4, 16  ;;  %v3928_v16 = vpack.c.bf16 %v376_v13, %v375_v11  ;;  %v387_v13 = vld [vmem:[%s3842_s23 + $0xd8] sm:$0xff] }
  0x21   : > { %871 = vrot.lane.b32.xlu1 %v716_v45, %s3790_s25  ;;  %645 = vrot.lane.b32.xlu0 %v474_v47, %s3792_s29  ;;  %v720_v18 = vrot.slane %v3909_v63, 1  ;;  %v721_v20 = vrot.slane %v423_v4, 1  ;;  %v425_v21 = vpack.c.bf16 %v377_v17, %v377_v17  ;;  %v3954_v34 = vpack.c.bf16 %v379_v31, %v378_v30  ;;  %v386_v4 = vld [vmem:[%s3842_s23 + $0xd0] sm:$0x3] }
  0x22   : > { %v498_v58 = vsel %vm450_vm1, %v493_v56, %v497_v57  ;;  %v505_v14 = vor.u32 %v504_v9, %v500_v8  ;;  %v509_v15 = vrot.slane %v507_v10, 1  ;;  %v514_v22 = vshll.u32 %v3928_v16, 16 }
  0x23   : > { %v722_v23 = vsel %vm707_vm0, %v720_v18, %v721_v20  ;;  %v512_v24 = vshrl.u32 %v3928_v16, 16  ;;  %v519_v26 = vshll.u32 %v425_v21, 16  ;;  %v723_v32 = vrot.slane %v3928_v16, 1 }
  0x24   : > { %v510_v19 = vsel %vm450_vm1, %v505_v14, %v509_v15  ;;  %v516_v25 = vrot.slane %v514_v22, 1  ;;  %v724_v33 = vrot.slane %v425_v21, 1  ;;  %v427_v37 = vpack.c.bf16 %v380_v35, %v380_v35  ;;  %v388_v14 = vld [vmem:[%s3842_s23 + $0xe0] sm:$0xff] }
  0x25   : > { %835 = vrot.lane.b32.xlu1 %v486_v52, %s3793_s7  ;;  %833 = vrot.lane.b32.xlu0 %v474_v47, %s3793_s7  ;;  %v521_v28 = vrot.slane %v519_v26, 1  ;;  %v526_v38 = vshll.u32 %v3954_v34, 16  ;;  %v524_v39 = vshrl.u32 %v3954_v34, 16  ;;  %v3968_v47 = vpack.c.bf16 %v382_v44, %v381_v43 }
  0x26   : > { %v517_v27 = vor.u32 %v516_v25, %v512_v24  ;;  %v725_v36 = vsel %vm707_vm0, %v723_v32, %v724_v33  ;;  %v531_v42 = vshll.u32 %v427_v37, 16  ;;  %v726_v49 = vrot.slane %v3954_v34, 1 }
  0x27   : > { %v528_v41 = vrot.slane %v526_v38, 1  ;;  %v727_v51 = vrot.slane %v427_v37, 1  ;;  %v538_v53 = vshll.u32 %v3968_v47, 16  ;;  %v536_v55 = vshrl.u32 %v3968_v47, 16  ;;  %v390_v37 = vld [vmem:[%s3842_s23 + $0xf0] sm:$0xff]  ;;  %v391_v38 = vld [vmem:[%s3842_s23 + $0xf8] sm:$0xff] }
  0x28   : > { %v522_v29 = vsel %vm450_vm1, %v517_v27, %v521_v28  ;;  %v533_v46 = vrot.slane %v531_v42, 1  ;;  %v729_v0 = vrot.slane %v3968_v47, 1  ;;  %v431_v6 = vpack.c.bf16 %v386_v4, %v386_v4 }
  0x29   : > { %904 = vrot.lane.b32.xlu1 %v3878_v40, %s3794_s8  ;;  %902 = vrot.lane.b32.xlu0 %v3847_v3, %s3794_s8  ;;  %v728_v54 = vsel %vm707_vm0, %v726_v49, %v727_v51  ;;  %v540_v56 = vrot.slane %v538_v53, 1  ;;  %v4008_v18 = vpack.c.bf16 %v388_v14, %v387_v13  ;;  %v4034_v42 = vpack.c.bf16 %v391_v38, %v390_v37 }
  0x2a   : > { %v555_v11 = vshll.u32 %v431_v6, 16  ;;  %vm292_vm2 = vsmask.f32 7938 }
  0x2b   : > { %v562_v24 = vshll.u32 %v4008_v18, 16  ;;  %v560_v26 = vshrl.u32 %v4008_v18, 16  ;;  %v574_v49 = vshll.u32 %v4034_v42, 16  ;;  %vm4293_vm14 = vmand %vm229_vm13, %vm292_vm2 }
  0x2c   : > { %v557_v17 = vrot.slane %v555_v11, 1 }
  0x2d   : > { %948 = vrot.lane.b32.xlu1 %v498_v58, %s3795_s9  ;;  %946 = vrot.lane.b32.xlu0 %v486_v52, %s3795_s9  ;;  %v564_v27 = vrot.slane %v562_v24, 1  ;;  %v576_v53 = vrot.slane %v574_v49, 1 }
  0x2f   : > { %v565_v30 = vor.u32 %v564_v27, %v560_v26 }
  0x31   : > { %647 = vrot.lane.b32.xlu1 %v486_v52, %s3792_s29  ;;  %982 = vrot.lane.b32.xlu0 %v716_v45, %s3796_s12  ;;  %v429_v52 = vpack.c.bf16 %v383_v48, %v383_v48 }
  0x33   : > { %v543_v57 = vshll.u32 %v429_v52, 16  ;;  %v730_v1 = vrot.slane %v429_v52, 1  ;;  %v572_v52 = vshrl.u32 %v4034_v42, 16 }
  0x35   : > { %649 = vrot.lane.b32.xlu1 %v498_v58, %s3792_s29  ;;  %984 = vrot.lane.b32.xlu0 %v719_v2, %s3796_s12  ;;  %v545_v59 = vrot.slane %v543_v57, 1  ;;  %v731_v5 = vsel %vm707_vm0, %v729_v0, %v730_v1 }
  0x39   : > { %762 = vrot.lane.b32.xlu1 %v719_v2, %s3791_s26  ;;  %760 = vrot.lane.b32.xlu0 %v716_v45, %s3791_s26  ;;  %v529_v45 = vor.u32 %v528_v41, %v524_v39  ;;  %v735_v39 = vrot.slane %v4008_v18, 1 }
  0x3b   : > { %v534_v50 = vsel %vm450_vm1, %v529_v45, %v533_v46  ;;  %v392_v45 = vld [vmem:[%s3842_s23 + $0x100] sm:$0x3] }
  0x3c   : > { %v435_v48 = vpack.c.bf16 %v392_v45, %v392_v45  ;;  %v396_v45 = vld [vmem:[%s3842_s23 + $0x120] sm:$0xff] }
  0x3d   : > { %795 = vrot.lane.b32.xlu1 %v3909_v63, %s3789_s24  ;;  %793 = vrot.lane.b32.xlu0 %v3878_v40, %s3789_s24 }
  0x41   : > { %839 = vrot.lane.b32.xlu1 %v510_v19, %s3793_s7  ;;  %837 = vrot.lane.b32.xlu0 %v498_v58, %s3793_s7  ;;  %v541_v58 = vor.u32 %v540_v56, %v536_v55 }
  0x43   : > { %v546_v60 = vsel %vm450_vm1, %v541_v58, %v545_v59  ;;  %v393_v58 = vld [vmem:[%s3842_s23 + $0x108] sm:$0xff]  ;;  %v394_v59 = vld [vmem:[%s3842_s23 + $0x110] sm:$0xff] }
  0x44   : > { %v4053_v1 = vpack.c.bf16 %v394_v59, %v393_v58 }
  0x45   : > { %875 = vrot.lane.b32.xlu1 %v722_v23, %s3790_s25  ;;  %873 = vrot.lane.b32.xlu0 %v719_v2, %s3790_s25  ;;  %v3994_v2 = vpack.c.bf16 %v385_v62, %v384_v61  ;;  %v577_v62 = vor.u32 %v576_v53, %v572_v52  ;;  %v398_v53 = vld [vmem:[%s3842_s23 + $0x130] sm:$0x3] }
  0x46   : > { %v586_v14 = vshll.u32 %v4053_v1, 16 }
  0x47   : > { %v550_v8 = vshll.u32 %v3994_v2, 16  ;;  %v548_v9 = vshrl.u32 %v3994_v2, 16  ;;  %v732_v22 = vrot.slane %v3994_v2, 1 }
  0x49   : > { %908 = vrot.lane.b32.xlu1 %v3928_v16, %s3794_s8  ;;  %906 = vrot.lane.b32.xlu0 %v3909_v63, %s3794_s8  ;;  %v552_v10 = vrot.slane %v550_v8, 1 }
  0x4b   : > { %v553_v15 = vor.u32 %v552_v10, %v548_v9  ;;  %v739_v9 = vrot.slane %v435_v48, 1 }
  0x4d   : > { %952 = vrot.lane.b32.xlu1 %v522_v29, %s3795_s9  ;;  %950 = vrot.lane.b32.xlu0 %v510_v19, %s3795_s9  ;;  %v558_v21 = vsel %vm450_vm1, %v553_v15, %v557_v17 }
  0x51   : > { %651 = vrot.lane.b32.xlu1 %v510_v19, %s3792_s29  ;;  %986 = vrot.lane.b32.xlu0 %v722_v23, %s3796_s12  ;;  %v389_v19 = vld [vmem:[%s3842_s23 + $0xe8] sm:$0x3] }
  0x52   : > { %v433_v20 = vpack.c.bf16 %v389_v19, %v389_v19 }
  0x54   : > { %v567_v28 = vshll.u32 %v433_v20, 16  ;;  %v736_v41 = vrot.slane %v433_v20, 1 }
  0x55   : > { %653 = vrot.lane.b32.xlu1 %v522_v29, %s3792_s29  ;;  %988 = vrot.lane.b32.xlu0 %v725_v36, %s3796_s12 }
  0x56   : > { %v569_v31 = vrot.slane %v567_v28, 1  ;;  %v737_v46 = vsel %vm707_vm0, %v735_v39, %v736_v41 }
  0x58   : > { %v570_v33 = vsel %vm450_vm1, %v565_v30, %v569_v31 }
  0x59   : > { %766 = vrot.lane.b32.xlu1 %v725_v36, %s3791_s26  ;;  %764 = vrot.lane.b32.xlu0 %v722_v23, %s3791_s26  ;;  %v733_v23 = vrot.slane %v431_v6, 1 }
  0x5b   : > { %v734_v25 = vsel %vm707_vm0, %v732_v22, %v733_v23  ;;  %v584_v22 = vshrl.u32 %v4053_v1, 16 }
  0x5d   : > { %799 = vrot.lane.b32.xlu1 %v3954_v34, %s3789_s24  ;;  %797 = vrot.lane.b32.xlu0 %v3928_v16, %s3789_s24 }
  0x61   : > { %843 = vrot.lane.b32.xlu1 %v534_v50, %s3793_s7  ;;  %841 = vrot.lane.b32.xlu0 %v522_v29, %s3793_s7 }
  0x65   : > { %879 = vrot.lane.b32.xlu1 %v728_v54, %s3790_s25  ;;  %877 = vrot.lane.b32.xlu0 %v725_v36, %s3790_s25 }
  0x69   : > { %912 = vrot.lane.b32.xlu1 %v3968_v47, %s3794_s8  ;;  %910 = vrot.lane.b32.xlu0 %v3954_v34, %s3794_s8 }
  0x6d   : > { %956 = vrot.lane.b32.xlu1 %v546_v60, %s3795_s9  ;;  %954 = vrot.lane.b32.xlu0 %v534_v50, %s3795_s9 }
  0x71   : > { %655 = vrot.lane.b32.xlu1 %v534_v50, %s3792_s29  ;;  %990 = vrot.lane.b32.xlu0 %v728_v54, %s3796_s12 }
  0x75   : > { %657 = vrot.lane.b32.xlu1 %v546_v60, %s3792_s29  ;;  %992 = vrot.lane.b32.xlu0 %v731_v5, %s3796_s12 }
  0x79   : > { %770 = vrot.lane.b32.xlu1 %v731_v5, %s3791_s26  ;;  %768 = vrot.lane.b32.xlu0 %v728_v54, %s3791_s26  ;;  %v579_v54 = vshll.u32 %v435_v48, 16  ;;  %v741_v48 = vrot.slane %v4053_v1, 1 }
  0x7b   : > { %v581_v0 = vrot.slane %v579_v54, 1 }
  0x7d   : > { %803 = vrot.lane.b32.xlu1 %v3994_v2, %s3789_s24  ;;  %801 = vrot.lane.b32.xlu0 %v3968_v47, %s3789_s24  ;;  %v582_v11 = vsel %vm450_vm1, %v577_v62, %v581_v0 }
  0x81   : > { %847 = vrot.lane.b32.xlu1 %v558_v21, %s3793_s7  ;;  %845 = vrot.lane.b32.xlu0 %v546_v60, %s3793_s7 }
  0x85   : > { %883 = vrot.lane.b32.xlu1 %v734_v25, %s3790_s25  ;;  %881 = vrot.lane.b32.xlu0 %v731_v5, %s3790_s25  ;;  %v395_v5 = vld [vmem:[%s3842_s23 + $0x118] sm:$0x3] }
  0x86   : > { %v792_v29 = vpop.permute.xlu1 %791  ;;  %v437_v13 = vpack.c.bf16 %v395_v5, %v395_v5 }
  0x87   : > { %v790_v32 = vpop.permute.xlu0 %789 }
  0x88   : > { %v591_v26 = vshll.u32 %v437_v13, 16  ;;  %v742_v49 = vrot.slane %v437_v13, 1 }
  0x89   : > { %916 = vrot.lane.b32.xlu1 %v4008_v18, %s3794_s8  ;;  %914 = vrot.lane.b32.xlu0 %v3994_v2, %s3794_s8 }
  0x8a   : > { %v743_v54 = vsel %vm707_vm0, %v741_v48, %v742_v49 }
  0x8b   : > { %v870_v35 = vpop.permute.xlu0 %869  ;;  %v757_v36 = vpop.permute.xlu1 %756 }
  0x8d   : > { %960 = vrot.lane.b32.xlu1 %v570_v33, %s3795_s9  ;;  %958 = vrot.lane.b32.xlu0 %v558_v21, %s3795_s9 }
  0x8f   : > { %v759_v43 = vpop.permute.xlu1 %758  ;;  %v644_v44 = vpop.permute.xlu0 %643 }
  0x90   : > { %v1016_v55 = vsel %vm1014_vm3, %v3859_v12, %v644_v44 }
  0x91   : > { %659 = vrot.lane.b32.xlu1 %v558_v21, %s3792_s29  ;;  %994 = vrot.lane.b32.xlu0 %v734_v25, %s3796_s12  ;;  %v1049_v61 = vsel %vm1047_vm4, %v1016_v55, %v757_v36  ;;  %v439_v55 = vpack.c.bf16 %v398_v53, %v398_v53  ;;  %v402_v53 = vld [vmem:[%s3842_s23 + $0x150] sm:$0xff] }
  0x92   : > { %v1082_v8 = vsel %vm1080_vm5, %v1049_v61, %v790_v32 }
  0x93   : > { %v872_v50 = vpop.permute.xlu1 %871  ;;  %v646_v51 = vpop.permute.xlu0 %645  ;;  %v603_v61 = vshll.u32 %v439_v55, 16 }
  0x94   : > { %v1018_v60 = vsel %vm1014_vm3, %v3852_v7, %v646_v51  ;;  %v738_v7 = vrot.slane %v4034_v42, 1 }
  0x95   : > { %661 = vrot.lane.b32.xlu1 %v570_v33, %s3792_s29  ;;  %996 = vrot.lane.b32.xlu0 %v737_v46, %s3796_s12  ;;  %v1051_v6 = vsel %vm1047_vm4, %v1018_v60, %v759_v43 }
  0x96   : > { %v1084_v15 = vsel %vm1080_vm5, %v1051_v6, %v792_v29  ;;  %v740_v21 = vsel %vm707_vm0, %v738_v7, %v739_v9  ;;  %v605_v6 = vrot.slane %v603_v61, 1 }
  0x97   : > { %v836_v56 = vpop.permute.xlu1 %835  ;;  %v834_v57 = vpop.permute.xlu0 %833 }
  0x98   : > { %v1115_v10 = vsel %vm1113_vm6, %v1082_v8, %v834_v57  ;;  %v1117_v23 = vsel %vm1113_vm6, %v1084_v15, %v836_v56 }
  0x99   : > { %774 = vrot.lane.b32.xlu1 %v737_v46, %s3791_s26  ;;  %772 = vrot.lane.b32.xlu0 %v734_v25, %s3791_s26  ;;  %v1148_v20 = vsel %vm1146_vm7, %v1115_v10, %v870_v35  ;;  %v588_v25 = vrot.slane %v586_v14, 1  ;;  %v1150_v31 = vsel %vm1146_vm7, %v1117_v23, %v872_v50  ;;  %v593_v35 = vrot.slane %v591_v26, 1  ;;  %v401_v10 = vld [vmem:[%s3842_s23 + $0x148] sm:$0x3] }
  0x9a   : > { %v745_v14 = vrot.slane %v439_v55, 1 }
  0x9b   : > { %v905_v12 = vpop.permute.xlu1 %904  ;;  %v903_v4 = vpop.permute.xlu0 %902 }
  0x9c   : > { %v1181_v24 = vsel %vm1179_vm8, %v1148_v20, %v903_v4  ;;  %v1183_v32 = vsel %vm1179_vm8, %v1150_v31, %v905_v12  ;;  %v399_v12 = vld [vmem:[%s3842_s23 + $0x138] sm:$0xff]  ;;  %v400_v4 = vld [vmem:[%s3842_s23 + $0x140] sm:$0xff] }
  0x9d   : > { %807 = vrot.lane.b32.xlu1 %v4034_v42, %s3789_s24  ;;  %805 = vrot.lane.b32.xlu0 %v4008_v18, %s3789_s24  ;;  %v4108_v8 = vpack.c.bf16 %v400_v4, %v399_v12 }
  0x9f   : > { %v949_v17 = vpop.permute.xlu1 %948  ;;  %v947_v19 = vpop.permute.xlu0 %946  ;;  %v610_v20 = vshll.u32 %v4108_v8, 16  ;;  %v747_v55 = vrot.slane %v4108_v8, 1 }
  0xa0   : > { %v1214_v27 = vsel %vm5349_vm9, %v1181_v24, %v947_v19  ;;  %v1216_v36 = vsel %vm5349_vm9, %v1183_v32, %v949_v17  ;;  %v441_v19 = vpack.c.bf16 %v401_v10, %v401_v10 }
  0xa1   : > { %851 = vrot.lane.b32.xlu1 %v582_v11, %s3793_s7  ;;  %849 = vrot.lane.b32.xlu0 %v570_v33, %s3793_s7  ;;  %v589_v33 = vor.u32 %v588_v25, %v584_v22 }
  0xa3   : > { %v648_v28 = vpop.permute.xlu1 %647  ;;  %v983_v29 = vpop.permute.xlu0 %982  ;;  %v594_v41 = vsel %vm450_vm1, %v589_v33, %v593_v35 }
  0xa4   : > { %v1247_v30 = vsel %vm5350_vm10, %v1214_v27, %v983_v29  ;;  %v608_v27 = vshrl.u32 %v4108_v8, 16  ;;  %v612_v29 = vrot.slane %v610_v20, 1 }
  0xa5   : > { %887 = vrot.lane.b32.xlu1 %v740_v21, %s3790_s25  ;;  %885 = vrot.lane.b32.xlu0 %v737_v46, %s3790_s25  ;;  %v397_v46 = vld [vmem:[%s3842_s23 + $0x128] sm:$0xff] }
  0xa6   : > { %3638 = vmatprep.mubr.msk.bf16.mxu0 %vm1299_vm11, %v1247_v30  ;;  %v4094_v50 = vpack.c.bf16 %v397_v46, %v396_v45  ;;  %v615_v30 = vshll.u32 %v441_v19, 16 }
  0xa7   : > { %v650_v37 = vpop.permute.xlu1 %649  ;;  %v985_v38 = vpop.permute.xlu0 %984 }
  0xa8   : > { %v1249_v39 = vsel %vm5350_vm10, %v1216_v36, %v985_v38  ;;  %v598_v56 = vshll.u32 %v4094_v50, 16  ;;  %v596_v59 = vshrl.u32 %v4094_v50, 16  ;;  %v744_v13 = vrot.slane %v4094_v50, 1 }
  0xa9   : > { %920 = vrot.lane.b32.xlu1 %v4053_v1, %s3794_s8  ;;  %918 = vrot.lane.b32.xlu0 %v4034_v42, %s3794_s8 }
  0xaa   : > { %3639 = vmatmul.mubr.msk.bf16.vlgmr.msra.gmra.mrb[0].mxu0 %vm1299_vm11, %v1249_v39  ;;  %v600_v60 = vrot.slane %v598_v56, 1  ;;  %v746_v26 = vsel %vm707_vm0, %v744_v13, %v745_v14  ;;  %v748_v56 = vrot.slane %v441_v19, 1  ;;  %v406_v13 = vld [vmem:[%s3842_s23 + $0x170] sm:$0xff] }
  0xab   : > { %v763_v43 = vpop.permute.xlu1 %762  ;;  %v761_v44 = vpop.permute.xlu0 %760 }
  0xac   : > { %v601_v5 = vor.u32 %v600_v60, %v596_v59  ;;  %v404_v60 = vld [vmem:[%s3842_s23 + $0x160] sm:$0x3]  ;;  %v749_v61 = vsel %vm707_vm0, %v747_v55, %v748_v56 }
  0xad   : > { %964 = vrot.lane.b32.xlu1 %v594_v41, %s3795_s9  ;;  %962 = vrot.lane.b32.xlu0 %v582_v11, %s3795_s9 }
  0xae   : > { %v606_v17 = vsel %vm450_vm1, %v601_v5, %v605_v6 }
  0xaf   : > { %v796_v51 = vpop.permute.xlu1 %795  ;;  %v794_v52 = vpop.permute.xlu0 %793 }
  0xb1   : > { %663 = vrot.lane.b32.xlu1 %v582_v11, %s3792_s29  ;;  %998 = vrot.lane.b32.xlu0 %v740_v21, %s3796_s12  ;;  %v1020_v11 = vsel %vm1014_vm3, %v3847_v3, %v648_v28 }
  0xb2   : > { %v1053_v15 = vsel %vm1047_vm4, %v1020_v11, %v761_v44  ;;  %v405_v11 = vld [vmem:[%s3842_s23 + $0x168] sm:$0xff] }
  0xb3   : > { %v840_v57 = vpop.permute.xlu1 %839  ;;  %v838_v58 = vpop.permute.xlu0 %837  ;;  %v1086_v3 = vsel %vm1080_vm5, %v1053_v15, %v794_v52 }
  0xb4   : > { %v1119_v24 = vsel %vm1113_vm6, %v1086_v3, %v838_v58 }
  0xb5   : > { %665 = vrot.lane.b32.xlu1 %v594_v41, %s3792_s29  ;;  %1000 = vrot.lane.b32.xlu0 %v743_v54, %s3796_s12 }
  0xb7   : > { %v876_v62 = vpop.permute.xlu1 %875  ;;  %v874_v0 = vpop.permute.xlu0 %873 }
  0xb8   : > { %v1152_v25 = vsel %vm1146_vm7, %v1119_v24, %v874_v0 }
  0xb9   : > { %778 = vrot.lane.b32.xlu1 %v743_v54, %s3791_s26  ;;  %776 = vrot.lane.b32.xlu0 %v740_v21, %s3791_s26  ;;  %v1022_v21 = vsel %vm1014_vm3, %v3878_v40, %v650_v37 }
  0xba   : > { %v1055_v28 = vsel %vm1047_vm4, %v1022_v21, %v763_v43  ;;  %v617_v43 = vrot.slane %v615_v30, 1  ;;  %v407_v21 = vld [vmem:[%s3842_s23 + $0x178] sm:$0x3] }
  0xbb   : > { %v909_v7 = vpop.permute.xlu1 %908  ;;  %v907_v9 = vpop.permute.xlu0 %906  ;;  %v1088_v31 = vsel %vm1080_vm5, %v1055_v28, %v796_v51 }
  0xbc   : > { %v1185_v40 = vsel %vm1179_vm8, %v1152_v25, %v907_v9  ;;  %v1121_v36 = vsel %vm1113_vm6, %v1088_v31, %v840_v57 }
  0xbd   : > { %811 = vrot.lane.b32.xlu1 %v4094_v50, %s3789_s24  ;;  %809 = vrot.lane.b32.xlu0 %v4053_v1, %s3789_s24  ;;  %v1154_v38 = vsel %vm1146_vm7, %v1121_v36, %v876_v62  ;;  %v443_v62 = vpack.c.bf16 %v404_v60, %v404_v60  ;;  %v408_v60 = vld [vmem:[%s3842_s23 + $0x180] sm:$0xff] }
  0xbe   : > { %v1187_v39 = vsel %vm1179_vm8, %v1154_v38, %v909_v7 }
  0xbf   : > { %v953_v22 = vpop.permute.xlu1 %952  ;;  %v951_v23 = vpop.permute.xlu0 %950  ;;  %v627_v7 = vshll.u32 %v443_v62, 16 }
  0xc0   : > { %v1218_v32 = vsel %vm5349_vm9, %v1185_v40, %v951_v23  ;;  %v1220_v44 = vsel %vm5349_vm9, %v1187_v39, %v953_v22  ;;  %v751_v23 = vrot.slane %v443_v62, 1 }
  0xc1   : > { %855 = vrot.lane.b32.xlu1 %v606_v17, %s3793_s7  ;;  %853 = vrot.lane.b32.xlu0 %v594_v41, %s3793_s7  ;;  %v613_v41 = vor.u32 %v612_v29, %v608_v27  ;;  %v629_v15 = vrot.slane %v627_v7, 1 }
  0xc3   : > { %v652_v33 = vpop.permute.xlu1 %651  ;;  %v987_v35 = vpop.permute.xlu0 %986  ;;  %v618_v49 = vsel %vm450_vm1, %v613_v41, %v617_v43 }
  0xc4   : > { %v1251_v37 = vsel %vm5350_vm10, %v1218_v32, %v987_v35  ;;  %v1024_v3 = vsel %vm1014_vm3, %v3909_v63, %v652_v33 }
  0xc5   : > { %891 = vrot.lane.b32.xlu1 %v746_v26, %s3790_s25  ;;  %889 = vrot.lane.b32.xlu0 %v743_v54, %s3790_s25  ;;  %v403_v54 = vld [vmem:[%s3842_s23 + $0x158] sm:$0xff] }
  0xc6   : > { %3642 = vmatprep.mubr.msk.bf16.mxu0 %vm1299_vm11, %v1251_v37  ;;  %v4154_v57 = vpack.c.bf16 %v403_v54, %v402_v53 }
  0xc7   : > { %v654_v45 = vpop.permute.xlu1 %653  ;;  %v989_v46 = vpop.permute.xlu0 %988 }
  0xc8   : > { %v1253_v48 = vsel %vm5350_vm10, %v1220_v44, %v989_v46  ;;  %v622_v0 = vshll.u32 %v4154_v57, 16  ;;  %v620_v5 = vshrl.u32 %v4154_v57, 16  ;;  %v750_v22 = vrot.slane %v4154_v57, 1 }
  0xc9   : > { %924 = vrot.lane.b32.xlu1 %v4108_v8, %s3794_s8  ;;  %922 = vrot.lane.b32.xlu0 %v4094_v50, %s3794_s8  ;;  %v1026_v28 = vsel %vm1014_vm3, %v3928_v16, %v654_v45 }
  0xca   : > { %3643 = vmatmul.mubr.msk.bf16.gmra.mrb[4].mxu0 %vm1299_vm11, %v1253_v48  ;;  %v624_v6 = vrot.slane %v622_v0, 1  ;;  %v4189_v32 = vsel %vm707_vm0, %v750_v22, %v751_v23 }
  0xcb   : > { %v767_v51 = vpop.permute.xlu1 %766  ;;  %v765_v52 = vpop.permute.xlu0 %764 }
  0xcc   : > { %v625_v14 = vor.u32 %v624_v6, %v620_v5  ;;  %v1057_v24 = vsel %vm1047_vm4, %v1024_v3, %v765_v52  ;;  %v1059_v35 = vsel %vm1047_vm4, %v1026_v28, %v767_v51  ;;  %v410_v6 = vld [vmem:[%s3842_s23 + $0x190] sm:$0x3]  ;;  %v412_v3 = vld [vmem:[%s3842_s23 + $0x1a0] sm:$0xff] }
  0xcd   : > { %968 = vrot.lane.b32.xlu1 %v618_v49, %s3795_s9  ;;  %966 = vrot.lane.b32.xlu0 %v606_v17, %s3795_s9 }
  0xce   : > { %v630_v25 = vsel %vm450_vm1, %v625_v14, %v629_v15  ;;  %v3797_v14 = vmov 0  }
  0xcf   : > { %v800_v58 = vpop.permute.xlu1 %799  ;;  %v798_v59 = vpop.permute.xlu0 %797  ;;  %227 = vst.msk [vmem:[#allocation2] sm:$0xf] %vm226_vm12, %v3797_v14  ;;  %228 = vst.msk [vmem:[#allocation2 + $0x4] sm:$0xf] %vm226_vm12, %v3797_v14 }
  0xd0   : > { %v1090_v63 = vsel %vm1080_vm5, %v1057_v24, %v798_v59  ;;  %v1092_v38 = vsel %vm1080_vm5, %v1059_v35, %v800_v58  ;;  %232 = vst.msk [vmem:[#allocation2 + $0xcc] sm:$0xf] %vm226_vm12, %v3797_v14  ;;  %233 = vst.msk [vmem:[#allocation2 + $0xd0] sm:$0xf] %vm226_vm12, %v3797_v14 }
  0xd1   : > { %667 = vrot.lane.b32.xlu1 %v606_v17, %s3792_s29  ;;  %1002 = vrot.lane.b32.xlu0 %v746_v26, %s3796_s12  ;;  %v4168_v17 = vpack.c.bf16 %v406_v13, %v405_v11  ;;  %230 = vst.msk [vmem:[#allocation2 + $0x8] sm:$0x1] %vm229_vm13, %v3797_v14  ;;  %234 = vst.msk [vmem:[#allocation2 + $0xd4] sm:$0x1] %vm229_vm13, %v3797_v14  ;;  %vm1625_vm13 = vsmask.f32 4368 }
  0xd3   : > { %v844_v12 = vpop.permute.xlu1 %843  ;;  %v842_v4 = vpop.permute.xlu0 %841  ;;  %v634_v27 = vshll.u32 %v4168_v17, 16  ;;  %v632_v33 = vshrl.u32 %v4168_v17, 16  ;;  %v753_v62 = vrot.slane %v4168_v17, 1 }
  0xd4   : > { %v1123_v30 = vsel %vm1113_vm6, %v1090_v63, %v842_v4  ;;  %v1125_v44 = vsel %vm1113_vm6, %v1092_v38, %v844_v12 }
  0xd5   : > { %669 = vrot.lane.b32.xlu1 %v618_v49, %s3792_s29  ;;  %1004 = vrot.lane.b32.xlu0 %v749_v61, %s3796_s12  ;;  %v636_v36 = vrot.slane %v634_v27, 1 }
  0xd7   : > { %v880_v9 = vpop.permute.xlu1 %879  ;;  %v878_v10 = vpop.permute.xlu0 %877 }
  0xd8   : > { %v1156_v31 = vsel %vm1146_vm7, %v1123_v30, %v878_v10  ;;  %v1158_v46 = vsel %vm1146_vm7, %v1125_v44, %v880_v9  ;;  %v4237_v9 = vpack.c.bf16 %v410_v6, %v410_v6  ;;  %v244_v30 = vld [vmem:[#allocation2 + $0x18] sm:$0x1] }
  0xd9   : > { %782 = vrot.lane.b32.xlu1 %v749_v61, %s3791_s26  ;;  %780 = vrot.lane.b32.xlu0 %v746_v26, %s3791_s26  ;;  %v445_v26 = vpack.c.bf16 %v407_v21, %v407_v21  ;;  %v411_v21 = vld [vmem:[%s3842_s23 + $0x198] sm:$0xff]  ;;  %v245_v35 = vsel %vm4269_vm15, 0, %v244_v30 }
  0xda   : > { %v4262_v24 = vpack.c.bf16 %v412_v3, %v411_v21  ;;  %v867_v38 = vrot.slane %v4237_v9, 1  ;;  %246 = vst [vmem:[#allocation2 + $0x18] sm:$0x1] %v245_v35 }
  0xdb   : > { %v913_v19 = vpop.permute.xlu1 %912  ;;  %v911_v20 = vpop.permute.xlu0 %910  ;;  %v639_v37 = vshll.u32 %v445_v26, 16  ;;  %v754_v0 = vrot.slane %v445_v26, 1 }
  0xdc   : > { %v1189_v16 = vsel %vm1179_vm8, %v1156_v31, %v911_v20  ;;  %v1191_v48 = vsel %vm1179_vm8, %v1158_v46, %v913_v19  ;;  %v829_v20 = vshll.u32 %v4237_v9, 16  ;;  %v238_v31 = vld [vmem:[#allocation2] sm:$0x1] }
  0xdd   : > { %815 = vrot.lane.b32.xlu1 %v4154_v57, %s3789_s24  ;;  %813 = vrot.lane.b32.xlu0 %v4108_v8, %s3789_s24  ;;  %v641_v51 = vrot.slane %v639_v37, 1  ;;  %v4235_v7 = vsel %vm707_vm0, %v753_v62, %v754_v0  ;;  %v300_v62 = vld [vmem:[#allocation2 + $0x20] sm:$0x1] }
  0xde   : > { %v831_v27 = vrot.slane %v829_v20, 1  ;;  %v301_v9 = vsel %vm4293_vm14, 0, %v300_v62 }
  0xdf   : > { %v957_v40 = vpop.permute.xlu1 %956  ;;  %v955_v29 = vpop.permute.xlu0 %954  ;;  %302 = vst [vmem:[#allocation2 + $0x20] sm:$0x1] %v301_v9 }
  0xe0   : > { %v1222_v39 = vsel %vm5349_vm9, %v1189_v16, %v955_v29  ;;  %v1224_v52 = vsel %vm5349_vm9, %v1191_v48, %v957_v40  ;;  %v239_v16 = vsel %vm4269_vm15, 0, %v238_v31 }
  0xe1   : > { %859 = vrot.lane.b32.xlu1 %v630_v25, %s3793_s7  ;;  %857 = vrot.lane.b32.xlu0 %v618_v49, %s3793_s7  ;;  %v637_v49 = vor.u32 %v636_v36, %v632_v33  ;;  %v937_v33 = vshll.u32 %v4262_v24, 16  ;;  %240 = vst [vmem:[#allocation2] sm:$0x1] %v239_v16 }
  0xe3   : > { %v4196_v41 = vpop.permute.xlu1 %655  ;;  %v991_v43 = vpop.permute.xlu0 %990  ;;  %v4216_v56 = vsel %vm450_vm1, %v637_v49, %v641_v51 }
  0xe4   : > { %v1255_v45 = vsel %vm5350_vm10, %v1222_v39, %v991_v43 }
  0xe5   : > { %895 = vrot.lane.b32.xlu1 %v4189_v32, %s3790_s25  ;;  %893 = vrot.lane.b32.xlu0 %v749_v61, %s3790_s25  ;;  %v409_v61 = vld [vmem:[%s3842_s23 + $0x188] sm:$0xff] }
  0xe6   : > { %3646 = vmatprep.mubr.msk.bf16.mxu0 %vm1299_vm11, %v1255_v45  ;;  %v4226_v12 = vpack.c.bf16 %v409_v61, %v408_v60 }
  0xe7   : > { %v4207_v53 = vpop.permute.xlu1 %657  ;;  %v993_v54 = vpop.permute.xlu0 %992 }
  0xe8   : > { %v1257_v55 = vsel %vm5350_vm10, %v1224_v52, %v993_v54  ;;  %v824_v10 = vshll.u32 %v4226_v12, 16  ;;  %v822_v15 = vshrl.u32 %v4226_v12, 16  ;;  %v1030_v43 = vsel %vm1014_vm3, %v3968_v47, %v4207_v53  ;;  %v241_v54 = vld [vmem:[#allocation2 + $0xc] sm:$0x1]  ;;  %v3731_v20 = vld [vmem:[#allocation2] sm:$0xff]  }
  0xe9   : > { %928 = vrot.lane.b32.xlu1 %v4168_v17, %s3794_s8  ;;  %926 = vrot.lane.b32.xlu0 %v4154_v57, %s3794_s8  ;;  %v935_v47 = vshrl.u32 %v4262_v24, 16  ;;  %v939_v52 = vrot.slane %v937_v33, 1  ;;  %v242_v61 = vsel %vm4269_vm15, 0, %v241_v54 }
  0xea   : > { %3647 = vmatmul.mubr.msk.bf16.gmra.mrb[8].mxu0 %vm1299_vm11, %v1257_v55  ;;  %v826_v19 = vrot.slane %v824_v10, 1  ;;  %243 = vst [vmem:[#allocation2 + $0xc] sm:$0x1] %v242_v61 }
  0xeb   : > { %v4218_v58 = vpop.permute.xlu1 %770  ;;  %v769_v59 = vpop.permute.xlu0 %768 }
  0xec   : > { %v827_v26 = vor.u32 %v826_v19, %v822_v15  ;;  %v1063_v55 = vsel %vm1047_vm4, %v1030_v43, %v4218_v58  ;;  %v297_v58 = vld [vmem:[#allocation2 + $0x14] sm:$0x1]  ;;  %v940_v15 = vor.u32 %v939_v52, %v935_v47 }
  0xed   : > { %972 = vrot.lane.b32.xlu1 %v4216_v56, %s3795_s9  ;;  %970 = vrot.lane.b32.xlu0 %v630_v25, %s3795_s9  ;;  %v298_v14 = vsel %vm4293_vm14, 0, %v297_v58  ;;  %v306_v58 = vld [vmem:[#allocation2 + $0x38] sm:$0x1] }
  0xee   : > { %v4287_v37 = vsel %vm450_vm1, %v827_v26, %v831_v27  ;;  %299 = vst [vmem:[#allocation2 + $0x14] sm:$0x1] %v298_v14  ;;  %v2247_v26 = vshll.u32 %v3731_v20, 16  ;;  %v979_v27 = vrot.slane %v4262_v24, 1  ;;  %v307_v14 = vsel %vm4293_vm14, 0, %v306_v58 }
  0xef   : > { %v4228_v4 = vpop.permute.xlu1 %803  ;;  %v802_v5 = vpop.permute.xlu0 %801  ;;  %308 = vst [vmem:[#allocation2 + $0x38] sm:$0x1] %v307_v14 }
  0xf0   : > { %v2249_v30 = vrot.slane %v2247_v26, 1 }
  0xf1   : > { %671 = vrot.lane.b32.xlu1 %v630_v25, %s3792_s29  ;;  %1006 = vrot.lane.b32.xlu0 %v4189_v32, %s3796_s12  ;;  %v413_v25 = vld [vmem:[%s3842_s23 + $0x1a8] sm:$0x3] }
  0xf2   : > { %v4265_v40 = vpack.c.bf16 %v413_v25, %v413_v25 }
  0xf3   : > { %v4240_v11 = vpop.permute.xlu1 %847  ;;  %v846_v13 = vpop.permute.xlu0 %845 }
  0xf4   : > { %v942_v53 = vshll.u32 %v4265_v40, 16 }
  0xf5   : > { %673 = vrot.lane.b32.xlu1 %v4216_v56, %s3792_s29  ;;  %1008 = vrot.lane.b32.xlu0 %v4235_v7, %s3796_s12 }
  0xf6   : > { %v944_v19 = vrot.slane %v942_v53, 1 }
  0xf7   : > { %v4254_v22 = vpop.permute.xlu1 %883  ;;  %v882_v23 = vpop.permute.xlu0 %881 }
  0xf9   : > { %786 = vrot.lane.b32.xlu1 %v4235_v7, %s3791_s26  ;;  %784 = vrot.lane.b32.xlu0 %v4189_v32, %s3791_s26  ;;  %v1028_v32 = vsel %vm1014_vm3, %v3954_v34, %v4196_v41  ;;  %v866_v34 = vrot.slane %v4226_v12, 1  ;;  %v294_v41 = vld [vmem:[#allocation2 + $0x8] sm:$0x1] }
  0xfa   : > { %v1061_v36 = vsel %vm1047_vm4, %v1028_v32, %v769_v59  ;;  %v295_v48 = vsel %vm4293_vm14, 0, %v294_v41 }
  0xfb   : > { %v917_v28 = vpop.permute.xlu1 %916  ;;  %v915_v63 = vpop.permute.xlu0 %914  ;;  %v1094_v44 = vsel %vm1080_vm5, %v1061_v36, %v802_v5  ;;  %296 = vst [vmem:[#allocation2 + $0x8] sm:$0x1] %v295_v48  ;;  %v868_v60 = vsel %vm707_vm0, %v866_v34, %v867_v38  ;;  %v2468_v34 = vrot.slane %v3731_v20, 1 }
  0xfc   : > { %v1127_v49 = vsel %vm1113_vm6, %v1094_v44, %v846_v13 }
  0xfd   : > { %819 = vrot.lane.b32.xlu1 %v4226_v12, %s3789_s24  ;;  %817 = vrot.lane.b32.xlu0 %v4168_v17, %s3789_s24  ;;  %v1160_v51 = vsel %vm1146_vm7, %v1127_v49, %v882_v23 }
  0xfe   : > { %v1193_v59 = vsel %vm1179_vm8, %v1160_v51, %v915_v63  ;;  %v2245_v63 = vshrl.u32 %v3731_v20, 16 }
  0xff   : > { %v961_v45 = vpop.permute.xlu1 %960  ;;  %v959_v46 = vpop.permute.xlu0 %958 }
 0x100   : > { %v1226_v0 = vsel %vm5349_vm9, %v1193_v59, %v959_v46  ;;  %v2250_v35 = vor.u32 %v2249_v30, %v2245_v63  ;;  %v250_v46 = vld [vmem:[#allocation2 + $0x30] sm:$0x1] }
 0x101   : > { %863 = vrot.lane.b32.xlu1 %v4287_v37, %s3793_s7  ;;  %861 = vrot.lane.b32.xlu0 %v4216_v56, %s3793_s7  ;;  %v1096_v56 = vsel %vm1080_vm5, %v1063_v55, %v4228_v4  ;;  %v251_v51 = vsel %vm4269_vm15, 0, %v250_v46 }
 0x102   : > { %v1129_v10 = vsel %vm1113_vm6, %v1096_v56, %v4240_v11  ;;  %v3732_v25 = vld [vmem:[#allocation2 + $0x8] ss:$0 sps:$4 sm:$0x11]   ;;  %252 = vst [vmem:[#allocation2 + $0x30] sm:$0x1] %v251_v51 }
 0x103   : > { %v660_v5 = vpop.permute.xlu1 %659  ;;  %v995_v6 = vpop.permute.xlu0 %994  ;;  %v1162_v4 = vsel %vm1146_vm7, %v1129_v10, %v4254_v22  ;;  %v2252_v31 = vshll.u32 %v3732_v25, 16  ;;  %v2469_v38 = vrot.slane %v3732_v25, 1 }
 0x104   : > { %v1259_v13 = vsel %vm5350_vm10, %v1226_v0, %v995_v6  ;;  %v1195_v11 = vsel %vm1179_vm8, %v1162_v4, %v917_v28  ;;  %v980_v28 = vrot.slane %v4265_v40, 1  ;;  %v1032_v47 = vsel %vm1014_vm3, %v3994_v2, %v660_v5  ;;  %v247_v0 = vld [vmem:[#allocation2 + $0x24] sm:$0x1]  ;;  %v303_v4 = vld [vmem:[#allocation2 + $0x2c] sm:$0x1] }
 0x105   : > { %899 = vrot.lane.b32.xlu1 %v868_v60, %s3790_s25  ;;  %897 = vrot.lane.b32.xlu0 %v4235_v7, %s3790_s25  ;;  %v1228_v21 = vsel %vm5349_vm9, %v1195_v11, %v961_v45  ;;  %v945_v7 = vsel %vm450_vm1, %v940_v15, %v944_v19  ;;  %v2254_v16 = vrot.slane %v2252_v31, 1  ;;  %v304_v19 = vsel %vm4293_vm14, 0, %v303_v4  ;;  %v256_v31 = vld [vmem:[#allocation2 + $0x48] sm:$0x1] }
 0x106   : > { %3650 = vmatprep.mubr.msk.bf16.mxu0 %vm1299_vm11, %v1259_v13  ;;  %305 = vst [vmem:[#allocation2 + $0x2c] sm:$0x1] %v304_v19 }
 0x107   : > { %v662_v3 = vpop.permute.xlu1 %661  ;;  %v997_v23 = vpop.permute.xlu0 %996  ;;  %v2255_v40 = vsel %vm450_vm1, %v2250_v35, %v2254_v16 }
 0x108   : > { %v1261_v22 = vsel %vm5350_vm10, %v1228_v21, %v997_v23  ;;  %v1034_v53 = vsel %vm1014_vm3, %v4008_v18, %v662_v3  ;;  %v248_v18 = vsel %vm4269_vm15, 0, %v247_v0 }
 0x109   : > { %932 = vrot.lane.b32.xlu1 %v4262_v24, %s3794_s8  ;;  %930 = vrot.lane.b32.xlu0 %v4226_v12, %s3794_s8  ;;  %v981_v12 = vsel %vm707_vm0, %v979_v27, %v980_v28  ;;  %249 = vst [vmem:[#allocation2 + $0x24] sm:$0x1] %v248_v18 }
 0x10a   : > { %3651 = vmatmul.mubr.msk.bf16.gmra.mrb[12].mxu0 %vm1299_vm11, %v1261_v22 }
 0x10b   : > { %v775_v32 = vpop.permute.xlu1 %774  ;;  %v773_v33 = vpop.permute.xlu0 %772 }
 0x10c   : > { %v1065_v52 = vsel %vm1047_vm4, %v1032_v47, %v773_v33  ;;  %v1067_v62 = vsel %vm1047_vm4, %v1034_v53, %v775_v32  ;;  %v312_v47 = vld [vmem:[#allocation2 + $0x50] sm:$0x1] }
 0x10d   : > { %976 = vrot.lane.b32.xlu1 %v945_v7, %s3795_s9  ;;  %974 = vrot.lane.b32.xlu0 %v4287_v37, %s3795_s9  ;;  %v2470_v37 = vsel %vm707_vm0, %v2468_v34, %v2469_v38  ;;  %v313_v53 = vsel %vm4293_vm14, 0, %v312_v47 }
 0x10e   : > { %314 = vst [vmem:[#allocation2 + $0x50] sm:$0x1] %v313_v53  ;;  %v4443_v53 = vld [vmem:[%s5343_s2] ss:$0 sm:$0xff] }
 0x10f   : > { %v808_v36 = vpop.permute.xlu1 %807  ;;  %v806_v24 = vpop.permute.xlu0 %805 }
 0x110   : > { %v1098_v54 = vsel %vm1080_vm5, %v1065_v52, %v806_v24  ;;  %v1100_v2 = vsel %vm1080_vm5, %v1067_v62, %v808_v36 }
 0x111   : > { %1012 = vrot.lane.b32.xlu1 %v981_v12, %s3796_s12  ;;  %1010 = vrot.lane.b32.xlu0 %v868_v60, %s3796_s12  ;;  %v257_v12 = vsel %vm4269_vm15, 0, %v256_v31 }
 0x112   : > { %258 = vst [vmem:[#allocation2 + $0x48] sm:$0x1] %v257_v12 }
 0x113   : > { %v852_v41 = vpop.permute.xlu1 %851  ;;  %v850_v43 = vpop.permute.xlu0 %849 }
 0x114   : > { %v1131_v60 = vsel %vm1113_vm6, %v1098_v54, %v850_v43  ;;  %v1133_v10 = vsel %vm1113_vm6, %v1100_v2, %v852_v41  ;;  %v309_v54 = vld [vmem:[#allocation2 + $0x44] sm:$0x1] }
 0x115   : > { %2436 = vrot.lane.b32.xlu0 %v2255_v40, %s3792_s29 }
 0x117   : > { %v888_v44 = vpop.permute.xlu1 %887  ;;  %v886_v45 = vpop.permute.xlu0 %885 }
 0x118   : > { %v1164_v61 = vsel %vm1146_vm7, %v1131_v60, %v886_v45  ;;  %v1166_v15 = vsel %vm1146_vm7, %v1133_v10, %v888_v44 }
 0x119   : > { %2516 = vrot.lane.b32.xlu0 %v2470_v37, %s3791_s26 }
 0x11b   : > { %v921_v48 = vpop.permute.xlu1 %920  ;;  %v919_v49 = vpop.permute.xlu0 %918 }
 0x11c   : > { %v1197_v56 = vsel %vm1179_vm8, %v1164_v61, %v919_v49  ;;  %v1199_v20 = vsel %vm1179_vm8, %v1166_v15, %v921_v48  ;;  %v253_v48 = vld [vmem:[#allocation2 + $0x3c] sm:$0x1] }
 0x11d   : > { %v254_v51 = vsel %vm4269_vm15, 0, %v253_v48 }
 0x11e   : > { %255 = vst [vmem:[#allocation2 + $0x3c] sm:$0x1] %v254_v51 }
 0x11f   : > { %v965_v55 = vpop.permute.xlu1 %964  ;;  %v963_v59 = vpop.permute.xlu0 %962 }
 0x120   : > { %v1230_v5 = vsel %vm5349_vm9, %v1197_v56, %v963_v59  ;;  %v1232_v11 = vsel %vm5349_vm9, %v1199_v20, %v965_v55  ;;  %v310_v59 = vsel %vm4293_vm14, 0, %v309_v54 }
 0x121   : > { %311 = vst [vmem:[#allocation2 + $0x44] sm:$0x1] %v310_v59 }
 0x123   : > { %v664_v6 = vpop.permute.xlu1 %663  ;;  %v999_v9 = vpop.permute.xlu0 %998 }
 0x124   : > { %v1263_v13 = vsel %vm5350_vm10, %v1230_v5, %v999_v9  ;;  %v1036_v35 = vsel %vm1014_vm3, %v4034_v42, %v664_v6 }
 0x125   : > { %3654 = vmatprep.mubr.msk.bf16.mxu0 %vm1299_vm11, %v1263_v13  ;;  %v262_v13 = vld [vmem:[#allocation2 + $0x60] sm:$0x1] }
 0x126   : > { %v263_v15 = vsel %vm4269_vm15, 0, %v262_v13 }
 0x127   : > { %v666_v21 = vpop.permute.xlu1 %665  ;;  %v1001_v3 = vpop.permute.xlu0 %1000  ;;  %264 = vst [vmem:[#allocation2 + $0x60] sm:$0x1] %v263_v15 }
 0x128   : > { %v1265_v23 = vsel %vm5350_vm10, %v1232_v11, %v1001_v3  ;;  %v1038_v36 = vsel %vm1014_vm3, %v4053_v1, %v666_v21 }
 0x129   : > { %3655 = vmatmul.mubr.msk.bf16.gmra.mrb[16].mxu0 %vm1299_vm11, %v1265_v23 }
 0x12b   : > { %v779_v25 = vpop.permute.xlu1 %778  ;;  %v777_v26 = vpop.permute.xlu0 %776 }
 0x12c   : > { %v1069_v16 = vsel %vm1047_vm4, %v1036_v35, %v777_v26  ;;  %v1071_v43 = vsel %vm1047_vm4, %v1038_v36, %v779_v25 }
 0x12f   : > { %v812_v22 = vpop.permute.xlu1 %811  ;;  %v810_v7 = vpop.permute.xlu0 %809 }
 0x130   : > { %v1102_v24 = vsel %vm1080_vm5, %v1069_v16, %v810_v7  ;;  %v1104_v44 = vsel %vm1080_vm5, %v1071_v43, %v812_v22  ;;  %v315_v16 = vld [vmem:[#allocation2 + $0x5c] sm:$0x1] }
 0x133   : > { %v856_v27 = vpop.permute.xlu1 %855  ;;  %v854_v28 = vpop.permute.xlu0 %853 }
 0x134   : > { %v1135_v38 = vsel %vm1113_vm6, %v1102_v24, %v854_v28  ;;  %v1137_v1 = vsel %vm1113_vm6, %v1104_v44, %v856_v27  ;;  %v316_v24 = vsel %vm4293_vm14, 0, %v315_v16 }
 0x135   : > { %317 = vst [vmem:[#allocation2 + $0x5c] sm:$0x1] %v316_v24 }
 0x137   : > { %v892_v63 = vpop.permute.xlu1 %891  ;;  %v890_v30 = vpop.permute.xlu0 %889 }
 0x138   : > { %v1168_v41 = vsel %vm1146_vm7, %v1135_v38, %v890_v30  ;;  %v1170_v52 = vsel %vm1146_vm7, %v1137_v1, %v892_v63  ;;  %v259_v30 = vld [vmem:[#allocation2 + $0x54] sm:$0x1] }
 0x13b   : > { %v925_v32 = vpop.permute.xlu1 %924  ;;  %v923_v33 = vpop.permute.xlu0 %922 }
 0x13c   : > { %v1201_v37 = vsel %vm1179_vm8, %v1168_v41, %v923_v33  ;;  %v1203_v55 = vsel %vm1179_vm8, %v1170_v52, %v925_v32  ;;  %v260_v32 = vsel %vm4269_vm15, 0, %v259_v30  ;;  %v318_v33 = vld [vmem:[#allocation2 + $0x68] sm:$0x1] }
 0x13d   : > { %261 = vst [vmem:[#allocation2 + $0x54] sm:$0x1] %v260_v32  ;;  %v319_v35 = vsel %vm4293_vm14, 0, %v318_v33 }
 0x13e   : > { %320 = vst [vmem:[#allocation2 + $0x68] sm:$0x1] %v319_v35 }
 0x13f   : > { %v969_v40 = vpop.permute.xlu1 %968  ;;  %v967_v34 = vpop.permute.xlu0 %966 }
 0x140   : > { %v1234_v42 = vsel %vm5349_vm9, %v1201_v37, %v967_v34  ;;  %v1236_v60 = vsel %vm5349_vm9, %v1203_v55, %v969_v40 }
 0x143   : > { %v668_v45 = vpop.permute.xlu1 %667  ;;  %v1003_v46 = vpop.permute.xlu0 %1002 }
 0x144   : > { %v1267_v49 = vsel %vm5350_vm10, %v1234_v42, %v1003_v46  ;;  %v1040_v19 = vsel %vm1014_vm3, %v4094_v50, %v668_v45 }
 0x145   : > { %3658 = vmatprep.mubr.msk.bf16.mxu0 %vm1299_vm11, %v1267_v49  ;;  %v268_v49 = vld [vmem:[#allocation2 + $0x78] sm:$0x1] }
 0x146   : > { %v269_v54 = vsel %vm4269_vm15, 0, %v268_v49 }
 0x147   : > { %v670_v61 = vpop.permute.xlu1 %669  ;;  %v1005_v62 = vpop.permute.xlu0 %1004  ;;  %270 = vst [vmem:[#allocation2 + $0x78] sm:$0x1] %v269_v54 }
 0x148   : > { %v1269_v56 = vsel %vm5350_vm10, %v1236_v60, %v1005_v62  ;;  %v1042_v11 = vsel %vm1014_vm3, %v4108_v8, %v670_v61 }
 0x149   : > { %3659 = vmatmul.mubr.msk.bf16.gmra.mrb[20].mxu0 %vm1299_vm11, %v1269_v56 }
 0x14b   : > { %v783_v0 = vpop.permute.xlu1 %782  ;;  %v781_v2 = vpop.permute.xlu0 %780 }
 0x14c   : > { %v1073_v20 = vsel %vm1047_vm4, %v1040_v19, %v781_v2  ;;  %v1075_v22 = vsel %vm1047_vm4, %v1042_v11, %v783_v0 }
 0x14f   : > { %v816_v5 = vpop.permute.xlu1 %815  ;;  %v814_v6 = vpop.permute.xlu0 %813 }
 0x150   : > { %v1106_v21 = vsel %vm1080_vm5, %v1073_v20, %v814_v6  ;;  %v1108_v27 = vsel %vm1080_vm5, %v1075_v22, %v816_v5 }
 0x153   : > { %v860_v9 = vpop.permute.xlu1 %859  ;;  %v858_v18 = vpop.permute.xlu0 %857 }
 0x154   : > { %v1139_v25 = vsel %vm1113_vm6, %v1106_v21, %v858_v18  ;;  %v1141_v8 = vsel %vm1113_vm6, %v1108_v27, %v860_v9 }
 0x157   : > { %v896_v58 = vpop.permute.xlu1 %895  ;;  %v894_v10 = vpop.permute.xlu0 %893 }
 0x158   : > { %v1172_v26 = vsel %vm1146_vm7, %v1139_v25, %v894_v10  ;;  %v1174_v12 = vsel %vm1146_vm7, %v1141_v8, %v896_v58  ;;  %v324_v8 = vld [vmem:[#allocation2 + $0x80] sm:$0x1] }
 0x15b   : > { %v929_v14 = vpop.permute.xlu1 %928  ;;  %v927_v4 = vpop.permute.xlu0 %926 }
 0x15c   : > { %v1205_v7 = vsel %vm1179_vm8, %v1172_v26, %v927_v4  ;;  %v1207_v36 = vsel %vm1179_vm8, %v1174_v12, %v929_v14  ;;  %v321_v12 = vld [vmem:[#allocation2 + $0x74] sm:$0x1] }
 0x15f   : > { %v973_v3 = vpop.permute.xlu1 %972  ;;  %v971_v23 = vpop.permute.xlu0 %970 }
 0x160   : > { %v1238_v50 = vsel %vm5349_vm9, %v1205_v7, %v971_v23  ;;  %v1240_v40 = vsel %vm5349_vm9, %v1207_v36, %v973_v3  ;;  %v265_v7 = vld [vmem:[#allocation2 + $0x6c] sm:$0x1] }
 0x161   : > { %v266_v24 = vsel %vm4269_vm15, 0, %v265_v7 }
 0x162   : > { %267 = vst [vmem:[#allocation2 + $0x6c] sm:$0x1] %v266_v24 }
 0x163   : > { %v672_v28 = vpop.permute.xlu1 %671  ;;  %v1007_v63 = vpop.permute.xlu0 %1006 }
 0x164   : > { %v1271_v31 = vsel %vm5350_vm10, %v1238_v50, %v1007_v63  ;;  %v1044_v59 = vsel %vm1014_vm3, %v4154_v57, %v672_v28 }
 0x165   : > { %3662 = vmatprep.mubr.msk.bf16.mxu0 %vm1299_vm11, %v1271_v31 }
 0x167   : > { %v674_v34 = vpop.permute.xlu1 %673  ;;  %v1009_v38 = vpop.permute.xlu0 %1008 }
 0x168   : > { %v1273_v41 = vsel %vm5350_vm10, %v1240_v40, %v1009_v38  ;;  %v1046_v51 = vsel %vm1014_vm3, %v4168_v17, %v674_v34  ;;  %v1957_v34 = vld [vmem:[#allocation2 + $0x18] sm:$0xf] }
 0x169   : > { %3663 = vmatmul.mubr.msk.bf16.gmra.mrb[24].mxu0 %vm1299_vm11, %v1273_v41 }
 0x16b   : > { %v787_v43 = vpop.permute.xlu1 %786  ;;  %v785_v37 = vpop.permute.xlu0 %784 }
 0x16c   : > { %v1079_v60 = vsel %vm1047_vm4, %v1046_v51, %v787_v43  ;;  %v1077_v62 = vsel %vm1047_vm4, %v1044_v59, %v785_v37  ;;  %v325_v37 = vsel %vm4293_vm14, 0, %v324_v8  ;;  %v1961_v51 = vld [vmem:[#allocation2 + $0x20] sm:$0x1] }
 0x16d   : > { %326 = vst [vmem:[#allocation2 + $0x80] sm:$0x1] %v325_v37 }
 0x16f   : > { %v820_v44 = vpop.permute.xlu1 %819  ;;  %v818_v42 = vpop.permute.xlu0 %817 }
 0x170   : > { %v1112_v56 = vsel %vm1080_vm5, %v1079_v60, %v820_v44  ;;  %v1110_v6 = vsel %vm1080_vm5, %v1077_v62, %v818_v42  ;;  %v1950_v42 = vld [vmem:[#allocation2 + $0xc] sm:$0xf] }
 0x173   : > { %v864_v45 = vpop.permute.xlu1 %863  ;;  %v862_v46 = vpop.permute.xlu0 %861 }
 0x174   : > { %v1145_v9 = vsel %vm1113_vm6, %v1112_v56, %v864_v45  ;;  %v1143_v13 = vsel %vm1113_vm6, %v1110_v6, %v862_v46 }
 0x177   : > { %v900_v48 = vpop.permute.xlu1 %899  ;;  %v898_v1 = vpop.permute.xlu0 %897 }
 0x178   : > { %v1178_v14 = vsel %vm1146_vm7, %v1145_v9, %v900_v48  ;;  %v1176_v19 = vsel %vm1146_vm7, %v1143_v13, %v898_v1  ;;  %v322_v48 = vsel %vm4293_vm14, 0, %v321_v12 }
 0x179   : > { %323 = vst [vmem:[#allocation2 + $0x74] sm:$0x1] %v322_v48  ;;  %v330_v48 = vld [vmem:[#allocation2 + $0x98] sm:$0x1] }
 0x17b   : > { %v933_v47 = vpop.permute.xlu1 %932  ;;  %v931_v52 = vpop.permute.xlu0 %930 }
 0x17c   : > { %v1211_v20 = vsel %vm1179_vm8, %v1178_v14, %v933_v47  ;;  %v1209_v3 = vsel %vm1179_vm8, %v1176_v19, %v931_v52 }
 0x17d   : > { %v3640_v55 = vpop.f32.mrb[0].mxu0 }
 0x17e   : > { %v1379_v61 = vadd.f32 %v3640_v55, %v4443_v53  ;;  %v1370_v17 = vpop.f32.mrb[1].mxu0 }
 0x17f   : > { %v1371_v0 = vadd.f32 %v4443_v53, %v1370_v17  ;;  %v3641_v2 = vpop.f32.mrb[2].mxu0  ;;  %v977_v5 = vpop.permute.xlu1 %976 }
 0x180   : > { %v1499_v18 = vmax.f32 %v1379_v61, 0.0  ;;  %v1382_v57 = vadd.f32 %v3641_v2, %v4443_v53  ;;  %v1373_v58 = vpop.f32.mrb[3].mxu0  ;;  %v975_v10 = vpop.permute.xlu0 %974  ;;  %v1244_v25 = vsel %vm5349_vm9, %v1211_v20, %v977_v5  ;;  %v1954_v61 = vld [vmem:[#allocation2 + $0x14] sm:$0x1] }
 0x181   : > { %v1497_v4 = vmax.f32 %v1371_v0, 0.0  ;;  %v1374_v15 = vadd.f32 %v4443_v53, %v1373_v58  ;;  %v1242_v28 = vsel %vm5349_vm9, %v1209_v3, %v975_v10  ;;  %vm4472_vm9 = vmand %vm226_vm12, %vm292_vm2  ;;  %vm5357_vm2 = vsmask.f32 256 }
 0x182   : > { %v3564_v11 = vpack.c.bf16 %v1499_v18, %v1499_v18  ;;  %v1500_v21 = vmax.f32 %v1382_v57, 0.0 }
 0x183   : > { %v3562_v23 = vpack.c.bf16 %v1497_v4, %v1497_v4  ;;  %v1498_v26 = vmax.f32 %v1374_v15, 0.0  ;;  %v1013_v22 = vpop.permute.xlu1 %1012 }
 0x184   : > { %v1645_v27 = vshrl.u32 %v3564_v11, 16  ;;  %v3565_v50 = vpack.c.bf16 %v1500_v21, %v1500_v21  ;;  %v1277_v63 = vsel %vm5350_vm10, %v1244_v25, %v1013_v22  ;;  %v1011_v30 = vpop.permute.xlu0 %1010  ;;  %v1648_v16 = vshll.u32 %v3564_v11, 16 }
 0x185   : > { %v1628_v31 = vshrl.u32 %v3562_v23, 16  ;;  %v3563_v32 = vpack.c.bf16 %v1498_v26, %v1498_v26  ;;  %v1275_v33 = vsel %vm5350_vm10, %v1242_v28, %v1011_v30  ;;  %v1631_v41 = vshll.u32 %v3562_v23, 16  ;;  %vm4483_vm10 = vmor %vm5357_vm2, %vm1625_vm13  ;;  %v274_v30 = vld [vmem:[#allocation2 + $0x90] sm:$0x1] }
 0x186   : > { %v1647_v35 = vrot.slane %v1645_v27, 7  ;;  %v1653_v36 = vshrl.u32 %v3565_v50, 16  ;;  %3666 = vmatprep.mubr.msk.bf16.mxu0 %vm1299_vm11, %v1275_v33  ;;  %v1656_v46 = vshll.u32 %v3565_v50, 16  ;;  %v275_v33 = vsel %vm4269_vm15, 0, %v274_v30 }
 0x187   : > { %v1630_v38 = vrot.slane %v1628_v31, 7  ;;  %v1636_v43 = vshrl.u32 %v3563_v32, 16  ;;  %3667 = vmatmul.mubr.msk.bf16.gmra.mrb[28].mxu0 %vm1299_vm11, %v1277_v63  ;;  %v1639_v52 = vshll.u32 %v3563_v32, 16  ;;  %276 = vst [vmem:[#allocation2 + $0x90] sm:$0x1] %v275_v33  ;;  %vm5360_vm13 = vcmask 1041408  }
 0x188   : > { %v1650_v44 = vor.u32 %v1648_v16, %v1647_v35  ;;  %v1655_v45 = vrot.slane %v1653_v36, 7  ;;  %v1651_v54 = vrot.slane %v1647_v35, 4  ;;  %vm5361_vm2 = vmmov %vm5360_vm13 }
 0x189   : > { %v1633_v1 = vor.u32 %v1631_v41, %v1630_v38  ;;  %v1638_v47 = vrot.slane %v1636_v43, 7  ;;  %v1634_v17 = vrot.slane %v1630_v38, 4 }
 0x18a   : > { %v1958_v55 = vsel %vm4472_vm9, %v1650_v44, %v1957_v34  ;;  %v1658_v59 = vor.u32 %v1656_v46, %v1655_v45  ;;  %v1660_v60 = vrot.slane %v1655_v45, 4  ;;  %v271_v44 = vld [vmem:[#allocation2 + $0x84] sm:$0x1] }
 0x18b   : > { %1959 = vst [vmem:[#allocation2 + $0x18] sm:$0xf] %v1958_v55  ;;  %v1951_v62 = vsel %vm4472_vm9, %v1633_v1, %v1950_v42  ;;  %v1641_v56 = vor.u32 %v1639_v52, %v1638_v47  ;;  %v1643_v0 = vrot.slane %v1638_v47, 4  ;;  %v272_v46 = vsel %vm4269_vm15, 0, %v271_v44 }
 0x18c   : > { %1952 = vst [vmem:[#allocation2 + $0xc] sm:$0xf] %v1951_v62  ;;  %v1659_v2 = vsel %vm4483_vm10, %v1651_v54, %v1658_v59  ;;  %v1962_v5 = vsel %vm4269_vm15, %v1660_v60, %v1961_v51  ;;  %273 = vst [vmem:[#allocation2 + $0x84] sm:$0x1] %v272_v46  ;;  %v331_v52 = vsel %vm4293_vm14, 0, %v330_v48 }
 0x18d   : > { %1960 = vst.msk [vmem:[#allocation2 + $0x1c] sm:$0xf] %vm226_vm12, %v1659_v2  ;;  %1963 = vst [vmem:[#allocation2 + $0x20] sm:$0x1] %v1962_v5  ;;  %v1642_v6 = vsel %vm4483_vm10, %v1634_v17, %v1641_v56  ;;  %v1955_v9 = vsel %vm4269_vm15, %v1643_v0, %v1954_v61  ;;  %v327_v54 = vld [vmem:[#allocation2 + $0x8c] sm:$0x1] }
 0x18e   : > { %1953 = vst.msk [vmem:[#allocation2 + $0x10] sm:$0xf] %vm226_vm12, %v1642_v6  ;;  %1956 = vst [vmem:[#allocation2 + $0x14] sm:$0x1] %v1955_v9  ;;  %v328_v61 = vsel %vm4293_vm14, 0, %v327_v54 }
 0x18f   : > { %332 = vst [vmem:[#allocation2 + $0x98] sm:$0x1] %v331_v52  ;;  %v1971_v17 = vld [vmem:[#allocation2 + $0x30] sm:$0xf]  ;;  %329 = vst [vmem:[#allocation2 + $0x8c] sm:$0x1] %v328_v61 }
 0x190   : > { %v1964_v6 = vld [vmem:[#allocation2 + $0x24] sm:$0xf]  ;;  %v3758_v48 = vld [vmem:[%s5344_s3 + $0x10] ss:$0 sps:$4 sm:$0x33]  }
 0x191   : > { %v3096_v61 = vsel %vm5361_vm2, %v3758_v48, 0 }
 0x194   : > { %v3733_v18 = vld [vmem:[#allocation2 + $0x18] sm:$0xff]   ;;  %v3734_v57 = vld [vmem:[#allocation2 + $0x20] ss:$0 sps:$4 sm:$0x11]  }
 0x195   : > { %v3735_v58 = vld [vmem:[#allocation2 + $0xc] sm:$0xff]   ;;  %2555 = vrot.lane.b32.xlu1 %v3733_v18, %s3789_s24  ;;  %2672 = vrot.lane.b32.xlu0 %v3733_v18, %s3794_s8  ;;  %v2474_v10 = vrot.slane %v3733_v18, 1  ;;  %v3736_v13 = vld [vmem:[#allocation2 + $0x14] ss:$0 sps:$4 sm:$0x11]   ;;  %v2475_v14 = vrot.slane %v3734_v57, 1 }
 0x196   : > { %v2271_v4 = vshll.u32 %v3733_v18, 16  ;;  %v2471_v19 = vrot.slane %v3735_v58, 1  ;;  %v2472_v20 = vrot.slane %v3736_v13, 1  ;;  %v2269_v21 = vshrl.u32 %v3733_v18, 16 }
 0x197   : > { %v2476_v15 = vsel %vm707_vm0, %v2474_v10, %v2475_v14  ;;  %v2276_v3 = vshll.u32 %v3734_v57, 16  ;;  %v2259_v22 = vshll.u32 %v3735_v58, 16  ;;  %v2257_v43 = vshrl.u32 %v3735_v58, 16 }
 0x198   : > { %v2273_v11 = vrot.slane %v2271_v4, 1  ;;  %v2473_v25 = vsel %vm707_vm0, %v2471_v19, %v2472_v20  ;;  %v2264_v37 = vshll.u32 %v3736_v13, 16 }
 0x199   : > { %2637 = vrot.lane.b32.xlu1 %v2476_v15, %s3790_s25  ;;  %2553 = vrot.lane.b32.xlu0 %v3735_v58, %s3789_s24  ;;  %v2278_v63 = vrot.slane %v2276_v3, 1  ;;  %v2261_v36 = vrot.slane %v2259_v22, 1  ;;  %v1975_v58 = vld [vmem:[#allocation2 + $0x38] sm:$0x1] }
 0x19a   : > { %v2274_v26 = vor.u32 %v2273_v11, %v2269_v21  ;;  %v2266_v2 = vrot.slane %v2264_v37, 1  ;;  %v1968_v11 = vld [vmem:[#allocation2 + $0x2c] sm:$0x1] }
 0x19b   : > { %v2262_v47 = vor.u32 %v2261_v36, %v2257_v43 }
 0x19c   : > { %v2279_v16 = vsel %vm450_vm1, %v2274_v26, %v2278_v63  ;;  %v3753_v63 = vld [vmem:[%s5344_s3] sm:$0xff]  }
 0x19d   : > { %v3644_v23 = vpop.f32.mrb[4].mxu0  ;;  %2518 = vrot.lane.b32.xlu1 %v2473_v25, %s3791_s26  ;;  %2754 = vrot.lane.b32.xlu0 %v2476_v15, %s3796_s12  ;;  %v2267_v14 = vsel %vm450_vm1, %v2262_v47, %v2266_v2 }
 0x19e   : > { %v1395_v7 = vadd.f32 %v3644_v23, %v4443_v53  ;;  %v1386_v27 = vpop.f32.mrb[5].mxu0  ;;  %3670 = vmatprep.subr.bf16.mxu1 %v3753_v63 }
 0x19f   : > { %v1387_v50 = vadd.f32 %v4443_v53, %v1386_v27  ;;  %v3645_v28 = vpop.f32.mrb[6].mxu0  ;;  %3671 = vmatpush3.bf16.msra.mxu1 %v3753_v63 }
 0x1a0   : > { %v1503_v8 = vmax.f32 %v1395_v7, 0.0  ;;  %v1398_v31 = vadd.f32 %v3645_v28, %v4443_v53  ;;  %v1389_v32 = vpop.f32.mrb[7].mxu0 }
 0x1a1   : > { %v1501_v12 = vmax.f32 %v1387_v50, 0.0  ;;  %v1390_v35 = vadd.f32 %v4443_v53, %v1389_v32  ;;  %2602 = vrot.lane.b32.xlu1 %v2279_v16, %s3793_s7  ;;  %2520 = vrot.lane.b32.xlu0 %v2476_v15, %s3791_s26 }
 0x1a2   : > { %v3568_v24 = vpack.c.bf16 %v1503_v8, %v1503_v8  ;;  %v1504_v34 = vmax.f32 %v1398_v31, 0.0 }
 0x1a3   : > { %v3566_v38 = vpack.c.bf16 %v1501_v12, %v1501_v12  ;;  %v1502_v41 = vmax.f32 %v1390_v35, 0.0  ;;  %v3756_v12 = vld [vmem:[%s5344_s3 + $0x8] sm:$0xff]  }
 0x1a4   : > { %v1679_v42 = vshrl.u32 %v3568_v24, 16  ;;  %v3569_v45 = vpack.c.bf16 %v1504_v34, %v1504_v34  ;;  %v1682_v59 = vshll.u32 %v3568_v24, 16  ;;  %3672 = vmatprep.subr.bf16.mxu1 %v3756_v12 }
 0x1a5   : > { %v1662_v1 = vshrl.u32 %v3566_v38, 16  ;;  %v3567_v51 = vpack.c.bf16 %v1502_v41, %v1502_v41  ;;  %2440 = vrot.lane.b32.xlu1 %v2279_v16, %s3792_s29  ;;  %2635 = vrot.lane.b32.xlu0 %v2473_v25, %s3790_s25  ;;  %v1665_v56 = vshll.u32 %v3566_v38, 16  ;;  %v280_v38 = vld [vmem:[#allocation2 + $0xa8] sm:$0x1] }
 0x1a6   : > { %v1681_v55 = vrot.slane %v1679_v42, 7  ;;  %v1687_v60 = vshrl.u32 %v3569_v45, 16  ;;  %v1690_v18 = vshll.u32 %v3569_v45, 16  ;;  %v281_v37 = vsel %vm4269_vm15, 0, %v280_v38  ;;  %3673 = vmatpush3.bf16.msra.mxu1 %v3756_v12  ;;  %v1982_v38 = vld [vmem:[#allocation2 + $0x44] sm:$0x1] }
 0x1a7   : > { %v1664_v62 = vrot.slane %v1662_v1, 7  ;;  %v1670_v0 = vshrl.u32 %v3567_v51, 16  ;;  %v1673_v13 = vshll.u32 %v3567_v51, 16  ;;  %282 = vst [vmem:[#allocation2 + $0xa8] sm:$0x1] %v281_v37  ;;  %3709 = vmatprep.subr.msk.bf16.mxu1 %vm5360_vm13, %v3758_v48  ;;  %vm5363_vm13 = vcmask 261120  }
 0x1a8   : > { %v1684_v5 = vor.u32 %v1682_v59, %v1681_v55  ;;  %v1689_v9 = vrot.slane %v1687_v60, 7  ;;  %v1685_v4 = vrot.slane %v1681_v55, 4 }
 0x1a9   : > { %v1667_v57 = vor.u32 %v1665_v56, %v1664_v62  ;;  %v1672_v10 = vrot.slane %v1670_v0, 7  ;;  %2438 = vrot.lane.b32.xlu1 %v2267_v14, %s3792_s29  ;;  %2719 = vrot.lane.b32.xlu0 %v2279_v16, %s3795_s9  ;;  %v1668_v21 = vrot.slane %v1664_v62, 4 }
 0x1aa   : > { %v1972_v15 = vsel %vm4472_vm9, %v1684_v5, %v1971_v17  ;;  %v1692_v19 = vor.u32 %v1690_v18, %v1689_v9  ;;  %v1694_v20 = vrot.slane %v1689_v9, 4  ;;  %3675 = vmatpush3.bf16.msra.mxu1 %v3096_v61 }
 0x1ab   : > { %1973 = vst [vmem:[#allocation2 + $0x30] sm:$0xf] %v1972_v15  ;;  %v1965_v3 = vsel %vm4472_vm9, %v1667_v57, %v1964_v6  ;;  %v1675_v23 = vor.u32 %v1673_v13, %v1672_v10  ;;  %v1677_v25 = vrot.slane %v1672_v10, 4  ;;  %v277_v6 = vld [vmem:[#allocation2 + $0x9c] sm:$0x1] }
 0x1ac   : > { %1966 = vst [vmem:[#allocation2 + $0x24] sm:$0xf] %v1965_v3  ;;  %v1693_v26 = vsel %vm4483_vm10, %v1685_v4, %v1692_v19  ;;  %v1976_v22 = vsel %vm4269_vm15, %v1694_v20, %v1975_v58  ;;  %v278_v58 = vsel %vm4269_vm15, 0, %v277_v6  ;;  %v336_v10 = vld [vmem:[#allocation2 + $0xb0] sm:$0x1] }
 0x1ad   : > { %1974 = vst.msk [vmem:[#allocation2 + $0x34] sm:$0xf] %vm226_vm12, %v1693_v26  ;;  %1977 = vst [vmem:[#allocation2 + $0x38] sm:$0x1] %v1976_v22  ;;  %v1676_v7 = vsel %vm4483_vm10, %v1668_v21, %v1675_v23  ;;  %v1969_v27 = vsel %vm4269_vm15, %v1677_v25, %v1968_v11  ;;  %2600 = vrot.lane.b32.xlu0 %v2267_v14, %s3793_s7  ;;  %v337_v15 = vsel %vm4293_vm14, 0, %v336_v10 }
 0x1ae   : > { %1967 = vst.msk [vmem:[#allocation2 + $0x28] sm:$0xf] %vm226_vm12, %v1676_v7  ;;  %1970 = vst [vmem:[#allocation2 + $0x2c] sm:$0x1] %v1969_v27  ;;  %v333_v19 = vld [vmem:[#allocation2 + $0xa4] sm:$0x1] }
 0x1af   : > { %279 = vst [vmem:[#allocation2 + $0x9c] sm:$0x1] %v278_v58  ;;  %338 = vst [vmem:[#allocation2 + $0xb0] sm:$0x1] %v337_v15  ;;  %v334_v3 = vsel %vm4293_vm14, 0, %v333_v19 }
 0x1b0   : > { %v1985_v23 = vld [vmem:[#allocation2 + $0x48] sm:$0xf]  ;;  %335 = vst [vmem:[#allocation2 + $0xa4] sm:$0x1] %v334_v3 }
 0x1b4   : > { %v3737_v50 = vld [vmem:[#allocation2 + $0x30] sm:$0xff]   ;;  %v3739_v28 = vld [vmem:[#allocation2 + $0x38] ss:$0 sps:$4 sm:$0x11]  }
 0x1b5   : > { %2559 = vrot.lane.b32.xlu1 %v3737_v50, %s3789_s24  ;;  %2676 = vrot.lane.b32.xlu0 %v3737_v50, %s3794_s8  ;;  %v4549_v30 = vld [vmem:[#allocation2 + $0x24] sm:$0xff]   ;;  %v4551_v8 = vld [vmem:[#allocation2 + $0x2c] ss:$0 sps:$4 sm:$0x11]   ;;  %v2480_v31 = vrot.slane %v3737_v50, 1  ;;  %v2481_v32 = vrot.slane %v3739_v28, 1 }
 0x1b6   : > { %v2295_v33 = vshll.u32 %v3737_v50, 16  ;;  %v2477_v35 = vrot.slane %v4549_v30, 1  ;;  %v2478_v16 = vrot.slane %v4551_v8, 1  ;;  %v2293_v45 = vshrl.u32 %v3737_v50, 16  ;;  %v1978_v50 = vld [vmem:[#allocation2 + $0x3c] sm:$0xf] }
 0x1b7   : > { %v2482_v24 = vsel %vm707_vm0, %v2480_v31, %v2481_v32  ;;  %v2300_v46 = vshll.u32 %v3739_v28, 16  ;;  %v2283_v54 = vshll.u32 %v4549_v30, 16  ;;  %v2288_v5 = vshll.u32 %v4551_v8, 16  ;;  %v1989_v32 = vld [vmem:[#allocation2 + $0x50] sm:$0x1] }
 0x1b8   : > { %v2297_v34 = vrot.slane %v2295_v33, 1  ;;  %v2479_v52 = vsel %vm707_vm0, %v2477_v35, %v2478_v16  ;;  %v2281_v7 = vshrl.u32 %v4549_v30, 16 }
 0x1b9   : > { %2674 = vrot.lane.b32.xlu1 %v4549_v30, %s3794_s8  ;;  %2557 = vrot.lane.b32.xlu0 %v4549_v30, %s3789_s24  ;;  %v2302_v2 = vrot.slane %v2300_v46, 1  ;;  %v2285_v57 = vrot.slane %v2283_v54, 1  ;;  %v2290_v8 = vrot.slane %v2288_v5, 1 }
 0x1ba   : > { %v2298_v60 = vor.u32 %v2297_v34, %v2293_v45 }
 0x1bb   : > { %v2286_v35 = vor.u32 %v2285_v57, %v2281_v7 }
 0x1bc   : > { %v2303_v4 = vsel %vm450_vm1, %v2298_v60, %v2302_v2  ;;  %v286_v60 = vld [vmem:[#allocation2 + $0xc0] sm:$0x1] }
 0x1bd   : > { %v3648_v36 = vpop.f32.mrb[8].mxu0  ;;  %2641 = vrot.lane.b32.xlu1 %v2482_v24, %s3790_s25  ;;  %2758 = vrot.lane.b32.xlu0 %v2482_v24, %s3796_s12  ;;  %v2291_v48 = vsel %vm450_vm1, %v2286_v35, %v2290_v8  ;;  %v287_v61 = vsel %vm4269_vm15, 0, %v286_v60 }
 0x1be   : > { %v1411_v41 = vadd.f32 %v3648_v36, %v4443_v53  ;;  %v1402_v43 = vpop.f32.mrb[9].mxu0  ;;  %288 = vst [vmem:[#allocation2 + $0xc0] sm:$0x1] %v287_v61 }
 0x1bf   : > { %v1403_v44 = vadd.f32 %v4443_v53, %v1402_v43  ;;  %v3649_v42 = vpop.f32.mrb[10].mxu0 }
 0x1c0   : > { %v1507_v1 = vmax.f32 %v1411_v41, 0.0  ;;  %v1414_v51 = vadd.f32 %v3649_v42, %v4443_v53  ;;  %v1405_v47 = vpop.f32.mrb[11].mxu0 }
 0x1c1   : > { %v1505_v55 = vmax.f32 %v1403_v44, 0.0  ;;  %v1406_v59 = vadd.f32 %v4443_v53, %v1405_v47  ;;  %2522 = vrot.lane.b32.xlu1 %v2479_v52, %s3791_s26  ;;  %2524 = vrot.lane.b32.xlu0 %v2482_v24, %s3791_s26 }
 0x1c2   : > { %v3572_v17 = vpack.c.bf16 %v1507_v1, %v1507_v1  ;;  %v1508_v62 = vmax.f32 %v1414_v51, 0.0 }
 0x1c3   : > { %v3570_v56 = vpack.c.bf16 %v1505_v55, %v1505_v55  ;;  %v1506_v0 = vmax.f32 %v1406_v59, 0.0 }
 0x1c4   : > { %v1713_v9 = vshrl.u32 %v3572_v17, 16  ;;  %v3573_v18 = vpack.c.bf16 %v1508_v62, %v1508_v62  ;;  %v1716_v11 = vshll.u32 %v3572_v17, 16 }
 0x1c5   : > { %v1696_v13 = vshrl.u32 %v3570_v56, 16  ;;  %v3571_v14 = vpack.c.bf16 %v1506_v0, %v1506_v0  ;;  %2606 = vrot.lane.b32.xlu1 %v2303_v4, %s3793_s7  ;;  %2756 = vrot.lane.b32.xlu0 %v2479_v52, %s3796_s12  ;;  %v1699_v26 = vshll.u32 %v3570_v56, 16 }
 0x1c6   : > { %v1715_v20 = vrot.slane %v1713_v9, 7  ;;  %v1721_v21 = vshrl.u32 %v3573_v18, 16  ;;  %v1724_v63 = vshll.u32 %v3573_v18, 16 }
 0x1c7   : > { %v1698_v25 = vrot.slane %v1696_v13, 7  ;;  %v1704_v22 = vshrl.u32 %v3571_v14, 16  ;;  %v1707_v12 = vshll.u32 %v3571_v14, 16 }
 0x1c8   : > { %v1718_v27 = vor.u32 %v1716_v11, %v1715_v20  ;;  %v1723_v28 = vrot.slane %v1721_v21, 7  ;;  %v1719_v16 = vrot.slane %v1715_v20, 4  ;;  %v283_v21 = vld [vmem:[#allocation2 + $0xb4] sm:$0x1] }
 0x1c9   : > { %v1701_v31 = vor.u32 %v1699_v26, %v1698_v25  ;;  %v1706_v33 = vrot.slane %v1704_v22, 7  ;;  %2444 = vrot.lane.b32.xlu1 %v2303_v4, %s3792_s29  ;;  %2639 = vrot.lane.b32.xlu0 %v2479_v52, %s3790_s25  ;;  %v1702_v30 = vrot.slane %v1698_v25, 4  ;;  %v284_v25 = vsel %vm4269_vm15, 0, %v283_v21  ;;  %v342_v26 = vld [vmem:[#allocation2 + $0xc8] sm:$0x1] }
 0x1ca   : > { %v1986_v36 = vsel %vm4472_vm9, %v1718_v27, %v1985_v23  ;;  %v1726_v24 = vor.u32 %v1724_v63, %v1723_v28  ;;  %v1728_v34 = vrot.slane %v1723_v28, 4  ;;  %285 = vst [vmem:[#allocation2 + $0xb4] sm:$0x1] %v284_v25  ;;  %v339_v28 = vld [vmem:[#allocation2 + $0xbc] sm:$0x1] }
 0x1cb   : > { %1987 = vst [vmem:[#allocation2 + $0x48] sm:$0xf] %v1986_v36  ;;  %v1979_v41 = vsel %vm4472_vm9, %v1701_v31, %v1978_v50  ;;  %v1709_v43 = vor.u32 %v1707_v12, %v1706_v33  ;;  %v1711_v37 = vrot.slane %v1706_v33, 4  ;;  %v343_v50 = vsel %vm4293_vm14, 0, %v342_v26 }
 0x1cc   : > { %1980 = vst [vmem:[#allocation2 + $0x3c] sm:$0xf] %v1979_v41  ;;  %v1727_v44 = vsel %vm4483_vm10, %v1719_v16, %v1726_v24  ;;  %v1990_v42 = vsel %vm4269_vm15, %v1728_v34, %v1989_v32  ;;  %344 = vst [vmem:[#allocation2 + $0xc8] sm:$0x1] %v343_v50  ;;  %v340_v32 = vsel %vm4293_vm14, 0, %v339_v28 }
 0x1cd   : > { %1988 = vst.msk [vmem:[#allocation2 + $0x4c] sm:$0xf] %vm226_vm12, %v1727_v44  ;;  %1991 = vst [vmem:[#allocation2 + $0x50] sm:$0x1] %v1990_v42  ;;  %v1710_v45 = vsel %vm4483_vm10, %v1702_v30, %v1709_v43  ;;  %v1983_v46 = vsel %vm4269_vm15, %v1711_v37, %v1982_v38  ;;  %2721 = vrot.lane.b32.xlu1 %v2291_v48, %s3795_s9  ;;  %2723 = vrot.lane.b32.xlu0 %v2303_v4, %s3795_s9  ;;  %v1999_v38 = vld [vmem:[#allocation2 + $0x60] sm:$0xf] }
 0x1ce   : > { %1981 = vst.msk [vmem:[#allocation2 + $0x40] sm:$0xf] %vm226_vm12, %v1710_v45  ;;  %1984 = vst [vmem:[#allocation2 + $0x44] sm:$0x1] %v1983_v46  ;;  %v1992_v42 = vld [vmem:[#allocation2 + $0x54] sm:$0xf] }
 0x1cf   : > { %341 = vst [vmem:[#allocation2 + $0xbc] sm:$0x1] %v340_v32 }
 0x1d1   : > { %2442 = vrot.lane.b32.xlu1 %v2291_v48, %s3792_s29  ;;  %2604 = vrot.lane.b32.xlu0 %v2291_v48, %s3793_s7 }
 0x1d4   : > { %v3741_v1 = vld [vmem:[#allocation2 + $0x48] sm:$0xff]   ;;  %v3743_v51 = vld [vmem:[#allocation2 + $0x50] ss:$0 sps:$4 sm:$0x11]  }
 0x1d5   : > { %2563 = vrot.lane.b32.xlu1 %v3741_v1, %s3789_s24  ;;  %2680 = vrot.lane.b32.xlu0 %v3741_v1, %s3794_s8  ;;  %v4614_v47 = vld [vmem:[#allocation2 + $0x3c] sm:$0xff]   ;;  %v4616_v52 = vld [vmem:[#allocation2 + $0x44] ss:$0 sps:$4 sm:$0x11]   ;;  %v2486_v54 = vrot.slane %v3741_v1, 1  ;;  %v2487_v55 = vrot.slane %v3743_v51, 1 }
 0x1d6   : > { %v2319_v59 = vshll.u32 %v3741_v1, 16  ;;  %v2483_v56 = vrot.slane %v4614_v47, 1  ;;  %v2484_v0 = vrot.slane %v4616_v52, 1  ;;  %v2317_v57 = vshrl.u32 %v3741_v1, 16 }
 0x1d7   : > { %v2488_v62 = vsel %vm707_vm0, %v2486_v54, %v2487_v55  ;;  %v2324_v58 = vshll.u32 %v3743_v51, 16  ;;  %v2307_v4 = vshll.u32 %v4614_v47, 16  ;;  %v2312_v31 = vshll.u32 %v4616_v52, 16  ;;  %v2003_v51 = vld [vmem:[#allocation2 + $0x68] sm:$0x1] }
 0x1d8   : > { %v2321_v2 = vrot.slane %v2319_v59, 1  ;;  %v2485_v20 = vsel %vm707_vm0, %v2483_v56, %v2484_v0  ;;  %v2305_v37 = vshrl.u32 %v4614_v47, 16 }
 0x1d9   : > { %2678 = vrot.lane.b32.xlu1 %v4614_v47, %s3794_s8  ;;  %2561 = vrot.lane.b32.xlu0 %v4614_v47, %s3789_s24  ;;  %v2326_v27 = vrot.slane %v2324_v58, 1  ;;  %v2309_v16 = vrot.slane %v2307_v4, 1  ;;  %v2314_v48 = vrot.slane %v2312_v31, 1 }
 0x1da   : > { %v2322_v11 = vor.u32 %v2321_v2, %v2317_v57 }
 0x1db   : > { %v2310_v55 = vor.u32 %v2309_v16, %v2305_v37 }
 0x1dc   : > { %v2327_v35 = vsel %vm450_vm1, %v2322_v11, %v2326_v27  ;;  %v4679_v11 = vpop.permute.xlu0 %2436 }
 0x1dd   : > { %v3652_v17 = vpop.f32.mrb[12].mxu0  ;;  %2645 = vrot.lane.b32.xlu1 %v2488_v62, %s3790_s25  ;;  %2762 = vrot.lane.b32.xlu0 %v2488_v62, %s3796_s12  ;;  %v2315_v57 = vsel %vm450_vm1, %v2310_v55, %v2314_v48 }
 0x1de   : > { %v1427_v5 = vadd.f32 %v3652_v17, %v4443_v53  ;;  %v1418_v6 = vpop.f32.mrb[13].mxu0 }
 0x1df   : > { %v1419_v9 = vadd.f32 %v4443_v53, %v1418_v6  ;;  %v3653_v18 = vpop.f32.mrb[14].mxu0 }
 0x1e0   : > { %v1511_v10 = vmax.f32 %v1427_v5, 0.0  ;;  %v1430_v13 = vadd.f32 %v3653_v18, %v4443_v53  ;;  %v1421_v14 = vpop.f32.mrb[15].mxu0 }
 0x1e1   : > { %v1509_v15 = vmax.f32 %v1419_v9, 0.0  ;;  %v1422_v19 = vadd.f32 %v4443_v53, %v1421_v14  ;;  %2526 = vrot.lane.b32.xlu1 %v2485_v20, %s3791_s26  ;;  %2528 = vrot.lane.b32.xlu0 %v2488_v62, %s3791_s26  ;;  %v1996_v62 = vld [vmem:[#allocation2 + $0x5c] sm:$0x1] }
 0x1e2   : > { %v3576_v3 = vpack.c.bf16 %v1511_v10, %v1511_v10  ;;  %v1512_v23 = vmax.f32 %v1430_v13, 0.0 }
 0x1e3   : > { %v3574_v22 = vpack.c.bf16 %v1509_v15, %v1509_v15  ;;  %v1510_v7 = vmax.f32 %v1422_v19, 0.0 }
 0x1e4   : > { %v1747_v63 = vshrl.u32 %v3576_v3, 16  ;;  %v3577_v8 = vpack.c.bf16 %v1512_v23, %v1512_v23  ;;  %v1750_v24 = vshll.u32 %v3576_v3, 16 }
 0x1e5   : > { %v1730_v33 = vshrl.u32 %v3574_v22, 16  ;;  %v3575_v12 = vpack.c.bf16 %v1510_v7, %v1510_v7  ;;  %2610 = vrot.lane.b32.xlu1 %v2327_v35, %s3793_s7  ;;  %2760 = vrot.lane.b32.xlu0 %v2485_v20, %s3796_s12  ;;  %v1733_v41 = vshll.u32 %v3574_v22, 16 }
 0x1e6   : > { %v1749_v36 = vrot.slane %v1747_v63, 7  ;;  %v1755_v34 = vshrl.u32 %v3577_v8, 16  ;;  %v1758_v46 = vshll.u32 %v3577_v8, 16 }
 0x1e7   : > { %v1732_v30 = vrot.slane %v1730_v33, 7  ;;  %v1738_v43 = vshrl.u32 %v3575_v12, 16  ;;  %v1741_v54 = vshll.u32 %v3575_v12, 16 }
 0x1e8   : > { %v1752_v44 = vor.u32 %v1750_v24, %v1749_v36  ;;  %v1757_v45 = vrot.slane %v1755_v34, 7  ;;  %v1753_v59 = vrot.slane %v1749_v36, 4 }
 0x1e9   : > { %v1735_v1 = vor.u32 %v1733_v41, %v1732_v30  ;;  %v1740_v52 = vrot.slane %v1738_v43, 7  ;;  %2448 = vrot.lane.b32.xlu1 %v2327_v35, %s3792_s29  ;;  %2643 = vrot.lane.b32.xlu0 %v2485_v20, %s3790_s25  ;;  %v1736_v47 = vrot.slane %v1732_v30, 4  ;;  %v4694_v30 = vpop.permute.xlu0 %2516 }
 0x1ea   : > { %v2000_v60 = vsel %vm4472_vm9, %v1752_v44, %v1999_v38  ;;  %v1760_v61 = vor.u32 %v1758_v46, %v1757_v45  ;;  %v1762_v17 = vrot.slane %v1757_v45, 4 }
 0x1eb   : > { %2001 = vst [vmem:[#allocation2 + $0x60] sm:$0xf] %v2000_v60  ;;  %v1993_v56 = vsel %vm4472_vm9, %v1735_v1, %v1992_v42  ;;  %v1743_v0 = vor.u32 %v1741_v54, %v1740_v52  ;;  %v1745_v2 = vrot.slane %v1740_v52, 4 }
 0x1ec   : > { %1994 = vst [vmem:[#allocation2 + $0x54] sm:$0xf] %v1993_v56  ;;  %v1761_v5 = vsel %vm4483_vm10, %v1753_v59, %v1760_v61  ;;  %v2004_v6 = vsel %vm4269_vm15, %v1762_v17, %v2003_v51  ;;  %v2013_v51 = vld [vmem:[#allocation2 + $0x78] sm:$0xf]  ;;  %v2006_v61 = vld [vmem:[#allocation2 + $0x6c] sm:$0xf] }
 0x1ed   : > { %2002 = vst.msk [vmem:[#allocation2 + $0x64] sm:$0xf] %vm226_vm12, %v1761_v5  ;;  %2005 = vst [vmem:[#allocation2 + $0x68] sm:$0x1] %v2004_v6  ;;  %v1744_v9 = vsel %vm4483_vm10, %v1736_v47, %v1743_v0  ;;  %v1997_v18 = vsel %vm4269_vm15, %v1745_v2, %v1996_v62  ;;  %2725 = vrot.lane.b32.xlu1 %v2315_v57, %s3795_s9  ;;  %2727 = vrot.lane.b32.xlu0 %v2327_v35, %s3795_s9  ;;  %v2017_v0 = vld [vmem:[#allocation2 + $0x80] sm:$0x1] }
 0x1ee   : > { %1995 = vst.msk [vmem:[#allocation2 + $0x58] sm:$0xf] %vm226_vm12, %v1744_v9  ;;  %1998 = vst [vmem:[#allocation2 + $0x5c] sm:$0x1] %v1997_v18 }
 0x1f1   : > { %2446 = vrot.lane.b32.xlu1 %v2315_v57, %s3792_s29  ;;  %2608 = vrot.lane.b32.xlu0 %v2315_v57, %s3793_s7 }
 0x1f4   : > { %v3745_v58 = vld [vmem:[#allocation2 + $0x60] sm:$0xff]   ;;  %v3747_v10 = vld [vmem:[#allocation2 + $0x68] ss:$0 sps:$4 sm:$0x11]  }
 0x1f5   : > { %2567 = vrot.lane.b32.xlu1 %v3745_v58, %s3789_s24  ;;  %2684 = vrot.lane.b32.xlu0 %v3745_v58, %s3794_s8  ;;  %v4671_v13 = vld [vmem:[#allocation2 + $0x54] sm:$0xff]   ;;  %v2492_v14 = vrot.slane %v3745_v58, 1  ;;  %v2493_v4 = vrot.slane %v3747_v10, 1  ;;  %v4673_v15 = vld [vmem:[#allocation2 + $0x5c] ss:$0 sps:$4 sm:$0x11]  }
 0x1f6   : > { %v2343_v19 = vshll.u32 %v3745_v58, 16  ;;  %v2489_v21 = vrot.slane %v4671_v13, 1  ;;  %v2490_v26 = vrot.slane %v4673_v15, 1  ;;  %v2341_v8 = vshrl.u32 %v3745_v58, 16 }
 0x1f7   : > { %v2494_v25 = vsel %vm707_vm0, %v2492_v14, %v2493_v4  ;;  %v2348_v31 = vshll.u32 %v3747_v10, 16  ;;  %v2331_v12 = vshll.u32 %v4671_v13, 16  ;;  %v2329_v59 = vshrl.u32 %v4671_v13, 16  ;;  %v2010_v14 = vld [vmem:[#allocation2 + $0x74] sm:$0x1] }
 0x1f8   : > { %v2345_v22 = vrot.slane %v2343_v19, 1  ;;  %v2491_v36 = vsel %vm707_vm0, %v2489_v21, %v2490_v26  ;;  %v2336_v47 = vshll.u32 %v4673_v15, 16 }
 0x1f9   : > { %2682 = vrot.lane.b32.xlu1 %v4671_v13, %s3794_s8  ;;  %2565 = vrot.lane.b32.xlu0 %v4671_v13, %s3789_s24  ;;  %v2350_v37 = vrot.slane %v2348_v31, 1  ;;  %v2333_v42 = vrot.slane %v2331_v12, 1 }
 0x1fa   : > { %v2346_v24 = vor.u32 %v2345_v22, %v2341_v8  ;;  %v345_v8 = vld [vmem:[#allocation2 + $0xd4] sm:$0x1] }
 0x1fb   : > { %v2334_v18 = vor.u32 %v2333_v42, %v2329_v59 }
 0x1fc   : > { %v3656_v20 = vpop.f32.mrb[16].mxu0  ;;  %v2351_v1 = vsel %vm450_vm1, %v2346_v24, %v2350_v37 }
 0x1fd   : > { %v1443_v3 = vadd.f32 %v3656_v20, %v4443_v53  ;;  %v1434_v23 = vpop.f32.mrb[17].mxu0  ;;  %2649 = vrot.lane.b32.xlu1 %v2494_v25, %s3790_s25  ;;  %2766 = vrot.lane.b32.xlu0 %v2494_v25, %s3796_s12 }
 0x1fe   : > { %v1435_v7 = vadd.f32 %v4443_v53, %v1434_v23  ;;  %v3657_v27 = vpop.f32.mrb[18].mxu0  ;;  %v2338_v23 = vrot.slane %v2336_v47, 1 }
 0x1ff   : > { %v1515_v50 = vmax.f32 %v1443_v3, 0.0  ;;  %v1446_v28 = vadd.f32 %v3657_v27, %v4443_v53  ;;  %v1437_v63 = vpop.f32.mrb[19].mxu0 }
 0x200   : > { %v1513_v32 = vmax.f32 %v1435_v7, 0.0  ;;  %v1438_v33 = vadd.f32 %v4443_v53, %v1437_v63  ;;  %v2339_v27 = vsel %vm450_vm1, %v2334_v18, %v2338_v23 }
 0x201   : > { %v3580_v35 = vpack.c.bf16 %v1515_v50, %v1515_v50  ;;  %v1516_v16 = vmax.f32 %v1446_v28, 0.0  ;;  %2530 = vrot.lane.b32.xlu1 %v2491_v36, %s3791_s26  ;;  %2532 = vrot.lane.b32.xlu0 %v2494_v25, %s3791_s26  ;;  %v289_v50 = vld [vmem:[#allocation2 + $0xcc] sm:$0x1] }
 0x202   : > { %v3578_v34 = vpack.c.bf16 %v1513_v32, %v1513_v32  ;;  %v1514_v38 = vmax.f32 %v1438_v33, 0.0  ;;  %v290_v63 = vsel %vm4269_vm15, 0, %v289_v50  ;;  %v346_v32 = vsel %vm4293_vm14, 0, %v345_v8 }
 0x203   : > { %v1781_v41 = vshrl.u32 %v3580_v35, 16  ;;  %v3581_v43 = vpack.c.bf16 %v1516_v16, %v1516_v16  ;;  %v1784_v46 = vshll.u32 %v3580_v35, 16  ;;  %291 = vst [vmem:[#allocation2 + $0xcc] sm:$0x1] %v290_v63  ;;  %347 = vst [vmem:[#allocation2 + $0xd4] sm:$0x1] %v346_v32 }
 0x204   : > { %v1764_v44 = vshrl.u32 %v3578_v34, 16  ;;  %v3579_v53 = vpack.c.bf16 %v1514_v38, %v1514_v38  ;;  %v1767_v54 = vshll.u32 %v3578_v34, 16  ;;  %v3770_v38 = vld [vmem:[#allocation2] sm:$0xff]   ;;  %vm5362_vm14 = vcmask 228352  }
 0x205   : > { %v1783_v45 = vrot.slane %v1781_v41, 7  ;;  %v1789_v48 = vshrl.u32 %v3581_v43, 16  ;;  %2614 = vrot.lane.b32.xlu1 %v2351_v1, %s3793_s7  ;;  %2764 = vrot.lane.b32.xlu0 %v2491_v36, %s3796_s12  ;;  %v1792_v62 = vshll.u32 %v3581_v43, 16  ;;  %v2787_v39 = vsel %vm1014_vm3, %v3770_v38, %v4679_v11  ;;  %vm5364_vm2 = vmmov %vm5362_vm14 }
 0x206   : > { %v1766_v52 = vrot.slane %v1764_v44, 7  ;;  %v1772_v55 = vshrl.u32 %v3579_v53, 16  ;;  %v1775_v5 = vshll.u32 %v3579_v53, 16  ;;  %v2819_v44 = vsel %vm1047_vm4, %v2787_v39, %v4694_v30 }
 0x207   : > { %v1786_v60 = vor.u32 %v1784_v46, %v1783_v45  ;;  %v1791_v17 = vrot.slane %v1789_v48, 7  ;;  %v4701_v6 = vpop.permute.xlu1 %2555  ;;  %v4703_v9 = vpop.permute.xlu0 %2672  ;;  %v1787_v57 = vrot.slane %v1783_v45, 4  ;;  %v4757_v45 = vld [vmem:[%s5343_s2] ss:$0 sm:$0xff] }
 0x208   : > { %v1769_v56 = vor.u32 %v1767_v54, %v1766_v52  ;;  %v1774_v2 = vrot.slane %v1772_v55, 7  ;;  %v1770_v4 = vrot.slane %v1766_v52, 4 }
 0x209   : > { %v2014_v58 = vsel %vm4472_vm9, %v1786_v60, %v2013_v51  ;;  %v1794_v10 = vor.u32 %v1792_v62, %v1791_v17  ;;  %v1796_v13 = vrot.slane %v1791_v17, 4  ;;  %2452 = vrot.lane.b32.xlu1 %v2351_v1, %s3792_s29  ;;  %2647 = vrot.lane.b32.xlu0 %v2491_v36, %s3790_s25 }
 0x20a   : > { %2015 = vst [vmem:[#allocation2 + $0x78] sm:$0xf] %v2014_v58  ;;  %v2007_v15 = vsel %vm4472_vm9, %v1769_v56, %v2006_v61  ;;  %v1777_v19 = vor.u32 %v1775_v5, %v1774_v2  ;;  %v1779_v20 = vrot.slane %v1774_v2, 4 }
 0x20b   : > { %2008 = vst [vmem:[#allocation2 + $0x6c] sm:$0xf] %v2007_v15  ;;  %v1795_v21 = vsel %vm4483_vm10, %v1787_v57, %v1794_v10  ;;  %v2018_v3 = vsel %vm4269_vm15, %v1796_v13, %v2017_v0  ;;  %v4720_v22 = vpop.permute.xlu1 %2637  ;;  %v2554_v7 = vpop.permute.xlu0 %2553 }
 0x20c   : > { %2016 = vst.msk [vmem:[#allocation2 + $0x7c] sm:$0xf] %vm226_vm12, %v1795_v21  ;;  %2019 = vst [vmem:[#allocation2 + $0x80] sm:$0x1] %v2018_v3  ;;  %v1778_v25 = vsel %vm4483_vm10, %v1770_v4, %v1777_v19  ;;  %v2011_v26 = vsel %vm4269_vm15, %v1779_v20, %v2010_v14  ;;  %v2851_v56 = vsel %vm1080_vm5, %v2819_v44, %v2554_v7 }
 0x20d   : > { %2009 = vst.msk [vmem:[#allocation2 + $0x70] sm:$0xf] %vm226_vm12, %v1778_v25  ;;  %2012 = vst [vmem:[#allocation2 + $0x74] sm:$0x1] %v2011_v26  ;;  %2729 = vrot.lane.b32.xlu1 %v2339_v27, %s3795_s9  ;;  %2731 = vrot.lane.b32.xlu0 %v2351_v1, %s3795_s9 }
 0x20f   : > { %v4726_v28 = vpop.permute.xlu0 %2754  ;;  %v4730_v31 = vpop.permute.xlu1 %2518 }
 0x211   : > { %2450 = vrot.lane.b32.xlu1 %v2339_v27, %s3792_s29  ;;  %2612 = vrot.lane.b32.xlu0 %v2339_v27, %s3793_s7 }
 0x213   : > { %v3749_v33 = vld [vmem:[#allocation2 + $0x78] sm:$0xff]   ;;  %v4736_v12 = vpop.permute.xlu0 %2520  ;;  %v3751_v35 = vld [vmem:[#allocation2 + $0x80] ss:$0 sps:$4 sm:$0x11]   ;;  %v4740_v16 = vpop.permute.xlu1 %2602 }
 0x214   : > { %v4742_v24 = vld [vmem:[#allocation2 + $0x6c] sm:$0xff]   ;;  %v2367_v34 = vshll.u32 %v3749_v33, 16  ;;  %v2498_v41 = vrot.slane %v3749_v33, 1  ;;  %v2499_v43 = vrot.slane %v3751_v35, 1  ;;  %v2365_v59 = vshrl.u32 %v3749_v33, 16 }
 0x215   : > { %2571 = vrot.lane.b32.xlu1 %v3749_v33, %s3789_s24  ;;  %2688 = vrot.lane.b32.xlu0 %v3749_v33, %s3794_s8  ;;  %v4746_v37 = vld [vmem:[#allocation2 + $0x74] ss:$0 sps:$4 sm:$0x11]   ;;  %v2495_v51 = vrot.slane %v4742_v24, 1  ;;  %v2372_v60 = vshll.u32 %v3751_v35, 16  ;;  %v2355_v47 = vshll.u32 %v4742_v24, 16 }
 0x216   : > { %v2369_v42 = vrot.slane %v2367_v34, 1  ;;  %v2500_v1 = vsel %vm707_vm0, %v2498_v41, %v2499_v43  ;;  %v2496_v52 = vrot.slane %v4746_v37, 1  ;;  %v2353_v13 = vshrl.u32 %v4742_v24, 16  ;;  %v2027_v35 = vld [vmem:[#allocation2 + $0x90] sm:$0xf] }
 0x217   : > { %v2636_v36 = vpop.permute.xlu0 %2635  ;;  %v4763_v54 = vpop.permute.xlu1 %2440  ;;  %v2374_v19 = vrot.slane %v2372_v60, 1  ;;  %v2357_v23 = vrot.slane %v2355_v47, 1  ;;  %v2020_v43 = vld [vmem:[#allocation2 + $0x84] sm:$0xf]  ;;  %v2024_v60 = vld [vmem:[#allocation2 + $0x8c] sm:$0x1] }
 0x218   : > { %v2370_v5 = vor.u32 %v2369_v42, %v2365_v59  ;;  %v2497_v10 = vsel %vm707_vm0, %v2495_v51, %v2496_v52 }
 0x219   : > { %2686 = vrot.lane.b32.xlu1 %v4742_v24, %s3794_s8  ;;  %2569 = vrot.lane.b32.xlu0 %v4742_v24, %s3789_s24  ;;  %v2358_v52 = vor.u32 %v2357_v23, %v2353_v13 }
 0x21a   : > { %v2375_v27 = vsel %vm450_vm1, %v2370_v5, %v2374_v19 }
 0x21b   : > { %v2720_v46 = vpop.permute.xlu0 %2719  ;;  %v2439_v25 = vpop.permute.xlu1 %2438 }
 0x21c   : > { %v3660_v53 = vpop.f32.mrb[20].mxu0 }
 0x21d   : > { %v1459_v11 = vadd.f32 %v4757_v45, %v3660_v53  ;;  %v1450_v48 = vpop.f32.mrb[21].mxu0  ;;  %2653 = vrot.lane.b32.xlu1 %v2500_v1, %s3790_s25  ;;  %2770 = vrot.lane.b32.xlu0 %v2500_v1, %s3796_s12  ;;  %v2360_v53 = vshll.u32 %v4746_v37, 16 }
 0x21e   : > { %v1451_v30 = vadd.f32 %v4757_v45, %v1450_v48  ;;  %v3661_v55 = vpop.f32.mrb[22].mxu0 }
 0x21f   : > { %v1519_v61 = vmax.f32 %v1459_v11, 0.0  ;;  %v1462_v17 = vadd.f32 %v4757_v45, %v3661_v55  ;;  %v1453_v62 = vpop.f32.mrb[23].mxu0  ;;  %v2601_v58 = vpop.permute.xlu0 %2600  ;;  %v2031_v11 = vld [vmem:[#allocation2 + $0x98] sm:$0x1] }
 0x220   : > { %v1517_v0 = vmax.f32 %v1451_v30, 0.0  ;;  %v1454_v2 = vadd.f32 %v4757_v45, %v1453_v62  ;;  %v2883_v15 = vsel %vm1113_vm6, %v2851_v56, %v2601_v58 }
 0x221   : > { %v3584_v18 = vpack.c.bf16 %v1519_v61, %v1519_v61  ;;  %v1520_v57 = vmax.f32 %v1462_v17, 0.0  ;;  %2534 = vrot.lane.b32.xlu1 %v2497_v10, %s3791_s26  ;;  %2536 = vrot.lane.b32.xlu0 %v2500_v1, %s3791_s26  ;;  %v2915_v3 = vsel %vm1146_vm7, %v2883_v15, %v2636_v36 }
 0x222   : > { %v3582_v14 = vpack.c.bf16 %v1517_v0, %v1517_v0  ;;  %v1518_v4 = vmax.f32 %v1454_v2, 0.0  ;;  %v2947_v50 = vsel %vm1179_vm8, %v2915_v3, %v4703_v9  ;;  %v2362_v0 = vrot.slane %v2360_v53, 1  ;;  %v3773_v53 = vld [vmem:[#allocation2 + $0x18] sm:$0xff]  }
 0x223   : > { %v1815_v20 = vshrl.u32 %v3584_v18, 16  ;;  %v3585_v21 = vpack.c.bf16 %v1520_v57, %v1520_v57  ;;  %v1818_v8 = vshll.u32 %v3584_v18, 16  ;;  %v2979_v33 = vsel %vm5362_vm14, %v2947_v50, %v2720_v46  ;;  %vm5365_vm14 = vmmov %vm5363_vm13 }
 0x224   : > { %v1798_v26 = vshrl.u32 %v3582_v14, 16  ;;  %v3583_v7 = vpack.c.bf16 %v1518_v4, %v1518_v4  ;;  %v1801_v38 = vshll.u32 %v3582_v14, 16  ;;  %v3011_v36 = vsel %vm5363_vm13, %v2979_v33, %v4726_v28  ;;  %v3772_v14 = vld [vmem:[#allocation2 + $0xc] sm:$0xff]   ;;  %vm5366_vm13 = vmmov %vm5364_vm2 }
 0x225   : > { %v1817_v63 = vrot.slane %v1815_v20, 7  ;;  %v1823_v32 = vshrl.u32 %v3585_v21, 16  ;;  %2618 = vrot.lane.b32.xlu1 %v2375_v27, %s3793_s7  ;;  %2768 = vrot.lane.b32.xlu0 %v2497_v10, %s3796_s12  ;;  %v1826_v9 = vshll.u32 %v3585_v21, 16  ;;  %v2363_v58 = vsel %vm450_vm1, %v2358_v52, %v2362_v0 }
 0x226   : > { %v1800_v34 = vrot.slane %v1798_v26, 7  ;;  %v1806_v39 = vshrl.u32 %v3583_v7, 16  ;;  %3676 = vmatprep.mubr.msk.bf16.mxu1 %vm1299_vm11, %v3011_v36  ;;  %v1809_v48 = vshll.u32 %v3583_v7, 16  ;;  %v2789_v4 = vsel %vm1014_vm3, %v3772_v14, %v2439_v25 }
 0x227   : > { %v1820_v41 = vor.u32 %v1818_v8, %v1817_v63  ;;  %v1825_v44 = vrot.slane %v1823_v32, 7  ;;  %v4788_v1 = vpop.permute.xlu1 %2559  ;;  %v4790_v51 = vpop.permute.xlu0 %2676  ;;  %v1821_v30 = vrot.slane %v1817_v63, 4  ;;  %v2821_v3 = vsel %vm1047_vm4, %v2789_v4, %v4730_v31 }
 0x228   : > { %v1803_v42 = vor.u32 %v1801_v38, %v1800_v34  ;;  %v1808_v46 = vrot.slane %v1806_v39, 7  ;;  %v1804_v61 = vrot.slane %v1800_v34, 4 }
 0x229   : > { %v2028_v28 = vsel %vm4472_vm9, %v1820_v41, %v2027_v35  ;;  %v1828_v55 = vor.u32 %v1826_v9, %v1825_v44  ;;  %v1830_v59 = vrot.slane %v1825_v44, 4  ;;  %2456 = vrot.lane.b32.xlu1 %v2375_v27, %s3792_s29  ;;  %2651 = vrot.lane.b32.xlu0 %v2497_v10, %s3790_s25 }
 0x22a   : > { %2029 = vst [vmem:[#allocation2 + $0x90] sm:$0xf] %v2028_v28  ;;  %v2021_v37 = vsel %vm4472_vm9, %v1803_v42, %v2020_v43  ;;  %v1811_v17 = vor.u32 %v1809_v48, %v1808_v46  ;;  %v1813_v62 = vrot.slane %v1808_v46, 4  ;;  %v2791_v42 = vsel %vm1014_vm3, %v3773_v53, %v4763_v54 }
 0x22b   : > { %2022 = vst [vmem:[#allocation2 + $0x84] sm:$0xf] %v2021_v37  ;;  %v1829_v47 = vsel %vm4483_vm10, %v1821_v30, %v1828_v55  ;;  %v2032_v56 = vsel %vm4269_vm15, %v1830_v59, %v2031_v11  ;;  %v2675_v18 = vpop.permute.xlu1 %2674  ;;  %v4807_v57 = vpop.permute.xlu0 %2557 }
 0x22c   : > { %2030 = vst.msk [vmem:[#allocation2 + $0x94] sm:$0xf] %vm226_vm12, %v1829_v47  ;;  %2033 = vst [vmem:[#allocation2 + $0x98] sm:$0x1] %v2032_v56  ;;  %v1812_v2 = vsel %vm4483_vm10, %v1804_v61, %v1811_v17  ;;  %v2025_v5 = vsel %vm4269_vm15, %v1813_v62, %v2024_v60 }
 0x22d   : > { %2023 = vst.msk [vmem:[#allocation2 + $0x88] sm:$0xf] %vm226_vm12, %v1812_v2  ;;  %2026 = vst [vmem:[#allocation2 + $0x8c] sm:$0x1] %v2025_v5  ;;  %2733 = vrot.lane.b32.xlu1 %v2363_v58, %s3795_s9  ;;  %2735 = vrot.lane.b32.xlu0 %v2375_v27, %s3795_s9  ;;  %v2853_v27 = vsel %vm1080_vm5, %v2821_v3, %v4701_v6  ;;  %v2823_v2 = vsel %vm1047_vm4, %v2791_v42, %v4736_v12 }
 0x22e   : > { %v2885_v33 = vsel %vm1113_vm6, %v2853_v27, %v4740_v16  ;;  %v2855_v14 = vsel %vm1080_vm5, %v2823_v2, %v4807_v57  ;;  %v2041_v57 = vld [vmem:[#allocation2 + $0xa8] sm:$0xf] }
 0x22f   : > { %v4813_v10 = vpop.permute.xlu1 %2641  ;;  %v4815_v13 = vpop.permute.xlu0 %2758  ;;  %v2917_v16 = vsel %vm1146_vm7, %v2885_v33, %v4720_v22 }
 0x230   : > { %v2949_v22 = vsel %vm1179_vm8, %v2917_v16, %v2675_v18 }
 0x231   : > { %2454 = vrot.lane.b32.xlu1 %v2363_v58, %s3792_s29  ;;  %2616 = vrot.lane.b32.xlu0 %v2363_v58, %s3793_s7 }
 0x233   : > { %v4820_v15 = vld [vmem:[#allocation2 + $0x90] sm:$0xff]   ;;  %v4822_v19 = vpop.permute.xlu1 %2522  ;;  %v4824_v20 = vpop.permute.xlu0 %2524  ;;  %v4849_v34 = vld [vmem:[#allocation2 + $0x98] ss:$0 sps:$4 sm:$0x11]  }
 0x234   : > { %v4826_v21 = vld [vmem:[#allocation2 + $0x84] sm:$0xff]   ;;  %v3755_v23 = vld [vmem:[#allocation2 + $0x8c] ss:$0 sps:$4 sm:$0x11]   ;;  %v2391_v8 = vshll.u32 %v4820_v15, 16  ;;  %v2389_v48 = vshrl.u32 %v4820_v15, 16 }
 0x235   : > { %2690 = vrot.lane.b32.xlu1 %v4826_v21, %s3794_s8  ;;  %v2501_v25 = vrot.slane %v4826_v21, 1  ;;  %v2379_v26 = vshll.u32 %v4826_v21, 16  ;;  %v2502_v7 = vrot.slane %v3755_v23, 1  ;;  %v2377_v6 = vshrl.u32 %v4826_v21, 16 }
 0x236   : > { %v2384_v35 = vshll.u32 %v3755_v23, 16  ;;  %v2393_v36 = vrot.slane %v2391_v8, 1  ;;  %v2396_v54 = vshll.u32 %v4849_v34, 16  ;;  %v2504_v12 = vrot.slane %v4820_v15, 1 }
 0x237   : > { %v4836_v50 = vpop.permute.xlu1 %2606  ;;  %v2757_v63 = vpop.permute.xlu0 %2756  ;;  %v4840_v32 = vsel %vm707_vm0, %v2501_v25, %v2502_v7  ;;  %v2381_v31 = vrot.slane %v2379_v26, 1  ;;  %v2505_v27 = vrot.slane %v4849_v34, 1  ;;  %v2034_v34 = vld [vmem:[#allocation2 + $0x9c] sm:$0xf] }
 0x238   : > { %2772 = vrot.lane.b32.xlu0 %v4840_v32, %s3796_s12  ;;  %v2386_v55 = vrot.slane %v2384_v35, 1  ;;  %v2394_v37 = vor.u32 %v2393_v36, %v2389_v48  ;;  %v2398_v23 = vrot.slane %v2396_v54, 1  ;;  %v2038_v54 = vld [vmem:[#allocation2 + $0xa4] sm:$0x1] }
 0x239   : > { %2575 = vrot.lane.b32.xlu1 %v4820_v15, %s3789_s24  ;;  %v2382_v9 = vor.u32 %v2381_v31, %v2377_v6 }
 0x23b   : > { %v4851_v38 = vpop.permute.xlu1 %2444  ;;  %v4854_v43 = vpop.permute.xlu0 %2639  ;;  %v2387_v0 = vsel %vm450_vm1, %v2382_v9, %v2386_v55 }
 0x23c   : > { %v3664_v39 = vpop.f32.mrb[24].mxu0  ;;  %2573 = vrot.lane.b32.xlu0 %v4826_v21, %s3789_s24 }
 0x23d   : > { %v1475_v41 = vadd.f32 %v4757_v45, %v3664_v39  ;;  %v1466_v44 = vpop.f32.mrb[25].mxu0  ;;  %2538 = vrot.lane.b32.xlu1 %v4840_v32, %s3791_s26 }
 0x23e   : > { %v1467_v11 = vadd.f32 %v4757_v45, %v1466_v44  ;;  %v3665_v46 = vpop.f32.mrb[26].mxu0 }
 0x23f   : > { %v1523_v52 = vmax.f32 %v1475_v41, 0.0  ;;  %v1478_v30 = vadd.f32 %v4757_v45, %v3665_v46  ;;  %v1469_v28 = vpop.f32.mrb[27].mxu0  ;;  %v2722_v61 = vpop.permute.xlu1 %2721  ;;  %v2045_v46 = vld [vmem:[#allocation2 + $0xb0] sm:$0x1] }
 0x240   : > { %v1521_v59 = vmax.f32 %v1467_v11, 0.0  ;;  %v1470_v60 = vadd.f32 %v4757_v45, %v1469_v28  ;;  %v2981_v47 = vsel %vm5364_vm2, %v2949_v22, %v2722_v61  ;;  %v2724_v56 = vpop.permute.xlu0 %2723  ;;  %2620 = vrot.lane.b32.xlu0 %v2387_v0, %s3793_s7  ;;  %vm5367_vm2 = vmmov %vm5365_vm14 }
 0x241   : > { %v3588_v17 = vpack.c.bf16 %v1523_v52, %v1523_v52  ;;  %v1524_v62 = vmax.f32 %v1478_v30, 0.0  ;;  %2737 = vrot.lane.b32.xlu1 %v2387_v0, %s3795_s9  ;;  %v3013_v18 = vsel %vm5365_vm14, %v2981_v47, %v2757_v63  ;;  %v4883_v63 = vsel %vm450_vm1, %v2394_v37, %v2398_v23  ;;  %vm5368_vm14 = vmmov %vm5366_vm13 }
 0x242   : > { %v3586_v5 = vpack.c.bf16 %v1521_v59, %v1521_v59  ;;  %v1522_v58 = vmax.f32 %v1470_v60, 0.0  ;;  %3677 = vmatmul.mubr.msk.bf16.vlgmr.msra.gmra.mrb[0].mxu1 %vm1299_vm11, %v3013_v18 }
 0x243   : > { %v1849_v4 = vshrl.u32 %v3588_v17, 16  ;;  %v3589_v3 = vpack.c.bf16 %v1524_v62, %v1524_v62  ;;  %v2443_v7 = vpop.permute.xlu1 %2442  ;;  %v1852_v31 = vshll.u32 %v3588_v17, 16 }
 0x244   : > { %v1832_v25 = vshrl.u32 %v3586_v5, 16  ;;  %v3587_v26 = vpack.c.bf16 %v1522_v58, %v1522_v58  ;;  %v2605_v6 = vpop.permute.xlu0 %2604  ;;  %v1835_v39 = vshll.u32 %v3586_v5, 16  ;;  %2655 = vrot.lane.b32.xlu0 %v4840_v32, %s3790_s25 }
 0x245   : > { %v1851_v8 = vrot.slane %v1849_v4, 7  ;;  %v1857_v33 = vshrl.u32 %v3589_v3, 16  ;;  %v1860_v36 = vshll.u32 %v3589_v3, 16  ;;  %2458 = vrot.lane.b32.xlu1 %v2387_v0, %s3792_s29  ;;  %v2887_v52 = vsel %vm1113_vm6, %v2855_v14, %v2605_v6 }
 0x246   : > { %v1834_v35 = vrot.slane %v1832_v25, 7  ;;  %v1840_v41 = vshrl.u32 %v3587_v26, 16  ;;  %v1843_v42 = vshll.u32 %v3587_v26, 16  ;;  %v2919_v22 = vsel %vm1146_vm7, %v2887_v52, %v4854_v43 }
 0x247   : > { %v1854_v44 = vor.u32 %v1852_v31, %v1851_v8  ;;  %v1855_v9 = vrot.slane %v1851_v8, 4  ;;  %v1859_v53 = vrot.slane %v1857_v33, 7  ;;  %v4889_v30 = vpop.permute.xlu1 %2563  ;;  %v2951_v17 = vsel %vm1179_vm8, %v2919_v22, %v4790_v51 }
 0x248   : > { %v1837_v16 = vor.u32 %v1835_v39, %v1834_v35  ;;  %v1838_v11 = vrot.slane %v1834_v35, 4  ;;  %v1842_v48 = vrot.slane %v1840_v41, 7  ;;  %v4895_v59 = vpop.permute.xlu0 %2680  ;;  %2692 = vrot.lane.b32.xlu0 %v4820_v15, %s3794_s8  ;;  %v2983_v47 = vsel %vm5366_vm13, %v2951_v17, %v2724_v56  ;;  %vm5369_vm13 = vmmov %vm5367_vm2 }
 0x249   : > { %v2042_v28 = vsel %vm4472_vm9, %v1854_v44, %v2041_v57  ;;  %v1862_v55 = vor.u32 %v1860_v36, %v1859_v53  ;;  %v1864_v32 = vrot.slane %v1859_v53, 4  ;;  %2622 = vrot.lane.b32.xlu1 %v4883_v63, %s3793_s7  ;;  %v3015_v2 = vsel %vm5367_vm2, %v2983_v47, %v4815_v13  ;;  %v3774_v13 = vld [vmem:[#allocation2 + $0x24] sm:$0xff]  }
 0x24a   : > { %2043 = vst [vmem:[#allocation2 + $0xa8] sm:$0xf] %v2042_v28  ;;  %v2035_v60 = vsel %vm4472_vm9, %v1837_v16, %v2034_v34  ;;  %v1845_v61 = vor.u32 %v1843_v42, %v1842_v48  ;;  %v1847_v37 = vrot.slane %v1842_v48, 4  ;;  %3680 = vmatprep.mubr.msk.bf16.mxu1 %vm1299_vm11, %v3015_v2  ;;  %v2506_v56 = vsel %vm707_vm0, %v2504_v12, %v2505_v27 }
 0x24b   : > { %2036 = vst [vmem:[#allocation2 + $0x9c] sm:$0xf] %v2035_v60  ;;  %v1863_v43 = vsel %vm4483_vm10, %v1855_v9, %v1862_v55  ;;  %v2046_v62 = vsel %vm4269_vm15, %v1864_v32, %v2045_v46  ;;  %v2679_v5 = vpop.permute.xlu1 %2678  ;;  %v2793_v4 = vsel %vm1014_vm3, %v3774_v13, %v2443_v7 }
 0x24c   : > { %2044 = vst.msk [vmem:[#allocation2 + $0xac] sm:$0xf] %vm226_vm12, %v1863_v43  ;;  %2047 = vst [vmem:[#allocation2 + $0xb0] sm:$0x1] %v2046_v62  ;;  %v1846_v51 = vsel %vm4483_vm10, %v1838_v11, %v1845_v61  ;;  %v2039_v0 = vsel %vm4269_vm15, %v1847_v37, %v2038_v54  ;;  %v4919_v58 = vpop.permute.xlu0 %2561  ;;  %2739 = vrot.lane.b32.xlu0 %v4883_v63, %s3795_s9  ;;  %v2825_v12 = vsel %vm1047_vm4, %v2793_v4, %v4822_v19  ;;  %v3775_v61 = vld [vmem:[#allocation2 + $0x30] sm:$0xff]  }
 0x24d   : > { %2037 = vst.msk [vmem:[#allocation2 + $0xa0] sm:$0xf] %vm226_vm12, %v1846_v51  ;;  %2040 = vst [vmem:[#allocation2 + $0xa4] sm:$0x1] %v2039_v0  ;;  %2657 = vrot.lane.b32.xlu1 %v2506_v56, %s3790_s25  ;;  %v2857_v35 = vsel %vm1080_vm5, %v2825_v12, %v4788_v1  ;;  %v2795_v37 = vsel %vm1014_vm3, %v3775_v61, %v4851_v38  ;;  %v2055_v12 = vld [vmem:[#allocation2 + $0xc0] sm:$0xf] }
 0x24e   : > { %v2889_v53 = vsel %vm1113_vm6, %v2857_v35, %v4836_v50 }
 0x24f   : > { %v4925_v18 = vpop.permute.xlu1 %2645  ;;  %v2921_v54 = vsel %vm1146_vm7, %v2889_v53, %v4813_v10 }
 0x250   : > { %v4927_v14 = vpop.permute.xlu0 %2762  ;;  %2774 = vrot.lane.b32.xlu0 %v2506_v56, %s3796_s12  ;;  %v2953_v17 = vsel %vm1179_vm8, %v2921_v54, %v2679_v5  ;;  %v2827_v5 = vsel %vm1047_vm4, %v2795_v37, %v4824_v20 }
 0x253   : > { %v4931_v3 = vpop.permute.xlu1 %2526  ;;  %v4964_v55 = vld [vmem:[#allocation2 + $0xa8] sm:$0xff]  }
 0x254   : > { %v4933_v23 = vld [vmem:[#allocation2 + $0x9c] sm:$0xff]   ;;  %v4935_v25 = vpop.permute.xlu0 %2528  ;;  %v3761_v26 = vld [vmem:[#allocation2 + $0xa4] ss:$0 sps:$4 sm:$0x11]   ;;  %v2415_v10 = vshll.u32 %v4964_v55, 16  ;;  %v2413_v40 = vshrl.u32 %v4964_v55, 16 }
 0x255   : > { %2694 = vrot.lane.b32.xlu1 %v4933_v23, %s3794_s8  ;;  %v2507_v27 = vrot.slane %v4933_v23, 1  ;;  %v2403_v8 = vshll.u32 %v4933_v23, 16  ;;  %v2508_v31 = vrot.slane %v3761_v26, 1  ;;  %v2408_v33 = vshll.u32 %v3761_v26, 16 }
 0x256   : > { %v2401_v6 = vshrl.u32 %v4933_v23, 16  ;;  %v2417_v20 = vrot.slane %v2415_v10, 1 }
 0x257   : > { %v4943_v7 = vpop.permute.xlu1 %2610  ;;  %v2405_v57 = vrot.slane %v2403_v8, 1  ;;  %v4949_v19 = vsel %vm707_vm0, %v2507_v27, %v2508_v31  ;;  %v2410_v44 = vrot.slane %v2408_v33, 1  ;;  %v2048_v33 = vld [vmem:[#allocation2 + $0xb4] sm:$0xf] }
 0x258   : > { %v2761_v39 = vpop.permute.xlu0 %2760  ;;  %2776 = vrot.lane.b32.xlu0 %v4949_v19, %s3796_s12  ;;  %v2418_v10 = vor.u32 %v2417_v20, %v2413_v40 }
 0x259   : > { %v2406_v41 = vor.u32 %v2405_v57, %v2401_v6 }
 0x25a   : > { %v3668_v36 = vpop.f32.mrb[28].mxu0 }
 0x25b   : > { %v1491_v9 = vadd.f32 %v4757_v45, %v3668_v36  ;;  %v1482_v34 = vpop.f32.mrb[29].mxu0  ;;  %v4957_v1 = vpop.permute.xlu1 %2448  ;;  %v2411_v11 = vsel %vm450_vm1, %v2406_v41, %v2410_v44  ;;  %v2059_v41 = vld [vmem:[#allocation2 + $0xc8] sm:$0x1] }
 0x25c   : > { %v1483_v42 = vadd.f32 %v4757_v45, %v1482_v34  ;;  %v3669_v16 = vpop.f32.mrb[30].mxu0  ;;  %v4961_v28 = vpop.permute.xlu0 %2643  ;;  %2741 = vrot.lane.b32.xlu1 %v2411_v11, %s3795_s9  ;;  %2540 = vrot.lane.b32.xlu0 %v2506_v56, %s3791_s26 }
 0x25d   : > { %v1527_v46 = vmax.f32 %v1491_v9, 0.0  ;;  %v1494_v48 = vadd.f32 %v4757_v45, %v3669_v16  ;;  %v1485_v52 = vpop.f32.mrb[31].mxu0 }
 0x25e   : > { %v1525_v32 = vmax.f32 %v1483_v42, 0.0  ;;  %v1486_v50 = vadd.f32 %v4757_v45, %v1485_v52 }
 0x25f   : > { %v3592_v22 = vpack.c.bf16 %v1527_v46, %v1527_v46  ;;  %v1528_v60 = vmax.f32 %v1494_v48, 0.0  ;;  %v2726_v47 = vpop.permute.xlu1 %2725 }
 0x260   : > { %v3590_v43 = vpack.c.bf16 %v1525_v32, %v1525_v32  ;;  %v1526_v62 = vmax.f32 %v1486_v50, 0.0  ;;  %v2985_v45 = vsel %vm5368_vm14, %v2953_v17, %v2726_v47  ;;  %v2728_v2 = vpop.permute.xlu0 %2727  ;;  %2460 = vrot.lane.b32.xlu1 %v4883_v63, %s3792_s29  ;;  %2577 = vrot.lane.b32.xlu0 %v4933_v23, %s3789_s24  ;;  %v2859_v63 = vsel %vm1080_vm5, %v2827_v5, %v4919_v58  ;;  %v3763_v58 = vld [vmem:[#allocation2 + $0xb0] ss:$0 sps:$4 sm:$0x11]   ;;  %v2052_v32 = vld [vmem:[#allocation2 + $0xbc] sm:$0x1] }
 0x261   : > { %v1883_v51 = vshrl.u32 %v3592_v22, 16  ;;  %v3593_v0 = vpack.c.bf16 %v1528_v60, %v1528_v60  ;;  %v3017_v38 = vsel %vm5369_vm13, %v2985_v45, %v2761_v39  ;;  %v1886_v26 = vshll.u32 %v3592_v22, 16  ;;  %v3776_v5 = vld [vmem:[#allocation2 + $0x3c] sm:$0xff]   ;;  %vm5376_vm13 = vmmov %vm5367_vm2 }
 0x262   : > { %v1866_v56 = vshrl.u32 %v3590_v43, 16  ;;  %v3591_v13 = vpack.c.bf16 %v1526_v62, %v1526_v62  ;;  %3681 = vmatmul.mubr.msk.bf16.gmra.mrb[4].mxu1 %vm1299_vm11, %v3017_v38  ;;  %v1869_v31 = vshll.u32 %v3590_v43, 16 }
 0x263   : > { %v1885_v4 = vrot.slane %v1883_v51, 7  ;;  %v1891_v27 = vshrl.u32 %v3593_v0, 16  ;;  %v2447_v57 = vpop.permute.xlu1 %2446  ;;  %v1894_v39 = vshll.u32 %v3593_v0, 16 }
 0x264   : > { %v1868_v8 = vrot.slane %v1866_v56, 7  ;;  %v1874_v6 = vshrl.u32 %v3591_v13, 16  ;;  %v2609_v44 = vpop.permute.xlu0 %2608  ;;  %2462 = vrot.lane.b32.xlu1 %v2411_v11, %s3792_s29  ;;  %v1877_v42 = vshll.u32 %v3591_v13, 16  ;;  %2624 = vrot.lane.b32.xlu0 %v2411_v11, %s3793_s7  ;;  %v2511_v13 = vrot.slane %v3763_v58, 1 }
 0x265   : > { %v1888_v35 = vor.u32 %v1886_v26, %v1885_v4  ;;  %v1893_v36 = vrot.slane %v1891_v27, 7  ;;  %v1889_v9 = vrot.slane %v1885_v4, 4  ;;  %v2891_v60 = vsel %vm1113_vm6, %v2859_v63, %v2609_v44 }
 0x266   : > { %v1871_v34 = vor.u32 %v1869_v31, %v1868_v8  ;;  %v1876_v53 = vrot.slane %v1874_v6, 7  ;;  %v1872_v46 = vrot.slane %v1868_v8, 4  ;;  %v2923_v17 = vsel %vm1146_vm7, %v2891_v60, %v4961_v28 }
 0x267   : > { %v2056_v16 = vsel %vm4472_vm9, %v1888_v35, %v2055_v12  ;;  %v1896_v48 = vor.u32 %v1894_v39, %v1893_v36  ;;  %v1898_v52 = vrot.slane %v1893_v36, 4  ;;  %v4992_v61 = vpop.permute.xlu1 %2567  ;;  %v2955_v51 = vsel %vm1179_vm8, %v2923_v17, %v4895_v59 }
 0x268   : > { %2057 = vst [vmem:[#allocation2 + $0xc0] sm:$0xf] %v2056_v16  ;;  %v2049_v50 = vsel %vm4472_vm9, %v1871_v34, %v2048_v33  ;;  %v1879_v54 = vor.u32 %v1877_v42, %v1876_v53  ;;  %v1881_v22 = vrot.slane %v1876_v53, 4  ;;  %v5000_v43 = vpop.permute.xlu0 %2684  ;;  %2542 = vrot.lane.b32.xlu1 %v4949_v19, %s3791_s26  ;;  %2659 = vrot.lane.b32.xlu0 %v4949_v19, %s3790_s25  ;;  %v2420_v28 = vshll.u32 %v3763_v58, 16  ;;  %vm5370_vm9 = vmmov %vm5368_vm14 }
 0x269   : > { %2050 = vst [vmem:[#allocation2 + $0xb4] sm:$0xf] %v2049_v50  ;;  %v1897_v11 = vsel %vm4483_vm10, %v1889_v9, %v1896_v48  ;;  %v2060_v37 = vsel %vm4269_vm15, %v1898_v52, %v2059_v41  ;;  %v2987_v0 = vsel %vm5370_vm9, %v2955_v51, %v2728_v2  ;;  %v2510_v2 = vrot.slane %v4964_v55, 1  ;;  %v3777_v52 = vld [vmem:[#allocation2 + $0x48] sm:$0xff]   ;;  %vm5374_vm14 = vmmov %vm5367_vm2 }
 0x26a   : > { %2058 = vst.msk [vmem:[#allocation2 + $0xc4] sm:$0xf] %vm226_vm12, %v1897_v11  ;;  %2061 = vst [vmem:[#allocation2 + $0xc8] sm:$0x1] %v2060_v37  ;;  %v1880_v62 = vsel %vm4483_vm10, %v1872_v46, %v1879_v54  ;;  %v2053_v47 = vsel %vm4269_vm15, %v1881_v22, %v2052_v32  ;;  %v3019_v45 = vsel %vm5367_vm2, %v2987_v0, %v4927_v14  ;;  %v2422_v59 = vrot.slane %v2420_v28, 1 }
 0x26b   : > { %2051 = vst.msk [vmem:[#allocation2 + $0xb8] sm:$0xf] %vm226_vm12, %v1880_v62  ;;  %2054 = vst [vmem:[#allocation2 + $0xbc] sm:$0x1] %v2053_v47  ;;  %v2683_v49 = vpop.permute.xlu1 %2682  ;;  %3684 = vmatprep.mubr.msk.bf16.mxu1 %vm1299_vm11, %v3019_v45  ;;  %v2797_v4 = vsel %vm1014_vm3, %v3776_v5, %v2447_v57  ;;  %v2512_v27 = vsel %vm707_vm0, %v2510_v2, %v2511_v13 }
 0x26c   : > { %v2566_v29 = vpop.permute.xlu0 %2565  ;;  %2579 = vrot.lane.b32.xlu1 %v4964_v55, %s3789_s24  ;;  %2696 = vrot.lane.b32.xlu0 %v4964_v55, %s3794_s8  ;;  %v2423_v56 = vsel %vm450_vm1, %v2418_v10, %v2422_v59  ;;  %v2829_v6 = vsel %vm1047_vm4, %v2797_v4, %v4931_v3  ;;  %vm5371_vm10 = vmmov %vm5370_vm9  ;;  %v3768_v10 = vld [vmem:[#allocation2 + $0xcc] sm:$0xff]   ;;  %v3769_v2 = vld [vmem:[#allocation2 + $0xd4] ss:$0 sps:$4 sm:$0x11]  }
 0x26d   : > { %v2861_v44 = vsel %vm1080_vm5, %v2829_v6, %v4889_v30  ;;  %vm5372_vm12 = vmmov %vm5367_vm2  ;;  %v2710_v13 = vshll.u32 %v3768_v10, 16  ;;  %v3778_v6 = vld [vmem:[#allocation2 + $0x54] sm:$0xff]  }
 0x26e   : > { %v2893_v34 = vsel %vm1113_vm6, %v2861_v44, %v4943_v7  ;;  %v2799_v7 = vsel %vm1014_vm3, %v3777_v52, %v4957_v1  ;;  %vm5373_vm15 = vmmov %vm5370_vm9 }
 0x26f   : > { %v5023_v19 = vpop.permute.xlu1 %2649  ;;  %v2925_v30 = vsel %vm1146_vm7, %v2893_v34, %v4925_v18  ;;  %v2831_v18 = vsel %vm1047_vm4, %v2799_v7, %v4935_v25 }
 0x270   : > { %v5027_v14 = vpop.permute.xlu0 %2766  ;;  %2626 = vrot.lane.b32.xlu1 %v2423_v56, %s3793_s7  ;;  %2743 = vrot.lane.b32.xlu0 %v2423_v56, %s3795_s9  ;;  %v2957_v16 = vsel %vm1179_vm8, %v2925_v30, %v2683_v49  ;;  %v2863_v11 = vsel %vm1080_vm5, %v2831_v18, %v2566_v29  ;;  %v2751_v30 = vrot.slane %v3768_v10, 1 }
 0x271   : > { %v3766_v48 = vld [vmem:[#allocation2 + $0xc0] sm:$0xff]   ;;  %v3767_v17 = vld [vmem:[#allocation2 + $0xc8] ss:$0 sps:$4 sm:$0x11]  }
 0x272   : > { %v5031_v38 = vld [vmem:[#allocation2 + $0xb4] sm:$0xff]   ;;  %v3765_v26 = vld [vmem:[#allocation2 + $0xbc] ss:$0 sps:$4 sm:$0x11]   ;;  %v2591_v60 = vshll.u32 %v3766_v48, 16  ;;  %v2589_v45 = vshrl.u32 %v3766_v48, 16 }
 0x273   : > { %v5034_v12 = vpop.permute.xlu1 %2530  ;;  %v2427_v63 = vshll.u32 %v5031_v38, 16  ;;  %v2513_v31 = vrot.slane %v5031_v38, 1  ;;  %v2514_v33 = vrot.slane %v3765_v26, 1  ;;  %v2425_v57 = vshrl.u32 %v5031_v38, 16 }
 0x274   : > { %v5038_v8 = vpop.permute.xlu0 %2532  ;;  %2661 = vrot.lane.b32.xlu1 %v2512_v27, %s3790_s25  ;;  %2778 = vrot.lane.b32.xlu0 %v2512_v27, %s3796_s12  ;;  %v2432_v36 = vshll.u32 %v3765_v26, 16  ;;  %v2593_v25 = vrot.slane %v2591_v60, 1  ;;  %v2596_v49 = vshll.u32 %v3767_v17, 16  ;;  %v2632_v26 = vrot.slane %v3766_v48, 1 }
 0x275   : > { %v2429_v35 = vrot.slane %v2427_v63, 1  ;;  %v2515_v9 = vsel %vm707_vm0, %v2513_v31, %v2514_v33  ;;  %v2708_v63 = vshrl.u32 %v3768_v10, 16  ;;  %v2712_v31 = vrot.slane %v2710_v13, 1 }
 0x276   : > { %v2434_v3 = vrot.slane %v2432_v36, 1  ;;  %v2594_v29 = vor.u32 %v2593_v25, %v2589_v45  ;;  %v2715_v33 = vshll.u32 %v3769_v2, 16 }
 0x277   : > { %v5046_v39 = vpop.permute.xlu1 %2614  ;;  %v2430_v41 = vor.u32 %v2429_v35, %v2425_v57 }
 0x278   : > { %v2765_v20 = vpop.permute.xlu0 %2764  ;;  %2698 = vrot.lane.b32.xlu1 %v5031_v38, %s3794_s8  ;;  %2780 = vrot.lane.b32.xlu0 %v2515_v9, %s3796_s12 }
 0x279   : > { %v2435_v42 = vsel %vm450_vm1, %v2430_v41, %v2434_v3 }
 0x27b   : > { %v5056_v53 = vpop.permute.xlu1 %2452 }
 0x27c   : > { %v2648_v58 = vpop.permute.xlu0 %2647  ;;  %2745 = vrot.lane.b32.xlu1 %v2435_v42, %s3795_s9  ;;  %2544 = vrot.lane.b32.xlu0 %v2512_v27, %s3791_s26 }
 0x27f   : > { %v2730_v46 = vpop.permute.xlu1 %2729 }
 0x280   : > { %v2989_v32 = vsel %vm5371_vm10, %v2957_v16, %v2730_v46  ;;  %v2732_v50 = vpop.permute.xlu0 %2731  ;;  %2464 = vrot.lane.b32.xlu1 %v2423_v56, %s3792_s29  ;;  %2581 = vrot.lane.b32.xlu0 %v5031_v38, %s3789_s24  ;;  %v2598_v56 = vrot.slane %v2596_v49, 1  ;;  %v2752_v16 = vrot.slane %v3769_v2, 1 }
 0x281   : > { %v3021_v54 = vsel %vm5372_vm12, %v2989_v32, %v2765_v20  ;;  %v2713_v20 = vor.u32 %v2712_v31, %v2708_v63 }
 0x282   : > { %3685 = vmatmul.mubr.msk.bf16.gmra.mrb[8].mxu1 %vm1299_vm11, %v3021_v54  ;;  %v2599_v4 = vsel %vm450_vm1, %v2594_v29, %v2598_v56  ;;  %v2753_v52 = vsel %vm707_vm0, %v2751_v30, %v2752_v16 }
 0x283   : > { %v2451_v22 = vpop.permute.xlu1 %2450 }
 0x284   : > { %v2613_v1 = vpop.permute.xlu0 %2612  ;;  %2466 = vrot.lane.b32.xlu1 %v2435_v42, %s3792_s29  ;;  %2628 = vrot.lane.b32.xlu0 %v2435_v42, %s3793_s7  ;;  %v2801_v57 = vsel %vm1014_vm3, %v3778_v6, %v2451_v22 }
 0x285   : > { %v2895_v37 = vsel %vm1113_vm6, %v2863_v11, %v2613_v1  ;;  %v2833_v44 = vsel %vm1047_vm4, %v2801_v57, %v5034_v12 }
 0x286   : > { %v2927_v40 = vsel %vm1146_vm7, %v2895_v37, %v2648_v58  ;;  %v2865_v34 = vsel %vm1080_vm5, %v2833_v44, %v4992_v61 }
 0x287   : > { %v2959_v62 = vsel %vm1179_vm8, %v2927_v40, %v5000_v43  ;;  %v5081_v47 = vpop.permute.xlu1 %2571  ;;  %v2897_v46 = vsel %vm1113_vm6, %v2865_v34, %v5046_v39 }
 0x288   : > { %v5083_v51 = vpop.permute.xlu0 %2688  ;;  %2546 = vrot.lane.b32.xlu1 %v2515_v9, %s3791_s26  ;;  %v2991_v28 = vsel %vm5373_vm15, %v2959_v62, %v2732_v50  ;;  %2663 = vrot.lane.b32.xlu0 %v2515_v9, %s3790_s25  ;;  %v2717_v9 = vrot.slane %v2715_v33, 1  ;;  %v2929_v7 = vsel %vm1146_vm7, %v2897_v46, %v5023_v19  ;;  %v3779_v50 = vld [vmem:[#allocation2 + $0x60] sm:$0xff]   ;;  %s3561_s26 = sshll.u32 %s5394_s19, 8 }
 0x289   : > { %v3023_v0 = vsel %vm5374_vm14, %v2991_v28, %v5027_v14  ;;  %v2633_v14 = vrot.slane %v3767_v17, 1  ;;  %v2803_v54 = vsel %vm1014_vm3, %v3779_v50, %v5056_v53  ;;  %s5211_s6 = scalar_lea.vmem %s5346_s5, %s3561_s26 }
 0x28a   : > { %3688 = vmatprep.mubr.msk.bf16.mxu1 %vm1299_vm11, %v3023_v0  ;;  %v2718_v58 = vsel %vm450_vm1, %v2713_v20, %v2717_v9  ;;  %vm5375_vm1 = vmmov %vm5370_vm9  ;;  %v2835_v60 = vsel %vm1047_vm4, %v2803_v54, %v5038_v8 }
 0x28b   : > { %v2687_v43 = vpop.permute.xlu1 %2686  ;;  %v2634_v36 = vsel %vm707_vm0, %v2632_v26, %v2633_v14  ;;  %vm5377_vm0 = vmmov %vm5375_vm1  ;;  %v3780_v26 = vld [vmem:[#allocation2 + $0x78] sm:$0xff]  }
 0x28c   : > { %v2570_v59 = vpop.permute.xlu0 %2569  ;;  %2583 = vrot.lane.b32.xlu1 %v3766_v48, %s3789_s24  ;;  %2700 = vrot.lane.b32.xlu0 %v3766_v48, %s3794_s8  ;;  %v2961_v61 = vsel %vm1179_vm8, %v2929_v7, %v2687_v43  ;;  %vm5378_vm9 = vmmov %vm5367_vm2 }
 0x28d   : > { %v2867_v11 = vsel %vm1080_vm5, %v2835_v60, %v2570_v59  ;;  %vm5379_vm2 = vmmov %vm5377_vm0 }
 0x28e   : > { %vm5380_vm10 = vmmov %vm5378_vm9 }
 0x28f   : > { %v2654_v5 = vpop.permute.xlu1 %2653  ;;  %vm5381_vm12 = vmmov %vm5377_vm0 }
 0x290   : > { %v2771_v27 = vpop.permute.xlu0 %2770  ;;  %2630 = vrot.lane.b32.xlu1 %v2599_v4, %s3793_s7  ;;  %2747 = vrot.lane.b32.xlu0 %v2599_v4, %s3795_s9  ;;  %vm5382_vm15 = vmmov %vm5378_vm9 }
 0x291   : > { %vm5383_vm14 = vmmov %vm5377_vm0 }
 0x293   : > { %v2535_v35 = vpop.permute.xlu1 %2534 }
 0x294   : > { %v2537_v41 = vpop.permute.xlu0 %2536  ;;  %2665 = vrot.lane.b32.xlu1 %v2634_v36, %s3790_s25  ;;  %2782 = vrot.lane.b32.xlu0 %v2634_v36, %s3796_s12 }
 0x297   : > { %v2619_v3 = vpop.permute.xlu1 %2618 }
 0x298   : > { %v2769_v42 = vpop.permute.xlu0 %2768  ;;  %2702 = vrot.lane.b32.xlu1 %v3768_v10, %s3794_s8 }
 0x29b   : > { %v2457_v48 = vpop.permute.xlu1 %2456 }
 0x29c   : > { %v2652_v12 = vpop.permute.xlu0 %2651  ;;  %2749 = vrot.lane.b32.xlu1 %v2718_v58, %s3795_s9  ;;  %v2807_v14 = vsel %vm1014_vm3, %v3780_v26, %v2457_v48 }
 0x29d   : > { %v2839_v63 = vsel %vm1047_vm4, %v2807_v14, %v2537_v41 }
 0x29f   : > { %v2734_v32 = vpop.permute.xlu1 %2733 }
 0x2a0   : > { %v2993_v18 = vsel %vm5375_vm1, %v2961_v61, %v2734_v32  ;;  %v2736_v22 = vpop.permute.xlu0 %2735  ;;  %2784 = vrot.lane.b32.xlu1 %v2753_v52, %s3796_s12  ;;  %vm5384_vm1 = vmmov %vm5378_vm9 }
 0x2a1   : > { %v3025_v39 = vsel %vm5376_vm13, %v2993_v18, %v2769_v42  ;;  %vm5385_vm13 = vmmov %vm5377_vm0 }
 0x2a2   : > { %3689 = vmatmul.mubr.msk.bf16.gmra.mrb[12].mxu1 %vm1299_vm11, %v3025_v39 }
 0x2a3   : > { %v2455_v19 = vpop.permute.xlu1 %2454 }
 0x2a4   : > { %v2805_v1 = vsel %vm1014_vm3, %v4742_v24, %v2455_v19  ;;  %v2617_v37 = vpop.permute.xlu0 %2616 }
 0x2a5   : > { %v2899_v53 = vsel %vm1113_vm6, %v2867_v11, %v2617_v37  ;;  %v2837_v40 = vsel %vm1047_vm4, %v2805_v1, %v2535_v35 }
 0x2a6   : > { %v2931_v17 = vsel %vm1146_vm7, %v2899_v53, %v2652_v12  ;;  %v2869_v0 = vsel %vm1080_vm5, %v2837_v40, %v5081_v47 }
 0x2a7   : > { %v2963_v62 = vsel %vm1179_vm8, %v2931_v17, %v5083_v51  ;;  %v2691_v25 = vpop.permute.xlu1 %2690  ;;  %v2901_v49 = vsel %vm1113_vm6, %v2869_v0, %v2619_v3 }
 0x2a8   : > { %v2995_v28 = vsel %vm5377_vm0, %v2963_v62, %v2736_v22  ;;  %v2933_v29 = vsel %vm1146_vm7, %v2901_v49, %v2654_v5  ;;  %vm5386_vm0 = vmmov %vm5384_vm1 }
 0x2a9   : > { %v3027_v8 = vsel %vm5378_vm9, %v2995_v28, %v2771_v27  ;;  %v2965_v51 = vsel %vm1179_vm8, %v2933_v29, %v2691_v25  ;;  %vm5387_vm9 = vmmov %vm5379_vm2 }
 0x2aa   : > { %3692 = vmatprep.mubr.msk.bf16.mxu1 %vm1299_vm11, %v3027_v8  ;;  %v2773_v24 = vpop.permute.xlu0 %2772 }
 0x2ab   : > { %v2576_v45 = vpop.permute.xlu1 %2575 }
 0x2ae   : > { %v2574_v10 = vpop.permute.xlu0 %2573 }
 0x2af   : > { %v2539_v43 = vpop.permute.xlu1 %2538  ;;  %v2871_v5 = vsel %vm1080_vm5, %v2839_v63, %v2574_v10 }
 0x2b2   : > { %v2621_v59 = vpop.permute.xlu0 %2620 }
 0x2b3   : > { %v2738_v56 = vpop.permute.xlu1 %2737  ;;  %v2903_v33 = vsel %vm1113_vm6, %v2871_v5, %v2621_v59 }
 0x2b4   : > { %v2997_v2 = vsel %vm5379_vm2, %v2965_v51, %v2738_v56  ;;  %vm5388_vm2 = vmmov %vm5386_vm0 }
 0x2b5   : > { %v3029_v13 = vsel %vm5380_vm10, %v2997_v2, %v2773_v24  ;;  %vm5389_vm10 = vmmov %vm5387_vm9 }
 0x2b6   : > { %3693 = vmatmul.mubr.msk.bf16.gmra.mrb[16].mxu1 %vm1299_vm11, %v3029_v13  ;;  %v2656_v47 = vpop.permute.xlu0 %2655 }
 0x2b7   : > { %v2459_v4 = vpop.permute.xlu1 %2458  ;;  %v2935_v57 = vsel %vm1146_vm7, %v2903_v33, %v2656_v47 }
 0x2b8   : > { %v2809_v36 = vsel %vm1014_vm3, %v4826_v21, %v2459_v4 }
 0x2b9   : > { %v2841_v41 = vsel %vm1047_vm4, %v2809_v36, %v2539_v43 }
 0x2ba   : > { %v2693_v27 = vpop.permute.xlu0 %2692  ;;  %v2873_v34 = vsel %vm1080_vm5, %v2841_v41, %v2576_v45 }
 0x2bb   : > { %v2623_v6 = vpop.permute.xlu1 %2622  ;;  %v2967_v35 = vsel %vm1179_vm8, %v2935_v57, %v2693_v27 }
 0x2bc   : > { %v2905_v30 = vsel %vm1113_vm6, %v2873_v34, %v2623_v6 }
 0x2be   : > { %v2740_v31 = vpop.permute.xlu0 %2739 }
 0x2bf   : > { %v2999_v44 = vsel %vm5381_vm12, %v2967_v35, %v2740_v31  ;;  %v2658_v3 = vpop.permute.xlu1 %2657  ;;  %vm5390_vm12 = vmmov %vm5386_vm0 }
 0x2c0   : > { %v2937_v16 = vsel %vm1146_vm7, %v2905_v30, %v2658_v3 }
 0x2c2   : > { %v2775_v20 = vpop.permute.xlu0 %2774 }
 0x2c3   : > { %v3031_v9 = vsel %vm5382_vm15, %v2999_v44, %v2775_v20  ;;  %vm5391_vm15 = vmmov %vm5387_vm9 }
 0x2c4   : > { %3696 = vmatprep.mubr.msk.bf16.mxu1 %vm1299_vm11, %v3031_v9 }
 0x2c7   : > { %v2695_v42 = vpop.permute.xlu1 %2694 }
 0x2c8   : > { %v2969_v21 = vsel %vm1179_vm8, %v2937_v16, %v2695_v42 }
 0x2ca   : > { %v2777_v58 = vpop.permute.xlu0 %2776 }
 0x2ce   : > { %v2742_v46 = vpop.permute.xlu1 %2741  ;;  %v2541_v12 = vpop.permute.xlu0 %2540 }
 0x2cf   : > { %v3001_v48 = vsel %vm5383_vm14, %v2969_v21, %v2742_v46  ;;  %vm5392_vm14 = vmmov %vm5386_vm0 }
 0x2d0   : > { %v3033_v52 = vsel %vm5384_vm1, %v3001_v48, %v2777_v58 }
 0x2d1   : > { %3697 = vmatmul.mubr.msk.bf16.gmra.mrb[20].mxu1 %vm1299_vm11, %v3033_v52 }
 0x2d2   : > { %v2461_v7 = vpop.permute.xlu1 %2460  ;;  %v2578_v61 = vpop.permute.xlu0 %2577 }
 0x2d3   : > { %v2811_v18 = vsel %vm1014_vm3, %v4820_v15, %v2461_v7 }
 0x2d4   : > { %v2843_v39 = vsel %vm1047_vm4, %v2811_v18, %v2541_v12 }
 0x2d5   : > { %v2875_v11 = vsel %vm1080_vm5, %v2843_v39, %v2578_v61  ;;  %v3529_v61 = vld [vmem:[%s3842_s23 + $0x31] sm:$0xff]  ;;  %v3530_v39 = vld [vmem:[%s3842_s23 + $0x39] sm:$0xff] }
 0x2d6   : > { %v2463_v32 = vpop.permute.xlu1 %2462  ;;  %v2625_v50 = vpop.permute.xlu0 %2624 }
 0x2d7   : > { %v2907_v53 = vsel %vm1113_vm6, %v2875_v11, %v2625_v50  ;;  %v2813_v8 = vsel %vm1014_vm3, %v4933_v23, %v2463_v32 }
 0x2da   : > { %v2543_v54 = vpop.permute.xlu1 %2542  ;;  %v2660_v22 = vpop.permute.xlu0 %2659 }
 0x2db   : > { %v2939_v17 = vsel %vm1146_vm7, %v2907_v53, %v2660_v22  ;;  %v2845_v0 = vsel %vm1047_vm4, %v2813_v8, %v2543_v54  ;;  %v3527_v54 = vld [vmem:[%s3842_s23 + $0x19] sm:$0xff]  ;;  %v3531_v8 = vld [vmem:[%s3842_s23 + $0x49] sm:$0xff] }
 0x2de   : > { %v2580_v60 = vpop.permute.xlu1 %2579  ;;  %v2697_v19 = vpop.permute.xlu0 %2696 }
 0x2df   : > { %v2971_v40 = vsel %vm1179_vm8, %v2939_v17, %v2697_v19  ;;  %v2877_v45 = vsel %vm1080_vm5, %v2845_v0, %v2580_v60 }
 0x2e2   : > { %v2627_v1 = vpop.permute.xlu1 %2626  ;;  %v2744_v37 = vpop.permute.xlu0 %2743 }
 0x2e3   : > { %v3003_v25 = vsel %vm5385_vm13, %v2971_v40, %v2744_v37  ;;  %v2909_v10 = vsel %vm1113_vm6, %v2877_v45, %v2627_v1  ;;  %v3528_v1 = vld [vmem:[%s3842_s23 + $0x21] sm:$0xff]  ;;  %v3534_v45 = vld [vmem:[%s3842_s23 + $0x69] sm:$0xff] }
 0x2e6   : > { %v2662_v62 = vpop.permute.xlu1 %2661  ;;  %v2779_v28 = vpop.permute.xlu0 %2778 }
 0x2e7   : > { %v3035_v15 = vsel %vm5386_vm0, %v3003_v25, %v2779_v28  ;;  %v2941_v43 = vsel %vm1146_vm7, %v2909_v10, %v2662_v62  ;;  %v3533_v25 = vld [vmem:[%s3842_s23 + $0x61] sm:$0xff] }
 0x2e8   : > { %3700 = vmatprep.mubr.msk.bf16.mxu1 %vm1299_vm11, %v3035_v15 }
 0x2ea   : > { %v2699_v24 = vpop.permute.xlu1 %2698  ;;  %v2781_v49 = vpop.permute.xlu0 %2780 }
 0x2eb   : > { %v2973_v29 = vsel %vm1179_vm8, %v2941_v43, %v2699_v24 }
 0x2ee   : > { %v2746_v51 = vpop.permute.xlu1 %2745  ;;  %v2545_v56 = vpop.permute.xlu0 %2544 }
 0x2ef   : > { %v3005_v59 = vsel %vm5387_vm9, %v2973_v29, %v2746_v51  ;;  %v3532_v29 = vld [vmem:[%s3842_s23 + $0x51] sm:$0xff] }
 0x2f0   : > { %v3037_v23 = vsel %vm5388_vm2, %v3005_v59, %v2781_v49 }
 0x2f1   : > { %3701 = vmatmul.mubr.msk.bf16.gmra.mrb[24].mxu1 %vm1299_vm11, %v3037_v23 }
 0x2f2   : > { %v2465_v2 = vpop.permute.xlu1 %2464  ;;  %v2582_v13 = vpop.permute.xlu0 %2581 }
 0x2f3   : > { %v2815_v14 = vsel %vm1014_vm3, %v4964_v55, %v2465_v2 }
 0x2f4   : > { %v2847_v63 = vsel %vm1047_vm4, %v2815_v14, %v2545_v56 }
 0x2f5   : > { %v2879_v33 = vsel %vm1080_vm5, %v2847_v63, %v2582_v13  ;;  %v3537_v13 = vld [vmem:[%s3842_s23 + $0x91] sm:$0xff]  ;;  %v3538_v63 = vld [vmem:[%s3842_s23 + $0x99] sm:$0xff] }
 0x2f6   : > { %v2467_v47 = vpop.permute.xlu1 %2466  ;;  %v2629_v4 = vpop.permute.xlu0 %2628 }
 0x2f7   : > { %v2911_v35 = vsel %vm1113_vm6, %v2879_v33, %v2629_v4  ;;  %v2817_v34 = vsel %vm1014_vm3, %v5031_v38, %v2467_v47  ;;  %v5201_v38 = vld [vmem:[%s5345_s4] ss:$0 sm:$0xff] }
 0x2fa   : > { %v2547_v26 = vpop.permute.xlu1 %2546  ;;  %v2664_v27 = vpop.permute.xlu0 %2663 }
 0x2fb   : > { %v2943_v36 = vsel %vm1146_vm7, %v2911_v35, %v2664_v27  ;;  %v2849_v42 = vsel %vm1047_vm4, %v2817_v34, %v2547_v26  ;;  %v3535_v26 = vld [vmem:[%s3842_s23 + $0x79] sm:$0xff] }
 0x2fe   : > { %v2584_v5 = vpop.permute.xlu1 %2583  ;;  %v2701_v31 = vpop.permute.xlu0 %2700 }
 0x2ff   : > { %v2975_v44 = vsel %vm1179_vm8, %v2943_v36, %v2701_v31  ;;  %v2881_v58 = vsel %vm1080_vm5, %v2849_v42, %v2584_v5 }
 0x302   : > { %v2631_v6 = vpop.permute.xlu1 %2630  ;;  %v2748_v57 = vpop.permute.xlu0 %2747 }
 0x303   : > { %v3007_v9 = vsel %vm5389_vm10, %v2975_v44, %v2748_v57  ;;  %v2913_v16 = vsel %vm1113_vm6, %v2881_v58, %v2631_v6  ;;  %v3536_v6 = vld [vmem:[%s3842_s23 + $0x81] sm:$0xff]  ;;  %v3542_v58 = vld [vmem:[%s3842_s23 + $0xc9] sm:$0xff] }
 0x306   : > { %v2666_v20 = vpop.permute.xlu1 %2665  ;;  %v2783_v55 = vpop.permute.xlu0 %2782 }
 0x307   : > { %v3039_v41 = vsel %vm5390_vm12, %v3007_v9, %v2783_v55  ;;  %v2945_v21 = vsel %vm1146_vm7, %v2913_v16, %v2666_v20  ;;  %v3541_v9 = vld [vmem:[%s3842_s23 + $0xc1] sm:$0xff] }
 0x308   : > { %3704 = vmatprep.mubr.msk.bf16.mxu1 %vm1299_vm11, %v3039_v41 }
 0x30a   : > { %v2703_v3 = vpop.permute.xlu1 %2702 }
 0x30b   : > { %v2977_v46 = vsel %vm1179_vm8, %v2945_v21, %v2703_v3  ;;  %v3539_v3 = vld [vmem:[%s3842_s23 + $0xa9] sm:$0xff] }
 0x30e   : > { %v2750_v30 = vpop.permute.xlu1 %2749 }
 0x30f   : > { %v3009_v48 = vsel %vm5391_vm15, %v2977_v46, %v2750_v30  ;;  %v3540_v46 = vld [vmem:[%s3842_s23 + $0xb1] sm:$0xff] }
 0x312   : > { %v2785_v12 = vpop.permute.xlu1 %2784 }
 0x313   : > { %v3041_v52 = vsel %vm5392_vm14, %v3009_v48, %v2785_v12 }
 0x314   : > { %3705 = vmatmul.mubr.msk.bf16.gmra.mrb[28].mxu1 %vm1299_vm11, %v3041_v52 }
 0x315   : > { %v3678_v7 = vpop.f32.mrb[0].mxu1 }
 0x316   : > { %v3141_v32 = vadd.f32 %v3678_v7, %v5201_v38  ;;  %v3132_v50 = vpop.f32.mrb[1].mxu1 }
 0x317   : > { %v3133_v18 = vadd.f32 %v5201_v38, %v3132_v50  ;;  %v3679_v22 = vpop.f32.mrb[2].mxu1 }
 0x318   : > { %v3294_v60 = vadd.f32 %v3529_v61, %v3141_v32  ;;  %v3144_v19 = vadd.f32 %v3679_v22, %v5201_v38  ;;  %v3135_v11 = vpop.f32.mrb[3].mxu1  ;;  %v3545_v32 = vld [vmem:[%s3842_s23 + $0xf1] sm:$0xff] }
 0x319   : > { %v3292_v37 = vadd.f32 %v3527_v54, %v3133_v18  ;;  %v3136_v53 = vadd.f32 %v5201_v38, %v3135_v11  ;;  %v3543_v18 = vld [vmem:[%s3842_s23 + $0xd9] sm:$0xff] }
 0x31a   : > { %3326 = vst.msk [vmem:[%s5211_s6 + $0x10] sm:$0xff] %vm1014_vm3, %v3294_v60  ;;  %v3295_v17 = vadd.f32 %v3530_v39, %v3144_v19  ;;  %v3546_v60 = vld [vmem:[%s3842_s23 + $0xf9] sm:$0xff] }
 0x31b   : > { %3324 = vst.msk [vmem:[%s5211_s6] sm:$0xff] %vm1014_vm3, %v3292_v37  ;;  %v3293_v40 = vadd.f32 %v3528_v1, %v3136_v53  ;;  %v3544_v37 = vld [vmem:[%s3842_s23 + $0xe1] sm:$0xff] }
 0x31c   : > { %3327 = vst.msk [vmem:[%s5211_s6 + $0x18] sm:$0xff] %vm1014_vm3, %v3295_v17 }
 0x31d   : > { %3325 = vst.msk [vmem:[%s5211_s6 + $0x8] sm:$0xff] %vm1014_vm3, %v3293_v40 }
 0x335   : > { %v3682_v62 = vpop.f32.mrb[4].mxu1 }
 0x336   : > { %v3157_v28 = vadd.f32 %v3682_v62, %v5201_v38  ;;  %v3148_v15 = vpop.f32.mrb[5].mxu1 }
 0x337   : > { %v3149_v0 = vadd.f32 %v5201_v38, %v3148_v15  ;;  %v3683_v24 = vpop.f32.mrb[6].mxu1 }
 0x338   : > { %v3298_v49 = vadd.f32 %v3533_v25, %v3157_v28  ;;  %v3160_v10 = vadd.f32 %v3683_v24, %v5201_v38  ;;  %v3151_v43 = vpop.f32.mrb[7].mxu1  ;;  %v3549_v28 = vld [vmem:[%s3842_s23 + $0x121] sm:$0xff] }
 0x339   : > { %v3296_v51 = vadd.f32 %v3531_v8, %v3149_v0  ;;  %v3152_v59 = vadd.f32 %v5201_v38, %v3151_v43  ;;  %v3547_v0 = vld [vmem:[%s3842_s23 + $0x109] sm:$0xff] }
 0x33a   : > { %3330 = vst.msk [vmem:[%s5211_s6 + $0x30] sm:$0xff] %vm1014_vm3, %v3298_v49  ;;  %v3299_v56 = vadd.f32 %v3534_v45, %v3160_v10  ;;  %v3550_v49 = vld [vmem:[%s3842_s23 + $0x129] sm:$0xff] }
 0x33b   : > { %3328 = vst.msk [vmem:[%s5211_s6 + $0x20] sm:$0xff] %vm1014_vm3, %v3296_v51  ;;  %v3297_v23 = vadd.f32 %v3532_v29, %v3152_v59  ;;  %v3548_v51 = vld [vmem:[%s3842_s23 + $0x111] sm:$0xff] }
 0x33c   : > { %3331 = vst.msk [vmem:[%s5211_s6 + $0x38] sm:$0xff] %vm1014_vm3, %v3299_v56 }
 0x33d   : > { %3329 = vst.msk [vmem:[%s5211_s6 + $0x28] sm:$0xff] %vm1014_vm3, %v3297_v23 }
 0x355   : > { %v3686_v2 = vpop.f32.mrb[8].mxu1 }
 0x356   : > { %v3173_v47 = vadd.f32 %v3686_v2, %v5201_v38  ;;  %v3164_v4 = vpop.f32.mrb[9].mxu1 }
 0x357   : > { %v3165_v14 = vadd.f32 %v5201_v38, %v3164_v4  ;;  %v3687_v27 = vpop.f32.mrb[10].mxu1 }
 0x358   : > { %v3302_v5 = vadd.f32 %v3537_v13, %v3173_v47  ;;  %v3176_v31 = vadd.f32 %v3687_v27, %v5201_v38  ;;  %v3167_v33 = vpop.f32.mrb[11].mxu1  ;;  %v3553_v47 = vld [vmem:[%s3842_s23 + $0x151] sm:$0xff] }
 0x359   : > { %v3300_v57 = vadd.f32 %v3535_v26, %v3165_v14  ;;  %v3168_v35 = vadd.f32 %v5201_v38, %v3167_v33  ;;  %v3551_v14 = vld [vmem:[%s3842_s23 + $0x139] sm:$0xff] }
 0x35a   : > { %3334 = vst.msk [vmem:[%s5211_s6 + $0x50] sm:$0xff] %vm1014_vm3, %v3302_v5  ;;  %v3303_v36 = vadd.f32 %v3538_v63, %v3176_v31  ;;  %v3554_v5 = vld [vmem:[%s3842_s23 + $0x159] sm:$0xff] }
 0x35b   : > { %3332 = vst.msk [vmem:[%s5211_s6 + $0x40] sm:$0xff] %vm1014_vm3, %v3300_v57  ;;  %v3301_v44 = vadd.f32 %v3536_v6, %v3168_v35  ;;  %v3552_v57 = vld [vmem:[%s3842_s23 + $0x141] sm:$0xff] }
 0x35c   : > { %3335 = vst.msk [vmem:[%s5211_s6 + $0x58] sm:$0xff] %vm1014_vm3, %v3303_v36 }
 0x35d   : > { %3333 = vst.msk [vmem:[%s5211_s6 + $0x48] sm:$0xff] %vm1014_vm3, %v3301_v44 }
 0x375   : > { %v3690_v20 = vpop.f32.mrb[12].mxu1 }
 0x376   : > { %v3189_v55 = vadd.f32 %v3690_v20, %v5201_v38  ;;  %v3180_v41 = vpop.f32.mrb[13].mxu1 }
 0x377   : > { %v3181_v34 = vadd.f32 %v5201_v38, %v3180_v41  ;;  %v3691_v42 = vpop.f32.mrb[14].mxu1 }
 0x378   : > { %v3306_v30 = vadd.f32 %v3541_v9, %v3189_v55  ;;  %v3192_v16 = vadd.f32 %v3691_v42, %v5201_v38  ;;  %v3183_v21 = vpop.f32.mrb[15].mxu1  ;;  %v3557_v55 = vld [vmem:[%s3842_s23 + $0x181] sm:$0xff] }
 0x379   : > { %v3304_v48 = vadd.f32 %v3539_v3, %v3181_v34  ;;  %v3184_v12 = vadd.f32 %v5201_v38, %v3183_v21  ;;  %v3555_v34 = vld [vmem:[%s3842_s23 + $0x169] sm:$0xff] }
 0x37a   : > { %3338 = vst.msk [vmem:[%s5211_s6 + $0x70] sm:$0xff] %vm1014_vm3, %v3306_v30  ;;  %v3307_v52 = vadd.f32 %v3542_v58, %v3192_v16  ;;  %v3558_v30 = vld [vmem:[%s3842_s23 + $0x189] sm:$0xff] }
 0x37b   : > { %3336 = vst.msk [vmem:[%s5211_s6 + $0x60] sm:$0xff] %vm1014_vm3, %v3304_v48  ;;  %v3305_v7 = vadd.f32 %v3540_v46, %v3184_v12  ;;  %v3556_v48 = vld [vmem:[%s3842_s23 + $0x171] sm:$0xff] }
 0x37c   : > { %3339 = vst.msk [vmem:[%s5211_s6 + $0x78] sm:$0xff] %vm1014_vm3, %v3307_v52 }
 0x37d   : > { %3337 = vst.msk [vmem:[%s5211_s6 + $0x68] sm:$0xff] %vm1014_vm3, %v3305_v7 }
 0x389   : > { %v3694_v61 = vpop.f32.mrb[16].mxu1 }
 0x38a   : > { %v3205_v50 = vadd.f32 %v3694_v61, %v5201_v38  ;;  %v3196_v54 = vpop.f32.mrb[17].mxu1 }
 0x38b   : > { %v3197_v22 = vadd.f32 %v5201_v38, %v3196_v54  ;;  %v3695_v39 = vpop.f32.mrb[18].mxu1 }
 0x38c   : > { %v3310_v19 = vadd.f32 %v3545_v32, %v3205_v50  ;;  %v3208_v11 = vadd.f32 %v3695_v39, %v5201_v38  ;;  %v3199_v1 = vpop.f32.mrb[19].mxu1 }
 0x38d   : > { %v3308_v53 = vadd.f32 %v3543_v18, %v3197_v22  ;;  %v3200_v17 = vadd.f32 %v5201_v38, %v3199_v1 }
 0x38e   : > { %3342 = vst.msk [vmem:[%s5211_s6 + $0x90] sm:$0xff] %vm1014_vm3, %v3310_v19  ;;  %v3311_v40 = vadd.f32 %v3546_v60, %v3208_v11 }
 0x38f   : > { %3340 = vst.msk [vmem:[%s5211_s6 + $0x80] sm:$0xff] %vm1014_vm3, %v3308_v53  ;;  %v3309_v62 = vadd.f32 %v3544_v37, %v3200_v17 }
 0x390   : > { %3343 = vst.msk [vmem:[%s5211_s6 + $0x98] sm:$0xff] %vm1014_vm3, %v3311_v40 }
 0x391   : > { %3341 = vst.msk [vmem:[%s5211_s6 + $0x88] sm:$0xff] %vm1014_vm3, %v3309_v62 }
 0x3a4   : > { %v3698_v25 = vpop.f32.mrb[20].mxu1 }
 0x3a5   : > { %v3221_v15 = vadd.f32 %v3698_v25, %v5201_v38  ;;  %v3212_v8 = vpop.f32.mrb[21].mxu1 }
 0x3a6   : > { %v3213_v24 = vadd.f32 %v5201_v38, %v3212_v8  ;;  %v3699_v45 = vpop.f32.mrb[22].mxu1 }
 0x3a7   : > { %v3314_v10 = vadd.f32 %v3549_v28, %v3221_v15  ;;  %v3224_v43 = vadd.f32 %v3699_v45, %v5201_v38  ;;  %v3215_v29 = vpop.f32.mrb[23].mxu1 }
 0x3a8   : > { %v3312_v59 = vadd.f32 %v3547_v0, %v3213_v24  ;;  %v3216_v56 = vadd.f32 %v5201_v38, %v3215_v29 }
 0x3a9   : > { %3346 = vst.msk [vmem:[%s5211_s6 + $0xb0] sm:$0xff] %vm1014_vm3, %v3314_v10  ;;  %v3315_v23 = vadd.f32 %v3550_v49, %v3224_v43 }
 0x3aa   : > { %3344 = vst.msk [vmem:[%s5211_s6 + $0xa0] sm:$0xff] %vm1014_vm3, %v3312_v59  ;;  %v3313_v2 = vadd.f32 %v3548_v51, %v3216_v56 }
 0x3ab   : > { %3347 = vst.msk [vmem:[%s5211_s6 + $0xb8] sm:$0xff] %vm1014_vm3, %v3315_v23 }
 0x3ac   : > { %3345 = vst.msk [vmem:[%s5211_s6 + $0xa8] sm:$0xff] %vm1014_vm3, %v3313_v2 }
 0x3c4   : > { %v3702_v13 = vpop.f32.mrb[24].mxu1 }
 0x3c5   : > { %v3237_v4 = vadd.f32 %v3702_v13, %v5201_v38  ;;  %v3228_v26 = vpop.f32.mrb[25].mxu1 }
 0x3c6   : > { %v3229_v27 = vadd.f32 %v5201_v38, %v3228_v26  ;;  %v3703_v63 = vpop.f32.mrb[26].mxu1 }
 0x3c7   : > { %v3318_v31 = vadd.f32 %v3553_v47, %v3237_v4  ;;  %v3240_v33 = vadd.f32 %v3703_v63, %v5201_v38  ;;  %v3231_v6 = vpop.f32.mrb[27].mxu1 }
 0x3c8   : > { %v3316_v35 = vadd.f32 %v3551_v14, %v3229_v27  ;;  %v3232_v36 = vadd.f32 %v5201_v38, %v3231_v6 }
 0x3c9   : > { %3350 = vst.msk [vmem:[%s5211_s6 + $0xd0] sm:$0xff] %vm1014_vm3, %v3318_v31  ;;  %v3319_v44 = vadd.f32 %v3554_v5, %v3240_v33 }
 0x3ca   : > { %3348 = vst.msk [vmem:[%s5211_s6 + $0xc0] sm:$0xff] %vm1014_vm3, %v3316_v35  ;;  %v3317_v20 = vadd.f32 %v3552_v57, %v3232_v36 }
 0x3cb   : > { %3351 = vst.msk [vmem:[%s5211_s6 + $0xd8] sm:$0xff] %vm1014_vm3, %v3319_v44 }
 0x3cc   : > { %3349 = vst.msk [vmem:[%s5211_s6 + $0xc8] sm:$0xff] %vm1014_vm3, %v3317_v20 }
 0x3e7   : > { %v3706_v9 = vpop.f32.mrb[28].mxu1 }
 0x3e8   : > { %v3253_v41 = vadd.f32 %v3706_v9, %v5201_v38  ;;  %v3244_v3 = vpop.f32.mrb[29].mxu1 }
 0x3e9   : > { %v3245_v42 = vadd.f32 %v5201_v38, %v3244_v3  ;;  %v3707_v58 = vpop.f32.mrb[30].mxu1 }
 0x3ea   : > { %v3322_v16 = vadd.f32 %v3557_v55, %v3253_v41  ;;  %v3256_v21 = vadd.f32 %v3707_v58, %v5201_v38  ;;  %v3247_v46 = vpop.f32.mrb[31].mxu1 }
 0x3eb   : > { %v3320_v12 = vadd.f32 %v3555_v34, %v3245_v42  ;;  %v3248_v52 = vadd.f32 %v5201_v38, %v3247_v46 }
 0x3ec   : > { %3354 = vst.msk [vmem:[%s5211_s6 + $0xf0] sm:$0xff] %vm1014_vm3, %v3322_v16  ;;  %v3323_v7 = vadd.f32 %v3558_v30, %v3256_v21 }
 0x3ed   : > { %3352 = vst.msk [vmem:[%s5211_s6 + $0xe0] sm:$0xff] %vm1014_vm3, %v3320_v12  ;;  %v3321_v61 = vadd.f32 %v3556_v48, %v3248_v52 }
 0x3ee   : > { %3355 = vst.msk [vmem:[%s5211_s6 + $0xf8] sm:$0xff] %vm1014_vm3, %v3323_v7 }
 0x3ef   : > { %3353 = vst.msk [vmem:[%s5211_s6 + $0xe8] sm:$0xff] %vm1014_vm3, %v3321_v61 }
 0x3f0 PF: > { %s15_s18 = sadd.s32 1, %s3787_s18  }
 0x3f1   : > { %p12_p4 = scmp.ge.s32.totalorder %s15_s18, 4  }
 0x3f3   :  { %14 = sbr.rel (!%p12_p4) target bundleno = 1 (0x1), region = 73 }

</bundles_post_ra>
